<compile_context>
chip_gen: v7x
topology: tpu7x:2x2x1
jax: 0.10.0
libtpu: 0.0.40
codegen_flags: <defaults>
</compile_context>

<pallas_src>
import jax
import jax.numpy as jnp
from jax.experimental import pallas as pl
from jax.experimental.pallas import tpu as pltpu


# ---------------------------------------------------------------------------
# In-kernel building blocks
# ---------------------------------------------------------------------------

def _maxpool2(x, hp_ref):
    """MaxPool2d(2) on a VMEM-resident (B, H, W, C) value -> (B, H//2, W//2, C)."""
    b, h, w, c = x.shape
    a = x.reshape(b, h // 2, 2, w, c)
    a = jnp.maximum(a[:, :, 0], a[:, :, 1])              # H-pairs: free outer-dim split + max
    hp_ref[...] = a                                       # stage for sublane-strided W reads
    even = hp_ref[:, :, pl.ds(0, w // 2, 2), :]
    odd = hp_ref[:, :, pl.ds(1, w // 2, 2), :]
    return jnp.maximum(even, odd)                          # (B, H//2, W//2, C)


def _conv1_vpu(x, w_ref, b_ref, pad_ref, hp_ref):
    """Conv2d(1->Cout, 3x3, pad=1) + bias + ReLU + MaxPool2d(2), direct VPU form (Cin=1).

    x       : (B, H, W, 1)   f32
    w_ref   : (9, Cout)      f32   (k = dy*3 + dx)
    b_ref   : (1, Cout)      f32
    pad_ref : (B, H+2, W+2, 1) f32 VMEM scratch (zero halo)
    hp_ref  : (B, H//2, W, Cout) f32 VMEM scratch
    """
    b, h, w, _ = x.shape
    cout = w_ref.shape[1]

    pad_ref[...] = jnp.zeros_like(pad_ref)
    pad_ref[:, 1:h + 1, 1:w + 1, :] = x

    w1v = w_ref[...]                                       # (9, Cout)
    acc = jnp.zeros((b, h, w, cout), jnp.float32)
    for dx in range(3):                                    # 3 W-shifted copies, reused over dy
        xs = pad_ref[:, :, dx:dx + w, :]                   # (B, H+2, W, 1)
        for dy in range(3):
            tap = xs[:, dy:dy + h]                         # outer-dim slice: free
            wk = w1v[dy * 3 + dx].reshape(1, 1, 1, cout)
            acc = acc + tap * wk                           # VPU FMA, f32 (v5e-safe)

    acc = jnp.maximum(acc + b_ref[...].reshape(1, 1, 1, cout), 0.0)
    return _maxpool2(acc, hp_ref)


def _conv3x3_mxu(x, w_ref, b_ref, pad_ref, hp_ref):
    """Conv2d(Cin->Cout, 3x3, pad=1) + bias + ReLU + MaxPool2d(2), concat-free MXU form.

    x       : (B, H, W, Cin) f32
    w_ref   : (9, Cin, Cout) bf16  (k = dy*3 + dx)
    b_ref   : (1, Cout)      f32
    pad_ref : (B, H+2, W+2, Cin) f32 VMEM scratch
    hp_ref  : (B, H//2, W, Cout) f32 VMEM scratch
    """
    b, h, w, cin = x.shape
    cout = w_ref.shape[2]

    pad_ref[...] = jnp.zeros_like(pad_ref)
    pad_ref[:, 1:h + 1, 1:w + 1, :] = x

    acc = jnp.zeros((b * h * w, cout), jnp.float32)
    for dx in range(3):                                    # 3 W-shifted copies, reused over dy
        xs = pad_ref[:, :, dx:dx + w, :]                   # (B, H+2, W, Cin)
        for dy in range(3):
            tap = xs[:, dy:dy + h]                         # outer-dim slice: free
            acc += jnp.dot(tap.reshape(b * h * w, cin).astype(jnp.bfloat16),
                           w_ref[dy * 3 + dx],
                           preferred_element_type=jnp.float32)

    acc = jnp.maximum(acc + b_ref[...], 0.0)               # bias + ReLU, f32 on VPU
    return _maxpool2(acc.reshape(b, h, w, cout), hp_ref)


# ---------------------------------------------------------------------------
# Fused kernel
# ---------------------------------------------------------------------------

def _simple_cnn_kernel(x_ref,
                       w1_ref, b1_ref, w2_ref, b2_ref, w3_ref, b3_ref,
                       wf1_ref, bf1_ref, wf2_ref, bf2_ref,
                       o_ref,
                       pad1_ref, hp1_ref, pad2_ref, hp2_ref, pad3_ref, hp3_ref):
    """Fused forward pass for one batch-block (blk images, NHWC)."""
    x = x_ref[...]                                                     # (blk, 16, 16, 1) f32

    x = _conv1_vpu(x, w1_ref, b1_ref, pad1_ref, hp1_ref)               # (blk, 8, 8, 32)
    x = _conv3x3_mxu(x, w2_ref, b2_ref, pad2_ref, hp2_ref)             # (blk, 4, 4, 64)
    x = _conv3x3_mxu(x, w3_ref, b3_ref, pad3_ref, hp3_ref)             # (blk, 2, 2, 128)

    # AdaptiveAvgPool((1,1)): two pairwise adds (H then W) * 0.25 — no multi-axis reduce.
    xh = x[:, 0] + x[:, 1]                                             # (blk, 2, 128)
    pooled = (xh[:, 0] + xh[:, 1]) * 0.25                              # (blk, 128)

    h = jnp.dot(pooled.astype(jnp.bfloat16), wf1_ref[...],
                preferred_element_type=jnp.float32) + bf1_ref[...]
    h = jnp.maximum(h, 0.0)
    # TODO(synk): Dropout(0.5) is identity in eval mode; training-mode masking not implemented.
    out = jnp.dot(h.astype(jnp.bfloat16), wf2_ref[...],
                  preferred_element_type=jnp.float32) + bf2_ref[...]   # (blk, 128) lane-dense
    o_ref[...] = out.reshape(o_ref.shape).astype(o_ref.dtype)


# ---------------------------------------------------------------------------
# Wrapper
# ---------------------------------------------------------------------------

_NC_PAD = 128  # lane-dense classifier output width


def _full_spec(shape):
    """Whole-array VMEM block, grid-invariant (for weights/biases)."""
    zeros = (0,) * len(shape)
    return pl.BlockSpec(shape, lambda b: zeros)


def _choose_block(n, max_block=8):
    """Largest batch block <= max_block that still yields >=2 grid steps when n > 1."""
    if n <= 1:
        return 1
    return max(1, min(max_block, n // 2))


def _simple_cnn_pallas(x_nhwc, params, *, max_block=8):
    N, H, W, Cin = x_nhwc.shape
    assert Cin == 1 and H % 8 == 0 and W % 8 == 0, (N, H, W, Cin)
    num_classes = params["b_fc2"].shape[0]
    assert num_classes <= _NC_PAD

    blk = _choose_block(N, max_block)
    n_grid = pl.cdiv(N, blk)
    n_pad = n_grid * blk
    if n_pad != N:
        x_nhwc = jnp.concatenate(
            [x_nhwc, jnp.zeros((n_pad - N, H, W, Cin), x_nhwc.dtype)], axis=0)

    # Kernel-layout weights (all reshapes/casts are free wrapper-side work).
    w1 = params["w_conv1"].reshape(9, 32).astype(jnp.float32)           # VPU conv1, f32
    w2 = params["w_conv2"].reshape(9, 32, 64).astype(jnp.bfloat16)      # per-tap MXU matmuls
    w3 = params["w_conv3"].reshape(9, 64, 128).astype(jnp.bfloat16)
    wf1 = params["w_fc1"].astype(jnp.bfloat16)
    # Lane-dense classifier: pad class columns to 128 with zeros.
    wf2 = jnp.zeros((256, _NC_PAD), jnp.bfloat16).at[:, :num_classes].set(
        params["w_fc2"].astype(jnp.bfloat16))
    b1 = params["b_conv1"].reshape(1, -1).astype(jnp.float32)
    b2 = params["b_conv2"].reshape(1, -1).astype(jnp.float32)
    b3 = params["b_conv3"].reshape(1, -1).astype(jnp.float32)
    bf1 = params["b_fc1"].reshape(1, -1).astype(jnp.float32)
    bf2 = jnp.zeros((1, _NC_PAD), jnp.float32).at[0, :num_classes].set(
        params["b_fc2"].astype(jnp.float32))

    grid_spec = pltpu.PrefetchScalarGridSpec(
        num_scalar_prefetch=0,
        grid=(n_grid,),                                                # blk images / grid step
        in_specs=[
            pl.BlockSpec((blk, H, W, Cin), lambda b: (b, 0, 0, 0)),    # activation block
            _full_spec(w1.shape), _full_spec(b1.shape),
            _full_spec(w2.shape), _full_spec(b2.shape),
            _full_spec(w3.shape), _full_spec(b3.shape),
            _full_spec(wf1.shape), _full_spec(bf1.shape),
            _full_spec(wf2.shape), _full_spec(bf2.shape),
        ],
        out_specs=pl.BlockSpec((1, blk, _NC_PAD), lambda b: (b, 0, 0)),
        scratch_shapes=[
            pltpu.VMEM((blk, H + 2, W + 2, 1), jnp.float32),           # stage-1 zero-halo pad
            pltpu.VMEM((blk, H // 2, W, 32), jnp.float32),             # stage-1 W-pool scratch
            pltpu.VMEM((blk, H // 2 + 2, W // 2 + 2, 32), jnp.float32),  # stage-2 pad
            pltpu.VMEM((blk, H // 4, W // 2, 64), jnp.float32),        # stage-2 W-pool scratch
            pltpu.VMEM((blk, H // 4 + 2, W // 4 + 2, 64), jnp.float32),  # stage-3 pad
            pltpu.VMEM((blk, H // 8, W // 4, 128), jnp.float32),       # stage-3 W-pool scratch
        ],
    )

    out3 = pl.pallas_call(
        _simple_cnn_kernel,
        out_shape=jax.ShapeDtypeStruct((n_grid, blk, _NC_PAD), jnp.float32),
        grid_spec=grid_spec,
        compiler_params=pltpu.CompilerParams(
            dimension_semantics=("parallel",),           # shard batch blocks over v7x's 2 TCs
            vmem_limit_bytes=48 * 1024 * 1024,           # safe on v5e/v6e/v7x; live set << this
        ),
    )(x_nhwc, w1, b1, w2, b2, w3, b3, wf1, bf1, wf2, bf2)

    return out3.reshape(n_pad, _NC_PAD)[:N, :num_classes]


def init_params(key, num_classes=7):
    ks = jax.random.split(key, 10)
    scale = 0.05
    return {
        # conv weights stored in (kh, kw, Cin, Cout) layout
        "w_conv1": jax.random.normal(ks[0], (3, 3, 1, 32), jnp.float32) * scale,
        "b_conv1": jax.random.normal(ks[1], (32,), jnp.float32) * scale,
        "w_conv2": jax.random.normal(ks[2], (3, 3, 32, 64), jnp.float32) * scale,
        "b_conv2": jax.random.normal(ks[3], (64,), jnp.float32) * scale,
        "w_conv3": jax.random.normal(ks[4], (3, 3, 64, 128), jnp.float32) * scale,
        "b_conv3": jax.random.normal(ks[5], (128,), jnp.float32) * scale,
        # linear weights stored as (in, out)
        "w_fc1": jax.random.normal(ks[6], (128, 256), jnp.float32) * scale,
        "b_fc1": jax.random.normal(ks[7], (256,), jnp.float32) * scale,
        "w_fc2": jax.random.normal(ks[8], (256, num_classes), jnp.float32) * scale,
        "b_fc2": jax.random.normal(ks[9], (num_classes,), jnp.float32) * scale,
    }


@jax.jit
def simple_cnn_forward(x_nchw, params):
    """Forward pass equivalent to SimpleCNN.forward (eval mode). Input NCHW, Cin=1."""
    x = jnp.transpose(x_nchw, (0, 2, 3, 1)).astype(jnp.float32)       # NCHW -> NHWC
    return _simple_cnn_pallas(x, params)


if __name__ == "__main__":
    key = jax.random.PRNGKey(0)
    k_x, k_p = jax.random.split(key)

    # Small input consistent with the module: batch=2, 1 channel, 16x16 spatial.
    x = jax.random.normal(k_x, (2, 1, 16, 16), jnp.float32)
    params = init_params(k_p, num_classes=7)

    out = simple_cnn_forward(x, params)
    out = jax.block_until_ready(out)
    assert out.shape == (2, 7), out.shape
    assert bool(jnp.all(jnp.isfinite(out)))
    print("KERNEL_OK")
</pallas_src>

<mosaic_0001>
module attributes {stable_mosaic.version = 11 : i64} {
  func.func @_simple_cnn_kernel(%arg0: i32, %arg1: memref<1x16x16x1xf32, #tpu.memory_space<vmem>>, %arg2: memref<9x32xf32, #tpu.memory_space<vmem>>, %arg3: memref<1x32xf32, #tpu.memory_space<vmem>>, %arg4: memref<9x32x64xbf16, #tpu.memory_space<vmem>>, %arg5: memref<1x64xf32, #tpu.memory_space<vmem>>, %arg6: memref<9x64x128xbf16, #tpu.memory_space<vmem>>, %arg7: memref<1x128xf32, #tpu.memory_space<vmem>>, %arg8: memref<128x256xbf16, #tpu.memory_space<vmem>>, %arg9: memref<1x256xf32, #tpu.memory_space<vmem>>, %arg10: memref<256x128xbf16, #tpu.memory_space<vmem>>, %arg11: memref<1x128xf32, #tpu.memory_space<vmem>>, %arg12: memref<1x1x128xf32, #tpu.memory_space<vmem>>, %arg13: memref<1x18x18x1xf32, #tpu.memory_space<vmem>>, %arg14: memref<1x8x16x32xf32, #tpu.memory_space<vmem>>, %arg15: memref<1x10x10x32xf32, #tpu.memory_space<vmem>>, %arg16: memref<1x4x8x64xf32, #tpu.memory_space<vmem>>, %arg17: memref<1x6x6x64xf32, #tpu.memory_space<vmem>>, %arg18: memref<1x2x4x128xf32, #tpu.memory_space<vmem>>) attributes {dimension_semantics = [#tpu.dimension_semantics<parallel>], iteration_bounds = array<i64: 2>, scalar_prefetch = 0 : i64, scratch_operands = 6 : i64, tpu.core_type = #tpu.core_type<tc>, window_params = [{transform_indices = @transform_0, window_bounds = array<i64: 1, 16, 16, 1>}, {pipeline_mode = #tpu.pipeline_mode<synchronous>, transform_indices = @transform_1, window_bounds = array<i64: 9, 32>}, {pipeline_mode = #tpu.pipeline_mode<synchronous>, transform_indices = @transform_2, window_bounds = array<i64: 1, 32>}, {pipeline_mode = #tpu.pipeline_mode<synchronous>, transform_indices = @transform_3, window_bounds = array<i64: 9, 32, 64>}, {pipeline_mode = #tpu.pipeline_mode<synchronous>, transform_indices = @transform_4, window_bounds = array<i64: 1, 64>}, {pipeline_mode = #tpu.pipeline_mode<synchronous>, transform_indices = @transform_5, window_bounds = array<i64: 9, 64, 128>}, {pipeline_mode = #tpu.pipeline_mode<synchronous>, transform_indices = @transform_6, window_bounds = array<i64: 1, 128>}, {pipeline_mode = #tpu.pipeline_mode<synchronous>, transform_indices = @transform_7, window_bounds = array<i64: 128, 256>}, {pipeline_mode = #tpu.pipeline_mode<synchronous>, transform_indices = @transform_8, window_bounds = array<i64: 1, 256>}, {pipeline_mode = #tpu.pipeline_mode<synchronous>, transform_indices = @transform_9, window_bounds = array<i64: 256, 128>}, {pipeline_mode = #tpu.pipeline_mode<synchronous>, transform_indices = @transform_10, window_bounds = array<i64: 1, 128>}, {transform_indices = @transform_11, window_bounds = array<i64: 1, 1, 128>}]} {
    %c0 = arith.constant 0 : index
    %c0_0 = arith.constant 0 : index
    %c0_1 = arith.constant 0 : index
    %c0_2 = arith.constant 0 : index
    %0 = vector.load %arg1[%c0, %c0_0, %c0_1, %c0_2] : memref<1x16x16x1xf32, #tpu.memory_space<vmem>>, vector<1x16x16x1xf32>
    %cst = arith.constant 0.000000e+00 : f32
    %1 = vector.broadcast %cst : f32 to vector<1x18x18x1xf32>
    %c0_3 = arith.constant 0 : index
    %c0_4 = arith.constant 0 : index
    %c0_5 = arith.constant 0 : index
    %c0_6 = arith.constant 0 : index
    %2 = vector.load %arg13[%c0_3, %c0_4, %c0_5, %c0_6] : memref<1x18x18x1xf32, #tpu.memory_space<vmem>>, vector<1x18x18x1xf32>
    tpu.vector_store %arg13[%c0_3, %c0_4, %c0_5, %c0_6], %1 {strides = array<i32>} : memref<1x18x18x1xf32, #tpu.memory_space<vmem>>, vector<1x18x18x1xf32>,
    %c0_7 = arith.constant 0 : index
    %c1 = arith.constant 1 : index
    %c1_8 = arith.constant 1 : index
    %c0_9 = arith.constant 0 : index
    %3 = vector.load %arg13[%c0_7, %c1, %c1_8, %c0_9] : memref<1x18x18x1xf32, #tpu.memory_space<vmem>>, vector<1x16x16x1xf32>
    tpu.vector_store %arg13[%c0_7, %c1, %c1_8, %c0_9], %0 {strides = array<i32>} : memref<1x18x18x1xf32, #tpu.memory_space<vmem>>, vector<1x16x16x1xf32>,
    %c0_10 = arith.constant 0 : index
    %c0_11 = arith.constant 0 : index
    %4 = vector.load %arg2[%c0_10, %c0_11] : memref<9x32xf32, #tpu.memory_space<vmem>>, vector<9x32xf32>
    %cst_12 = arith.constant 0.000000e+00 : f32
    %5 = vector.broadcast %cst_12 : f32 to vector<1x16x16x32xf32>
    %c0_13 = arith.constant 0 : index
    %c0_14 = arith.constant 0 : index
    %c0_15 = arith.constant 0 : index
    %c0_16 = arith.constant 0 : index
    %6 = vector.load %arg13[%c0_13, %c0_14, %c0_15, %c0_16] : memref<1x18x18x1xf32, #tpu.memory_space<vmem>>, vector<1x18x16x1xf32>
    %7 = vector.extract_strided_slice %6 {offsets = [0, 0, 0, 0], sizes = [1, 16, 16, 1], strides = [1, 1, 1, 1]} : vector<1x18x16x1xf32> to vector<1x16x16x1xf32>
    %8 = vector.extract_strided_slice %4 {offsets = [0, 0], sizes = [1, 32], strides = [1, 1]} : vector<9x32xf32> to vector<1x32xf32>
    %9 = vector.shape_cast %8 : vector<1x32xf32> to vector<32xf32>
    %10 = vector.shape_cast %9 : vector<32xf32> to vector<1x1x1x32xf32>
    %11 = vector.broadcast %7 : vector<1x16x16x1xf32> to vector<1x16x16x32xf32>
    %12 = vector.broadcast %10 : vector<1x1x1x32xf32> to vector<1x16x16x32xf32>
    %13 = arith.mulf %11, %12 : vector<1x16x16x32xf32>
    %14 = arith.addf %5, %13 : vector<1x16x16x32xf32>
    %15 = vector.extract_strided_slice %6 {offsets = [0, 1, 0, 0], sizes = [1, 16, 16, 1], strides = [1, 1, 1, 1]} : vector<1x18x16x1xf32> to vector<1x16x16x1xf32>
    %16 = vector.extract_strided_slice %4 {offsets = [3, 0], sizes = [1, 32], strides = [1, 1]} : vector<9x32xf32> to vector<1x32xf32>
    %17 = vector.shape_cast %16 : vector<1x32xf32> to vector<32xf32>
    %18 = vector.shape_cast %17 : vector<32xf32> to vector<1x1x1x32xf32>
    %19 = vector.broadcast %15 : vector<1x16x16x1xf32> to vector<1x16x16x32xf32>
    %20 = vector.broadcast %18 : vector<1x1x1x32xf32> to vector<1x16x16x32xf32>
    %21 = arith.mulf %19, %20 : vector<1x16x16x32xf32>
    %22 = arith.addf %14, %21 : vector<1x16x16x32xf32>
    %23 = vector.extract_strided_slice %6 {offsets = [0, 2, 0, 0], sizes = [1, 16, 16, 1], strides = [1, 1, 1, 1]} : vector<1x18x16x1xf32> to vector<1x16x16x1xf32>
    %24 = vector.extract_strided_slice %4 {offsets = [6, 0], sizes = [1, 32], strides = [1, 1]} : vector<9x32xf32> to vector<1x32xf32>
    %25 = vector.shape_cast %24 : vector<1x32xf32> to vector<32xf32>
    %26 = vector.shape_cast %25 : vector<32xf32> to vector<1x1x1x32xf32>
    %27 = vector.broadcast %23 : vector<1x16x16x1xf32> to vector<1x16x16x32xf32>
    %28 = vector.broadcast %26 : vector<1x1x1x32xf32> to vector<1x16x16x32xf32>
    %29 = arith.mulf %27, %28 : vector<1x16x16x32xf32>
    %30 = arith.addf %22, %29 : vector<1x16x16x32xf32>
    %c0_17 = arith.constant 0 : index
    %c0_18 = arith.constant 0 : index
    %c1_19 = arith.constant 1 : index
    %c0_20 = arith.constant 0 : index
    %31 = vector.load %arg13[%c0_17, %c0_18, %c1_19, %c0_20] : memref<1x18x18x1xf32, #tpu.memory_space<vmem>>, vector<1x18x16x1xf32>
    %32 = vector.extract_strided_slice %31 {offsets = [0, 0, 0, 0], sizes = [1, 16, 16, 1], strides = [1, 1, 1, 1]} : vector<1x18x16x1xf32> to vector<1x16x16x1xf32>
    %33 = vector.extract_strided_slice %4 {offsets = [1, 0], sizes = [1, 32], strides = [1, 1]} : vector<9x32xf32> to vector<1x32xf32>
    %34 = vector.shape_cast %33 : vector<1x32xf32> to vector<32xf32>
    %35 = vector.shape_cast %34 : vector<32xf32> to vector<1x1x1x32xf32>
    %36 = vector.broadcast %32 : vector<1x16x16x1xf32> to vector<1x16x16x32xf32>
    %37 = vector.broadcast %35 : vector<1x1x1x32xf32> to vector<1x16x16x32xf32>
    %38 = arith.mulf %36, %37 : vector<1x16x16x32xf32>
    %39 = arith.addf %30, %38 : vector<1x16x16x32xf32>
    %40 = vector.extract_strided_slice %31 {offsets = [0, 1, 0, 0], sizes = [1, 16, 16, 1], strides = [1, 1, 1, 1]} : vector<1x18x16x1xf32> to vector<1x16x16x1xf32>
    %41 = vector.extract_strided_slice %4 {offsets = [4, 0], sizes = [1, 32], strides = [1, 1]} : vector<9x32xf32> to vector<1x32xf32>
    %42 = vector.shape_cast %41 : vector<1x32xf32> to vector<32xf32>
    %43 = vector.shape_cast %42 : vector<32xf32> to vector<1x1x1x32xf32>
    %44 = vector.broadcast %40 : vector<1x16x16x1xf32> to vector<1x16x16x32xf32>
    %45 = vector.broadcast %43 : vector<1x1x1x32xf32> to vector<1x16x16x32xf32>
    %46 = arith.mulf %44, %45 : vector<1x16x16x32xf32>
    %47 = arith.addf %39, %46 : vector<1x16x16x32xf32>
    %48 = vector.extract_strided_slice %31 {offsets = [0, 2, 0, 0], sizes = [1, 16, 16, 1], strides = [1, 1, 1, 1]} : vector<1x18x16x1xf32> to vector<1x16x16x1xf32>
    %49 = vector.extract_strided_slice %4 {offsets = [7, 0], sizes = [1, 32], strides = [1, 1]} : vector<9x32xf32> to vector<1x32xf32>
    %50 = vector.shape_cast %49 : vector<1x32xf32> to vector<32xf32>
    %51 = vector.shape_cast %50 : vector<32xf32> to vector<1x1x1x32xf32>
    %52 = vector.broadcast %48 : vector<1x16x16x1xf32> to vector<1x16x16x32xf32>
    %53 = vector.broadcast %51 : vector<1x1x1x32xf32> to vector<1x16x16x32xf32>
    %54 = arith.mulf %52, %53 : vector<1x16x16x32xf32>
    %55 = arith.addf %47, %54 : vector<1x16x16x32xf32>
    %c0_21 = arith.constant 0 : index
    %c0_22 = arith.constant 0 : index
    %c2 = arith.constant 2 : index
    %c0_23 = arith.constant 0 : index
    %56 = vector.load %arg13[%c0_21, %c0_22, %c2, %c0_23] : memref<1x18x18x1xf32, #tpu.memory_space<vmem>>, vector<1x18x16x1xf32>
    %57 = vector.extract_strided_slice %56 {offsets = [0, 0, 0, 0], sizes = [1, 16, 16, 1], strides = [1, 1, 1, 1]} : vector<1x18x16x1xf32> to vector<1x16x16x1xf32>
    %58 = vector.extract_strided_slice %4 {offsets = [2, 0], sizes = [1, 32], strides = [1, 1]} : vector<9x32xf32> to vector<1x32xf32>
    %59 = vector.shape_cast %58 : vector<1x32xf32> to vector<32xf32>
    %60 = vector.shape_cast %59 : vector<32xf32> to vector<1x1x1x32xf32>
    %61 = vector.broadcast %57 : vector<1x16x16x1xf32> to vector<1x16x16x32xf32>
    %62 = vector.broadcast %60 : vector<1x1x1x32xf32> to vector<1x16x16x32xf32>
    %63 = arith.mulf %61, %62 : vector<1x16x16x32xf32>
    %64 = arith.addf %55, %63 : vector<1x16x16x32xf32>
    %65 = vector.extract_strided_slice %56 {offsets = [0, 1, 0, 0], sizes = [1, 16, 16, 1], strides = [1, 1, 1, 1]} : vector<1x18x16x1xf32> to vector<1x16x16x1xf32>
    %66 = vector.extract_strided_slice %4 {offsets = [5, 0], sizes = [1, 32], strides = [1, 1]} : vector<9x32xf32> to vector<1x32xf32>
    %67 = vector.shape_cast %66 : vector<1x32xf32> to vector<32xf32>
    %68 = vector.shape_cast %67 : vector<32xf32> to vector<1x1x1x32xf32>
    %69 = vector.broadcast %65 : vector<1x16x16x1xf32> to vector<1x16x16x32xf32>
    %70 = vector.broadcast %68 : vector<1x1x1x32xf32> to vector<1x16x16x32xf32>
    %71 = arith.mulf %69, %70 : vector<1x16x16x32xf32>
    %72 = arith.addf %64, %71 : vector<1x16x16x32xf32>
    %73 = vector.extract_strided_slice %56 {offsets = [0, 2, 0, 0], sizes = [1, 16, 16, 1], strides = [1, 1, 1, 1]} : vector<1x18x16x1xf32> to vector<1x16x16x1xf32>
    %74 = vector.extract_strided_slice %4 {offsets = [8, 0], sizes = [1, 32], strides = [1, 1]} : vector<9x32xf32> to vector<1x32xf32>
    %75 = vector.shape_cast %74 : vector<1x32xf32> to vector<32xf32>
    %76 = vector.shape_cast %75 : vector<32xf32> to vector<1x1x1x32xf32>
    %77 = vector.broadcast %73 : vector<1x16x16x1xf32> to vector<1x16x16x32xf32>
    %78 = vector.broadcast %76 : vector<1x1x1x32xf32> to vector<1x16x16x32xf32>
    %79 = arith.mulf %77, %78 : vector<1x16x16x32xf32>
    %80 = arith.addf %72, %79 : vector<1x16x16x32xf32>
    %c0_24 = arith.constant 0 : index
    %c0_25 = arith.constant 0 : index
    %81 = vector.load %arg3[%c0_24, %c0_25] : memref<1x32xf32, #tpu.memory_space<vmem>>, vector<1x32xf32>
    %82 = vector.shape_cast %81 : vector<1x32xf32> to vector<1x1x1x32xf32>
    %83 = vector.broadcast %82 : vector<1x1x1x32xf32> to vector<1x16x16x32xf32>
    %84 = arith.addf %80, %83 : vector<1x16x16x32xf32>
    %cst_26 = arith.constant 0.000000e+00 : f32
    %85 = vector.broadcast %cst_26 : f32 to vector<1x16x16x32xf32>
    %86 = arith.maximumf %84, %85 : vector<1x16x16x32xf32>
    %87 = vector.shape_cast %86 : vector<1x16x16x32xf32> to vector<1x8x2x16x32xf32>
    %88 = vector.extract_strided_slice %87 {offsets = [0, 0, 0, 0, 0], sizes = [1, 8, 1, 16, 32], strides = [1, 1, 1, 1, 1]} : vector<1x8x2x16x32xf32> to vector<1x8x1x16x32xf32>
    %89 = vector.shape_cast %88 : vector<1x8x1x16x32xf32> to vector<1x8x16x32xf32>
    %90 = vector.extract_strided_slice %87 {offsets = [0, 0, 1, 0, 0], sizes = [1, 8, 1, 16, 32], strides = [1, 1, 1, 1, 1]} : vector<1x8x2x16x32xf32> to vector<1x8x1x16x32xf32>
    %91 = vector.shape_cast %90 : vector<1x8x1x16x32xf32> to vector<1x8x16x32xf32>
    %92 = arith.maximumf %89, %91 : vector<1x8x16x32xf32>
    %c0_27 = arith.constant 0 : index
    %c0_28 = arith.constant 0 : index
    %c0_29 = arith.constant 0 : index
    %c0_30 = arith.constant 0 : index
    %93 = vector.load %arg14[%c0_27, %c0_28, %c0_29, %c0_30] : memref<1x8x16x32xf32, #tpu.memory_space<vmem>>, vector<1x8x16x32xf32>
    tpu.vector_store %arg14[%c0_27, %c0_28, %c0_29, %c0_30], %92 {strides = array<i32>} : memref<1x8x16x32xf32, #tpu.memory_space<vmem>>, vector<1x8x16x32xf32>,
    %c0_31 = arith.constant 0 : index
    %c0_32 = arith.constant 0 : index
    %c0_33 = arith.constant 0 : index
    %c0_34 = arith.constant 0 : index
    %94 = tpu.strided_load %arg14[%c0_31, %c0_32, %c0_33, %c0_34] {strides = array<i32: 1, 1, 2, 1>} : memref<1x8x16x32xf32, #tpu.memory_space<vmem>>, vector<1x8x8x32xf32>
    %c0_35 = arith.constant 0 : index
    %c0_36 = arith.constant 0 : index
    %c1_37 = arith.constant 1 : index
    %c0_38 = arith.constant 0 : index
    %95 = tpu.strided_load %arg14[%c0_35, %c0_36, %c1_37, %c0_38] {strides = array<i32: 1, 1, 2, 1>} : memref<1x8x16x32xf32, #tpu.memory_space<vmem>>, vector<1x8x8x32xf32>
    %96 = arith.maximumf %94, %95 : vector<1x8x8x32xf32>
    %cst_39 = arith.constant 0.000000e+00 : f32
    %97 = vector.broadcast %cst_39 : f32 to vector<1x10x10x32xf32>
    %c0_40 = arith.constant 0 : index
    %c0_41 = arith.constant 0 : index
    %c0_42 = arith.constant 0 : index
    %c0_43 = arith.constant 0 : index
    %98 = vector.load %arg15[%c0_40, %c0_41, %c0_42, %c0_43] : memref<1x10x10x32xf32, #tpu.memory_space<vmem>>, vector<1x10x10x32xf32>
    tpu.vector_store %arg15[%c0_40, %c0_41, %c0_42, %c0_43], %97 {strides = array<i32>} : memref<1x10x10x32xf32, #tpu.memory_space<vmem>>, vector<1x10x10x32xf32>,
    %c0_44 = arith.constant 0 : index
    %c1_45 = arith.constant 1 : index
    %c1_46 = arith.constant 1 : index
    %c0_47 = arith.constant 0 : index
    %99 = vector.load %arg15[%c0_44, %c1_45, %c1_46, %c0_47] : memref<1x10x10x32xf32, #tpu.memory_space<vmem>>, vector<1x8x8x32xf32>
    tpu.vector_store %arg15[%c0_44, %c1_45, %c1_46, %c0_47], %96 {strides = array<i32>} : memref<1x10x10x32xf32, #tpu.memory_space<vmem>>, vector<1x8x8x32xf32>,
    %cst_48 = arith.constant 0.000000e+00 : f32
    %100 = vector.broadcast %cst_48 : f32 to vector<64x64xf32>
    %c0_49 = arith.constant 0 : index
    %c0_50 = arith.constant 0 : index
    %c0_51 = arith.constant 0 : index
    %c0_52 = arith.constant 0 : index
    %101 = vector.load %arg15[%c0_49, %c0_50, %c0_51, %c0_52] : memref<1x10x10x32xf32, #tpu.memory_space<vmem>>, vector<1x10x8x32xf32>
    %102 = vector.extract_strided_slice %101 {offsets = [0, 0, 0, 0], sizes = [1, 8, 8, 32], strides = [1, 1, 1, 1]} : vector<1x10x8x32xf32> to vector<1x8x8x32xf32>
    %103 = vector.shape_cast %102 : vector<1x8x8x32xf32> to vector<64x32xf32>
    %104 = arith.truncf %103 : vector<64x32xf32> to vector<64x32xbf16>
    %c0_53 = arith.constant 0 : index
    %c0_54 = arith.constant 0 : index
    %c0_55 = arith.constant 0 : index
    %105 = vector.load %arg4[%c0_53, %c0_54, %c0_55] : memref<9x32x64xbf16, #tpu.memory_space<vmem>>, vector<1x32x64xbf16>
    %106 = vector.shape_cast %105 : vector<1x32x64xbf16> to vector<32x64xbf16>
    %cst_56 = arith.constant dense<0.000000e+00> : vector<64x64xf32>
    %107 = tpu.matmul %104, %106, %cst_56 {dimension_numbers = #tpu.dot_dimension_numbers<[1], [0], [0], [1], [0, 0, 1, 1], [], []>} : vector<64x32xbf16>, vector<32x64xbf16>, vector<64x64xf32> -> vector<64x64xf32>
    %108 = arith.addf %100, %107 : vector<64x64xf32>
    %109 = vector.extract_strided_slice %101 {offsets = [0, 1, 0, 0], sizes = [1, 8, 8, 32], strides = [1, 1, 1, 1]} : vector<1x10x8x32xf32> to vector<1x8x8x32xf32>
    %110 = vector.shape_cast %109 : vector<1x8x8x32xf32> to vector<64x32xf32>
    %111 = arith.truncf %110 : vector<64x32xf32> to vector<64x32xbf16>
    %c3 = arith.constant 3 : index
    %c0_57 = arith.constant 0 : index
    %c0_58 = arith.constant 0 : index
    %112 = vector.load %arg4[%c3, %c0_57, %c0_58] : memref<9x32x64xbf16, #tpu.memory_space<vmem>>, vector<1x32x64xbf16>
    %113 = vector.shape_cast %112 : vector<1x32x64xbf16> to vector<32x64xbf16>
    %cst_59 = arith.constant dense<0.000000e+00> : vector<64x64xf32>
    %114 = tpu.matmul %111, %113, %cst_59 {dimension_numbers = #tpu.dot_dimension_numbers<[1], [0], [0], [1], [0, 0, 1, 1], [], []>} : vector<64x32xbf16>, vector<32x64xbf16>, vector<64x64xf32> -> vector<64x64xf32>
    %115 = arith.addf %108, %114 : vector<64x64xf32>
    %116 = vector.extract_strided_slice %101 {offsets = [0, 2, 0, 0], sizes = [1, 8, 8, 32], strides = [1, 1, 1, 1]} : vector<1x10x8x32xf32> to vector<1x8x8x32xf32>
    %117 = vector.shape_cast %116 : vector<1x8x8x32xf32> to vector<64x32xf32>
    %118 = arith.truncf %117 : vector<64x32xf32> to vector<64x32xbf16>
    %c6 = arith.constant 6 : index
    %c0_60 = arith.constant 0 : index
    %c0_61 = arith.constant 0 : index
    %119 = vector.load %arg4[%c6, %c0_60, %c0_61] : memref<9x32x64xbf16, #tpu.memory_space<vmem>>, vector<1x32x64xbf16>
    %120 = vector.shape_cast %119 : vector<1x32x64xbf16> to vector<32x64xbf16>
    %cst_62 = arith.constant dense<0.000000e+00> : vector<64x64xf32>
    %121 = tpu.matmul %118, %120, %cst_62 {dimension_numbers = #tpu.dot_dimension_numbers<[1], [0], [0], [1], [0, 0, 1, 1], [], []>} : vector<64x32xbf16>, vector<32x64xbf16>, vector<64x64xf32> -> vector<64x64xf32>
    %122 = arith.addf %115, %121 : vector<64x64xf32>
    %c0_63 = arith.constant 0 : index
    %c0_64 = arith.constant 0 : index
    %c1_65 = arith.constant 1 : index
    %c0_66 = arith.constant 0 : index
    %123 = vector.load %arg15[%c0_63, %c0_64, %c1_65, %c0_66] : memref<1x10x10x32xf32, #tpu.memory_space<vmem>>, vector<1x10x8x32xf32>
    %124 = vector.extract_strided_slice %123 {offsets = [0, 0, 0, 0], sizes = [1, 8, 8, 32], strides = [1, 1, 1, 1]} : vector<1x10x8x32xf32> to vector<1x8x8x32xf32>
    %125 = vector.shape_cast %124 : vector<1x8x8x32xf32> to vector<64x32xf32>
    %126 = arith.truncf %125 : vector<64x32xf32> to vector<64x32xbf16>
    %c1_67 = arith.constant 1 : index
    %c0_68 = arith.constant 0 : index
    %c0_69 = arith.constant 0 : index
    %127 = vector.load %arg4[%c1_67, %c0_68, %c0_69] : memref<9x32x64xbf16, #tpu.memory_space<vmem>>, vector<1x32x64xbf16>
    %128 = vector.shape_cast %127 : vector<1x32x64xbf16> to vector<32x64xbf16>
    %cst_70 = arith.constant dense<0.000000e+00> : vector<64x64xf32>
    %129 = tpu.matmul %126, %128, %cst_70 {dimension_numbers = #tpu.dot_dimension_numbers<[1], [0], [0], [1], [0, 0, 1, 1], [], []>} : vector<64x32xbf16>, vector<32x64xbf16>, vector<64x64xf32> -> vector<64x64xf32>
    %130 = arith.addf %122, %129 : vector<64x64xf32>
    %131 = vector.extract_strided_slice %123 {offsets = [0, 1, 0, 0], sizes = [1, 8, 8, 32], strides = [1, 1, 1, 1]} : vector<1x10x8x32xf32> to vector<1x8x8x32xf32>
    %132 = vector.shape_cast %131 : vector<1x8x8x32xf32> to vector<64x32xf32>
    %133 = arith.truncf %132 : vector<64x32xf32> to vector<64x32xbf16>
    %c4 = arith.constant 4 : index
    %c0_71 = arith.constant 0 : index
    %c0_72 = arith.constant 0 : index
    %134 = vector.load %arg4[%c4, %c0_71, %c0_72] : memref<9x32x64xbf16, #tpu.memory_space<vmem>>, vector<1x32x64xbf16>
    %135 = vector.shape_cast %134 : vector<1x32x64xbf16> to vector<32x64xbf16>
    %cst_73 = arith.constant dense<0.000000e+00> : vector<64x64xf32>
    %136 = tpu.matmul %133, %135, %cst_73 {dimension_numbers = #tpu.dot_dimension_numbers<[1], [0], [0], [1], [0, 0, 1, 1], [], []>} : vector<64x32xbf16>, vector<32x64xbf16>, vector<64x64xf32> -> vector<64x64xf32>
    %137 = arith.addf %130, %136 : vector<64x64xf32>
    %138 = vector.extract_strided_slice %123 {offsets = [0, 2, 0, 0], sizes = [1, 8, 8, 32], strides = [1, 1, 1, 1]} : vector<1x10x8x32xf32> to vector<1x8x8x32xf32>
    %139 = vector.shape_cast %138 : vector<1x8x8x32xf32> to vector<64x32xf32>
    %140 = arith.truncf %139 : vector<64x32xf32> to vector<64x32xbf16>
    %c7 = arith.constant 7 : index
    %c0_74 = arith.constant 0 : index
    %c0_75 = arith.constant 0 : index
    %141 = vector.load %arg4[%c7, %c0_74, %c0_75] : memref<9x32x64xbf16, #tpu.memory_space<vmem>>, vector<1x32x64xbf16>
    %142 = vector.shape_cast %141 : vector<1x32x64xbf16> to vector<32x64xbf16>
    %cst_76 = arith.constant dense<0.000000e+00> : vector<64x64xf32>
    %143 = tpu.matmul %140, %142, %cst_76 {dimension_numbers = #tpu.dot_dimension_numbers<[1], [0], [0], [1], [0, 0, 1, 1], [], []>} : vector<64x32xbf16>, vector<32x64xbf16>, vector<64x64xf32> -> vector<64x64xf32>
    %144 = arith.addf %137, %143 : vector<64x64xf32>
    %c0_77 = arith.constant 0 : index
    %c0_78 = arith.constant 0 : index
    %c2_79 = arith.constant 2 : index
    %c0_80 = arith.constant 0 : index
    %145 = vector.load %arg15[%c0_77, %c0_78, %c2_79, %c0_80] : memref<1x10x10x32xf32, #tpu.memory_space<vmem>>, vector<1x10x8x32xf32>
    %146 = vector.extract_strided_slice %145 {offsets = [0, 0, 0, 0], sizes = [1, 8, 8, 32], strides = [1, 1, 1, 1]} : vector<1x10x8x32xf32> to vector<1x8x8x32xf32>
    %147 = vector.shape_cast %146 : vector<1x8x8x32xf32> to vector<64x32xf32>
    %148 = arith.truncf %147 : vector<64x32xf32> to vector<64x32xbf16>
    %c2_81 = arith.constant 2 : index
    %c0_82 = arith.constant 0 : index
    %c0_83 = arith.constant 0 : index
    %149 = vector.load %arg4[%c2_81, %c0_82, %c0_83] : memref<9x32x64xbf16, #tpu.memory_space<vmem>>, vector<1x32x64xbf16>
    %150 = vector.shape_cast %149 : vector<1x32x64xbf16> to vector<32x64xbf16>
    %cst_84 = arith.constant dense<0.000000e+00> : vector<64x64xf32>
    %151 = tpu.matmul %148, %150, %cst_84 {dimension_numbers = #tpu.dot_dimension_numbers<[1], [0], [0], [1], [0, 0, 1, 1], [], []>} : vector<64x32xbf16>, vector<32x64xbf16>, vector<64x64xf32> -> vector<64x64xf32>
    %152 = arith.addf %144, %151 : vector<64x64xf32>
    %153 = vector.extract_strided_slice %145 {offsets = [0, 1, 0, 0], sizes = [1, 8, 8, 32], strides = [1, 1, 1, 1]} : vector<1x10x8x32xf32> to vector<1x8x8x32xf32>
    %154 = vector.shape_cast %153 : vector<1x8x8x32xf32> to vector<64x32xf32>
    %155 = arith.truncf %154 : vector<64x32xf32> to vector<64x32xbf16>
    %c5 = arith.constant 5 : index
    %c0_85 = arith.constant 0 : index
    %c0_86 = arith.constant 0 : index
    %156 = vector.load %arg4[%c5, %c0_85, %c0_86] : memref<9x32x64xbf16, #tpu.memory_space<vmem>>, vector<1x32x64xbf16>
    %157 = vector.shape_cast %156 : vector<1x32x64xbf16> to vector<32x64xbf16>
    %cst_87 = arith.constant dense<0.000000e+00> : vector<64x64xf32>
    %158 = tpu.matmul %155, %157, %cst_87 {dimension_numbers = #tpu.dot_dimension_numbers<[1], [0], [0], [1], [0, 0, 1, 1], [], []>} : vector<64x32xbf16>, vector<32x64xbf16>, vector<64x64xf32> -> vector<64x64xf32>
    %159 = arith.addf %152, %158 : vector<64x64xf32>
    %160 = vector.extract_strided_slice %145 {offsets = [0, 2, 0, 0], sizes = [1, 8, 8, 32], strides = [1, 1, 1, 1]} : vector<1x10x8x32xf32> to vector<1x8x8x32xf32>
    %161 = vector.shape_cast %160 : vector<1x8x8x32xf32> to vector<64x32xf32>
    %162 = arith.truncf %161 : vector<64x32xf32> to vector<64x32xbf16>
    %c8 = arith.constant 8 : index
    %c0_88 = arith.constant 0 : index
    %c0_89 = arith.constant 0 : index
    %163 = vector.load %arg4[%c8, %c0_88, %c0_89] : memref<9x32x64xbf16, #tpu.memory_space<vmem>>, vector<1x32x64xbf16>
    %164 = vector.shape_cast %163 : vector<1x32x64xbf16> to vector<32x64xbf16>
    %cst_90 = arith.constant dense<0.000000e+00> : vector<64x64xf32>
    %165 = tpu.matmul %162, %164, %cst_90 {dimension_numbers = #tpu.dot_dimension_numbers<[1], [0], [0], [1], [0, 0, 1, 1], [], []>} : vector<64x32xbf16>, vector<32x64xbf16>, vector<64x64xf32> -> vector<64x64xf32>
    %166 = arith.addf %159, %165 : vector<64x64xf32>
    %c0_91 = arith.constant 0 : index
    %c0_92 = arith.constant 0 : index
    %167 = vector.load %arg5[%c0_91, %c0_92] : memref<1x64xf32, #tpu.memory_space<vmem>>, vector<1x64xf32>
    %168 = vector.broadcast %167 : vector<1x64xf32> to vector<64x64xf32>
    %169 = arith.addf %166, %168 : vector<64x64xf32>
    %cst_93 = arith.constant 0.000000e+00 : f32
    %170 = vector.broadcast %cst_93 : f32 to vector<64x64xf32>
    %171 = arith.maximumf %169, %170 : vector<64x64xf32>
    %172 = vector.shape_cast %171 : vector<64x64xf32> to vector<1x8x8x64xf32>
    %173 = vector.shape_cast %172 : vector<1x8x8x64xf32> to vector<1x4x2x8x64xf32>
    %174 = vector.extract_strided_slice %173 {offsets = [0, 0, 0, 0, 0], sizes = [1, 4, 1, 8, 64], strides = [1, 1, 1, 1, 1]} : vector<1x4x2x8x64xf32> to vector<1x4x1x8x64xf32>
    %175 = vector.shape_cast %174 : vector<1x4x1x8x64xf32> to vector<1x4x8x64xf32>
    %176 = vector.extract_strided_slice %173 {offsets = [0, 0, 1, 0, 0], sizes = [1, 4, 1, 8, 64], strides = [1, 1, 1, 1, 1]} : vector<1x4x2x8x64xf32> to vector<1x4x1x8x64xf32>
    %177 = vector.shape_cast %176 : vector<1x4x1x8x64xf32> to vector<1x4x8x64xf32>
    %178 = arith.maximumf %175, %177 : vector<1x4x8x64xf32>
    %c0_94 = arith.constant 0 : index
    %c0_95 = arith.constant 0 : index
    %c0_96 = arith.constant 0 : index
    %c0_97 = arith.constant 0 : index
    %179 = vector.load %arg16[%c0_94, %c0_95, %c0_96, %c0_97] : memref<1x4x8x64xf32, #tpu.memory_space<vmem>>, vector<1x4x8x64xf32>
    tpu.vector_store %arg16[%c0_94, %c0_95, %c0_96, %c0_97], %178 {strides = array<i32>} : memref<1x4x8x64xf32, #tpu.memory_space<vmem>>, vector<1x4x8x64xf32>,
    %c0_98 = arith.constant 0 : index
    %c0_99 = arith.constant 0 : index
    %c0_100 = arith.constant 0 : index
    %c0_101 = arith.constant 0 : index
    %180 = tpu.strided_load %arg16[%c0_98, %c0_99, %c0_100, %c0_101] {strides = array<i32: 1, 1, 2, 1>} : memref<1x4x8x64xf32, #tpu.memory_space<vmem>>, vector<1x4x4x64xf32>
    %c0_102 = arith.constant 0 : index
    %c0_103 = arith.constant 0 : index
    %c1_104 = arith.constant 1 : index
    %c0_105 = arith.constant 0 : index
    %181 = tpu.strided_load %arg16[%c0_102, %c0_103, %c1_104, %c0_105] {strides = array<i32: 1, 1, 2, 1>} : memref<1x4x8x64xf32, #tpu.memory_space<vmem>>, vector<1x4x4x64xf32>
    %182 = arith.maximumf %180, %181 : vector<1x4x4x64xf32>
    %cst_106 = arith.constant 0.000000e+00 : f32
    %183 = vector.broadcast %cst_106 : f32 to vector<1x6x6x64xf32>
    %c0_107 = arith.constant 0 : index
    %c0_108 = arith.constant 0 : index
    %c0_109 = arith.constant 0 : index
    %c0_110 = arith.constant 0 : index
    %184 = vector.load %arg17[%c0_107, %c0_108, %c0_109, %c0_110] : memref<1x6x6x64xf32, #tpu.memory_space<vmem>>, vector<1x6x6x64xf32>
    tpu.vector_store %arg17[%c0_107, %c0_108, %c0_109, %c0_110], %183 {strides = array<i32>} : memref<1x6x6x64xf32, #tpu.memory_space<vmem>>, vector<1x6x6x64xf32>,
    %c0_111 = arith.constant 0 : index
    %c1_112 = arith.constant 1 : index
    %c1_113 = arith.constant 1 : index
    %c0_114 = arith.constant 0 : index
    %185 = vector.load %arg17[%c0_111, %c1_112, %c1_113, %c0_114] : memref<1x6x6x64xf32, #tpu.memory_space<vmem>>, vector<1x4x4x64xf32>
    tpu.vector_store %arg17[%c0_111, %c1_112, %c1_113, %c0_114], %182 {strides = array<i32>} : memref<1x6x6x64xf32, #tpu.memory_space<vmem>>, vector<1x4x4x64xf32>,
    %cst_115 = arith.constant 0.000000e+00 : f32
    %186 = vector.broadcast %cst_115 : f32 to vector<16x128xf32>
    %c0_116 = arith.constant 0 : index
    %c0_117 = arith.constant 0 : index
    %c0_118 = arith.constant 0 : index
    %c0_119 = arith.constant 0 : index
    %187 = vector.load %arg17[%c0_116, %c0_117, %c0_118, %c0_119] : memref<1x6x6x64xf32, #tpu.memory_space<vmem>>, vector<1x6x4x64xf32>
    %188 = vector.extract_strided_slice %187 {offsets = [0, 0, 0, 0], sizes = [1, 4, 4, 64], strides = [1, 1, 1, 1]} : vector<1x6x4x64xf32> to vector<1x4x4x64xf32>
    %189 = vector.shape_cast %188 : vector<1x4x4x64xf32> to vector<16x64xf32>
    %190 = arith.truncf %189 : vector<16x64xf32> to vector<16x64xbf16>
    %c0_120 = arith.constant 0 : index
    %c0_121 = arith.constant 0 : index
    %c0_122 = arith.constant 0 : index
    %191 = vector.load %arg6[%c0_120, %c0_121, %c0_122] : memref<9x64x128xbf16, #tpu.memory_space<vmem>>, vector<1x64x128xbf16>
    %192 = vector.shape_cast %191 : vector<1x64x128xbf16> to vector<64x128xbf16>
    %cst_123 = arith.constant dense<0.000000e+00> : vector<16x128xf32>
    %193 = tpu.matmul %190, %192, %cst_123 {dimension_numbers = #tpu.dot_dimension_numbers<[1], [0], [0], [1], [0, 0, 1, 1], [], []>} : vector<16x64xbf16>, vector<64x128xbf16>, vector<16x128xf32> -> vector<16x128xf32>
    %194 = arith.addf %186, %193 : vector<16x128xf32>
    %195 = vector.extract_strided_slice %187 {offsets = [0, 1, 0, 0], sizes = [1, 4, 4, 64], strides = [1, 1, 1, 1]} : vector<1x6x4x64xf32> to vector<1x4x4x64xf32>
    %196 = vector.shape_cast %195 : vector<1x4x4x64xf32> to vector<16x64xf32>
    %197 = arith.truncf %196 : vector<16x64xf32> to vector<16x64xbf16>
    %c3_124 = arith.constant 3 : index
    %c0_125 = arith.constant 0 : index
    %c0_126 = arith.constant 0 : index
    %198 = vector.load %arg6[%c3_124, %c0_125, %c0_126] : memref<9x64x128xbf16, #tpu.memory_space<vmem>>, vector<1x64x128xbf16>
    %199 = vector.shape_cast %198 : vector<1x64x128xbf16> to vector<64x128xbf16>
    %cst_127 = arith.constant dense<0.000000e+00> : vector<16x128xf32>
    %200 = tpu.matmul %197, %199, %cst_127 {dimension_numbers = #tpu.dot_dimension_numbers<[1], [0], [0], [1], [0, 0, 1, 1], [], []>} : vector<16x64xbf16>, vector<64x128xbf16>, vector<16x128xf32> -> vector<16x128xf32>
    %201 = arith.addf %194, %200 : vector<16x128xf32>
    %202 = vector.extract_strided_slice %187 {offsets = [0, 2, 0, 0], sizes = [1, 4, 4, 64], strides = [1, 1, 1, 1]} : vector<1x6x4x64xf32> to vector<1x4x4x64xf32>
    %203 = vector.shape_cast %202 : vector<1x4x4x64xf32> to vector<16x64xf32>
    %204 = arith.truncf %203 : vector<16x64xf32> to vector<16x64xbf16>
    %c6_128 = arith.constant 6 : index
    %c0_129 = arith.constant 0 : index
    %c0_130 = arith.constant 0 : index
    %205 = vector.load %arg6[%c6_128, %c0_129, %c0_130] : memref<9x64x128xbf16, #tpu.memory_space<vmem>>, vector<1x64x128xbf16>
    %206 = vector.shape_cast %205 : vector<1x64x128xbf16> to vector<64x128xbf16>
    %cst_131 = arith.constant dense<0.000000e+00> : vector<16x128xf32>
    %207 = tpu.matmul %204, %206, %cst_131 {dimension_numbers = #tpu.dot_dimension_numbers<[1], [0], [0], [1], [0, 0, 1, 1], [], []>} : vector<16x64xbf16>, vector<64x128xbf16>, vector<16x128xf32> -> vector<16x128xf32>
    %208 = arith.addf %201, %207 : vector<16x128xf32>
    %c0_132 = arith.constant 0 : index
    %c0_133 = arith.constant 0 : index
    %c1_134 = arith.constant 1 : index
    %c0_135 = arith.constant 0 : index
    %209 = vector.load %arg17[%c0_132, %c0_133, %c1_134, %c0_135] : memref<1x6x6x64xf32, #tpu.memory_space<vmem>>, vector<1x6x4x64xf32>
    %210 = vector.extract_strided_slice %209 {offsets = [0, 0, 0, 0], sizes = [1, 4, 4, 64], strides = [1, 1, 1, 1]} : vector<1x6x4x64xf32> to vector<1x4x4x64xf32>
    %211 = vector.shape_cast %210 : vector<1x4x4x64xf32> to vector<16x64xf32>
    %212 = arith.truncf %211 : vector<16x64xf32> to vector<16x64xbf16>
    %c1_136 = arith.constant 1 : index
    %c0_137 = arith.constant 0 : index
    %c0_138 = arith.constant 0 : index
    %213 = vector.load %arg6[%c1_136, %c0_137, %c0_138] : memref<9x64x128xbf16, #tpu.memory_space<vmem>>, vector<1x64x128xbf16>
    %214 = vector.shape_cast %213 : vector<1x64x128xbf16> to vector<64x128xbf16>
    %cst_139 = arith.constant dense<0.000000e+00> : vector<16x128xf32>
    %215 = tpu.matmul %212, %214, %cst_139 {dimension_numbers = #tpu.dot_dimension_numbers<[1], [0], [0], [1], [0, 0, 1, 1], [], []>} : vector<16x64xbf16>, vector<64x128xbf16>, vector<16x128xf32> -> vector<16x128xf32>
    %216 = arith.addf %208, %215 : vector<16x128xf32>
    %217 = vector.extract_strided_slice %209 {offsets = [0, 1, 0, 0], sizes = [1, 4, 4, 64], strides = [1, 1, 1, 1]} : vector<1x6x4x64xf32> to vector<1x4x4x64xf32>
    %218 = vector.shape_cast %217 : vector<1x4x4x64xf32> to vector<16x64xf32>
    %219 = arith.truncf %218 : vector<16x64xf32> to vector<16x64xbf16>
    %c4_140 = arith.constant 4 : index
    %c0_141 = arith.constant 0 : index
    %c0_142 = arith.constant 0 : index
    %220 = vector.load %arg6[%c4_140, %c0_141, %c0_142] : memref<9x64x128xbf16, #tpu.memory_space<vmem>>, vector<1x64x128xbf16>
    %221 = vector.shape_cast %220 : vector<1x64x128xbf16> to vector<64x128xbf16>
    %cst_143 = arith.constant dense<0.000000e+00> : vector<16x128xf32>
    %222 = tpu.matmul %219, %221, %cst_143 {dimension_numbers = #tpu.dot_dimension_numbers<[1], [0], [0], [1], [0, 0, 1, 1], [], []>} : vector<16x64xbf16>, vector<64x128xbf16>, vector<16x128xf32> -> vector<16x128xf32>
    %223 = arith.addf %216, %222 : vector<16x128xf32>
    %224 = vector.extract_strided_slice %209 {offsets = [0, 2, 0, 0], sizes = [1, 4, 4, 64], strides = [1, 1, 1, 1]} : vector<1x6x4x64xf32> to vector<1x4x4x64xf32>
    %225 = vector.shape_cast %224 : vector<1x4x4x64xf32> to vector<16x64xf32>
    %226 = arith.truncf %225 : vector<16x64xf32> to vector<16x64xbf16>
    %c7_144 = arith.constant 7 : index
    %c0_145 = arith.constant 0 : index
    %c0_146 = arith.constant 0 : index
    %227 = vector.load %arg6[%c7_144, %c0_145, %c0_146] : memref<9x64x128xbf16, #tpu.memory_space<vmem>>, vector<1x64x128xbf16>
    %228 = vector.shape_cast %227 : vector<1x64x128xbf16> to vector<64x128xbf16>
    %cst_147 = arith.constant dense<0.000000e+00> : vector<16x128xf32>
    %229 = tpu.matmul %226, %228, %cst_147 {dimension_numbers = #tpu.dot_dimension_numbers<[1], [0], [0], [1], [0, 0, 1, 1], [], []>} : vector<16x64xbf16>, vector<64x128xbf16>, vector<16x128xf32> -> vector<16x128xf32>
    %230 = arith.addf %223, %229 : vector<16x128xf32>
    %c0_148 = arith.constant 0 : index
    %c0_149 = arith.constant 0 : index
    %c2_150 = arith.constant 2 : index
    %c0_151 = arith.constant 0 : index
    %231 = vector.load %arg17[%c0_148, %c0_149, %c2_150, %c0_151] : memref<1x6x6x64xf32, #tpu.memory_space<vmem>>, vector<1x6x4x64xf32>
    %232 = vector.extract_strided_slice %231 {offsets = [0, 0, 0, 0], sizes = [1, 4, 4, 64], strides = [1, 1, 1, 1]} : vector<1x6x4x64xf32> to vector<1x4x4x64xf32>
    %233 = vector.shape_cast %232 : vector<1x4x4x64xf32> to vector<16x64xf32>
    %234 = arith.truncf %233 : vector<16x64xf32> to vector<16x64xbf16>
    %c2_152 = arith.constant 2 : index
    %c0_153 = arith.constant 0 : index
    %c0_154 = arith.constant 0 : index
    %235 = vector.load %arg6[%c2_152, %c0_153, %c0_154] : memref<9x64x128xbf16, #tpu.memory_space<vmem>>, vector<1x64x128xbf16>
    %236 = vector.shape_cast %235 : vector<1x64x128xbf16> to vector<64x128xbf16>
    %cst_155 = arith.constant dense<0.000000e+00> : vector<16x128xf32>
    %237 = tpu.matmul %234, %236, %cst_155 {dimension_numbers = #tpu.dot_dimension_numbers<[1], [0], [0], [1], [0, 0, 1, 1], [], []>} : vector<16x64xbf16>, vector<64x128xbf16>, vector<16x128xf32> -> vector<16x128xf32>
    %238 = arith.addf %230, %237 : vector<16x128xf32>
    %239 = vector.extract_strided_slice %231 {offsets = [0, 1, 0, 0], sizes = [1, 4, 4, 64], strides = [1, 1, 1, 1]} : vector<1x6x4x64xf32> to vector<1x4x4x64xf32>
    %240 = vector.shape_cast %239 : vector<1x4x4x64xf32> to vector<16x64xf32>
    %241 = arith.truncf %240 : vector<16x64xf32> to vector<16x64xbf16>
    %c5_156 = arith.constant 5 : index
    %c0_157 = arith.constant 0 : index
    %c0_158 = arith.constant 0 : index
    %242 = vector.load %arg6[%c5_156, %c0_157, %c0_158] : memref<9x64x128xbf16, #tpu.memory_space<vmem>>, vector<1x64x128xbf16>
    %243 = vector.shape_cast %242 : vector<1x64x128xbf16> to vector<64x128xbf16>
    %cst_159 = arith.constant dense<0.000000e+00> : vector<16x128xf32>
    %244 = tpu.matmul %241, %243, %cst_159 {dimension_numbers = #tpu.dot_dimension_numbers<[1], [0], [0], [1], [0, 0, 1, 1], [], []>} : vector<16x64xbf16>, vector<64x128xbf16>, vector<16x128xf32> -> vector<16x128xf32>
    %245 = arith.addf %238, %244 : vector<16x128xf32>
    %246 = vector.extract_strided_slice %231 {offsets = [0, 2, 0, 0], sizes = [1, 4, 4, 64], strides = [1, 1, 1, 1]} : vector<1x6x4x64xf32> to vector<1x4x4x64xf32>
    %247 = vector.shape_cast %246 : vector<1x4x4x64xf32> to vector<16x64xf32>
    %248 = arith.truncf %247 : vector<16x64xf32> to vector<16x64xbf16>
    %c8_160 = arith.constant 8 : index
    %c0_161 = arith.constant 0 : index
    %c0_162 = arith.constant 0 : index
    %249 = vector.load %arg6[%c8_160, %c0_161, %c0_162] : memref<9x64x128xbf16, #tpu.memory_space<vmem>>, vector<1x64x128xbf16>
    %250 = vector.shape_cast %249 : vector<1x64x128xbf16> to vector<64x128xbf16>
    %cst_163 = arith.constant dense<0.000000e+00> : vector<16x128xf32>
    %251 = tpu.matmul %248, %250, %cst_163 {dimension_numbers = #tpu.dot_dimension_numbers<[1], [0], [0], [1], [0, 0, 1, 1], [], []>} : vector<16x64xbf16>, vector<64x128xbf16>, vector<16x128xf32> -> vector<16x128xf32>
    %252 = arith.addf %245, %251 : vector<16x128xf32>
    %c0_164 = arith.constant 0 : index
    %c0_165 = arith.constant 0 : index
    %253 = vector.load %arg7[%c0_164, %c0_165] : memref<1x128xf32, #tpu.memory_space<vmem>>, vector<1x128xf32>
    %254 = vector.broadcast %253 : vector<1x128xf32> to vector<16x128xf32>
    %255 = arith.addf %252, %254 : vector<16x128xf32>
    %cst_166 = arith.constant 0.000000e+00 : f32
    %256 = vector.broadcast %cst_166 : f32 to vector<16x128xf32>
    %257 = arith.maximumf %255, %256 : vector<16x128xf32>
    %258 = vector.shape_cast %257 : vector<16x128xf32> to vector<1x4x4x128xf32>
    %259 = vector.shape_cast %258 : vector<1x4x4x128xf32> to vector<1x2x2x4x128xf32>
    %260 = vector.extract_strided_slice %259 {offsets = [0, 0, 0, 0, 0], sizes = [1, 2, 1, 4, 128], strides = [1, 1, 1, 1, 1]} : vector<1x2x2x4x128xf32> to vector<1x2x1x4x128xf32>
    %261 = vector.shape_cast %260 : vector<1x2x1x4x128xf32> to vector<1x2x4x128xf32>
    %262 = vector.extract_strided_slice %259 {offsets = [0, 0, 1, 0, 0], sizes = [1, 2, 1, 4, 128], strides = [1, 1, 1, 1, 1]} : vector<1x2x2x4x128xf32> to vector<1x2x1x4x128xf32>
    %263 = vector.shape_cast %262 : vector<1x2x1x4x128xf32> to vector<1x2x4x128xf32>
    %264 = arith.maximumf %261, %263 : vector<1x2x4x128xf32>
    %c0_167 = arith.constant 0 : index
    %c0_168 = arith.constant 0 : index
    %c0_169 = arith.constant 0 : index
    %c0_170 = arith.constant 0 : index
    %265 = vector.load %arg18[%c0_167, %c0_168, %c0_169, %c0_170] : memref<1x2x4x128xf32, #tpu.memory_space<vmem>>, vector<1x2x4x128xf32>
    tpu.vector_store %arg18[%c0_167, %c0_168, %c0_169, %c0_170], %264 {strides = array<i32>} : memref<1x2x4x128xf32, #tpu.memory_space<vmem>>, vector<1x2x4x128xf32>,
    %c0_171 = arith.constant 0 : index
    %c0_172 = arith.constant 0 : index
    %c0_173 = arith.constant 0 : index
    %c0_174 = arith.constant 0 : index
    %266 = tpu.strided_load %arg18[%c0_171, %c0_172, %c0_173, %c0_174] {strides = array<i32: 1, 1, 2, 1>} : memref<1x2x4x128xf32, #tpu.memory_space<vmem>>, vector<1x2x2x128xf32>
    %c0_175 = arith.constant 0 : index
    %c0_176 = arith.constant 0 : index
    %c1_177 = arith.constant 1 : index
    %c0_178 = arith.constant 0 : index
    %267 = tpu.strided_load %arg18[%c0_175, %c0_176, %c1_177, %c0_178] {strides = array<i32: 1, 1, 2, 1>} : memref<1x2x4x128xf32, #tpu.memory_space<vmem>>, vector<1x2x2x128xf32>
    %268 = arith.maximumf %266, %267 : vector<1x2x2x128xf32>
    %269 = vector.extract_strided_slice %268 {offsets = [0, 0, 0, 0], sizes = [1, 1, 2, 128], strides = [1, 1, 1, 1]} : vector<1x2x2x128xf32> to vector<1x1x2x128xf32>
    %270 = vector.shape_cast %269 : vector<1x1x2x128xf32> to vector<1x2x128xf32>
    %271 = vector.extract_strided_slice %268 {offsets = [0, 1, 0, 0], sizes = [1, 1, 2, 128], strides = [1, 1, 1, 1]} : vector<1x2x2x128xf32> to vector<1x1x2x128xf32>
    %272 = vector.shape_cast %271 : vector<1x1x2x128xf32> to vector<1x2x128xf32>
    %273 = arith.addf %270, %272 : vector<1x2x128xf32>
    %274 = vector.extract_strided_slice %273 {offsets = [0, 0, 0], sizes = [1, 1, 128], strides = [1, 1, 1]} : vector<1x2x128xf32> to vector<1x1x128xf32>
    %275 = vector.shape_cast %274 : vector<1x1x128xf32> to vector<1x128xf32>
    %276 = vector.extract_strided_slice %273 {offsets = [0, 1, 0], sizes = [1, 1, 128], strides = [1, 1, 1]} : vector<1x2x128xf32> to vector<1x1x128xf32>
    %277 = vector.shape_cast %276 : vector<1x1x128xf32> to vector<1x128xf32>
    %278 = arith.addf %275, %277 : vector<1x128xf32>
    %cst_179 = arith.constant 2.500000e-01 : f32
    %279 = vector.broadcast %cst_179 : f32 to vector<1x128xf32>
    %280 = arith.mulf %278, %279 : vector<1x128xf32>
    %281 = arith.truncf %280 : vector<1x128xf32> to vector<1x128xbf16>
    %c0_180 = arith.constant 0 : index
    %c0_181 = arith.constant 0 : index
    %282 = vector.load %arg8[%c0_180, %c0_181] : memref<128x256xbf16, #tpu.memory_space<vmem>>, vector<128x256xbf16>
    %cst_182 = arith.constant dense<0.000000e+00> : vector<1x256xf32>
    %283 = tpu.matmul %281, %282, %cst_182 {dimension_numbers = #tpu.dot_dimension_numbers<[1], [0], [0], [1], [0, 0, 1, 1], [], []>} : vector<1x128xbf16>, vector<128x256xbf16>, vector<1x256xf32> -> vector<1x256xf32>
    %c0_183 = arith.constant 0 : index
    %c0_184 = arith.constant 0 : index
    %284 = vector.load %arg9[%c0_183, %c0_184] : memref<1x256xf32, #tpu.memory_space<vmem>>, vector<1x256xf32>
    %285 = arith.addf %283, %284 : vector<1x256xf32>
    %cst_185 = arith.constant 0.000000e+00 : f32
    %286 = vector.broadcast %cst_185 : f32 to vector<1x256xf32>
    %287 = arith.maximumf %285, %286 : vector<1x256xf32>
    %288 = arith.truncf %287 : vector<1x256xf32> to vector<1x256xbf16>
    %c0_186 = arith.constant 0 : index
    %c0_187 = arith.constant 0 : index
    %289 = vector.load %arg10[%c0_186, %c0_187] : memref<256x128xbf16, #tpu.memory_space<vmem>>, vector<256x128xbf16>
    %cst_188 = arith.constant dense<0.000000e+00> : vector<1x128xf32>
    %290 = tpu.matmul %288, %289, %cst_188 {dimension_numbers = #tpu.dot_dimension_numbers<[1], [0], [0], [1], [0, 0, 1, 1], [], []>} : vector<1x256xbf16>, vector<256x128xbf16>, vector<1x128xf32> -> vector<1x128xf32>
    %c0_189 = arith.constant 0 : index
    %c0_190 = arith.constant 0 : index
    %291 = vector.load %arg11[%c0_189, %c0_190] : memref<1x128xf32, #tpu.memory_space<vmem>>, vector<1x128xf32>
    %292 = arith.addf %290, %291 : vector<1x128xf32>
    %293 = vector.shape_cast %292 : vector<1x128xf32> to vector<1x1x128xf32>
    %c0_191 = arith.constant 0 : index
    %c0_192 = arith.constant 0 : index
    %c0_193 = arith.constant 0 : index
    %294 = vector.load %arg12[%c0_191, %c0_192, %c0_193] : memref<1x1x128xf32, #tpu.memory_space<vmem>>, vector<1x1x128xf32>
    tpu.vector_store %arg12[%c0_191, %c0_192, %c0_193], %293 {strides = array<i32>} : memref<1x1x128xf32, #tpu.memory_space<vmem>>, vector<1x1x128xf32>,
    return
  }
  func.func @transform_0(%arg0: i32) -> (i32, i32, i32, i32) {
    %c0_i32 = arith.constant 0 : i32
    %c0_i32_0 = arith.constant 0 : i32
    %c0_i32_1 = arith.constant 0 : i32
    %c0_i32_2 = arith.constant 0 : i32
    return %arg0, %c0_i32, %c0_i32_0, %c0_i32_1 : i32, i32, i32, i32
  }
  func.func @transform_1(%arg0: i32) -> (i32, i32) {
    %c0_i32 = arith.constant 0 : i32
    %c0_i32_0 = arith.constant 0 : i32
    %c0_i32_1 = arith.constant 0 : i32
    return %c0_i32, %c0_i32_0 : i32, i32
  }
  func.func @transform_2(%arg0: i32) -> (i32, i32) {
    %c0_i32 = arith.constant 0 : i32
    %c0_i32_0 = arith.constant 0 : i32
    %c0_i32_1 = arith.constant 0 : i32
    return %c0_i32, %c0_i32_0 : i32, i32
  }
  func.func @transform_3(%arg0: i32) -> (i32, i32, i32) {
    %c0_i32 = arith.constant 0 : i32
    %c0_i32_0 = arith.constant 0 : i32
    %c0_i32_1 = arith.constant 0 : i32
    %c0_i32_2 = arith.constant 0 : i32
    return %c0_i32, %c0_i32_0, %c0_i32_1 : i32, i32, i32
  }
  func.func @transform_4(%arg0: i32) -> (i32, i32) {
    %c0_i32 = arith.constant 0 : i32
    %c0_i32_0 = arith.constant 0 : i32
    %c0_i32_1 = arith.constant 0 : i32
    return %c0_i32, %c0_i32_0 : i32, i32
  }
  func.func @transform_5(%arg0: i32) -> (i32, i32, i32) {
    %c0_i32 = arith.constant 0 : i32
    %c0_i32_0 = arith.constant 0 : i32
    %c0_i32_1 = arith.constant 0 : i32
    %c0_i32_2 = arith.constant 0 : i32
    return %c0_i32, %c0_i32_0, %c0_i32_1 : i32, i32, i32
  }
  func.func @transform_6(%arg0: i32) -> (i32, i32) {
    %c0_i32 = arith.constant 0 : i32
    %c0_i32_0 = arith.constant 0 : i32
    %c0_i32_1 = arith.constant 0 : i32
    return %c0_i32, %c0_i32_0 : i32, i32
  }
  func.func @transform_7(%arg0: i32) -> (i32, i32) {
    %c0_i32 = arith.constant 0 : i32
    %c0_i32_0 = arith.constant 0 : i32
    %c0_i32_1 = arith.constant 0 : i32
    return %c0_i32, %c0_i32_0 : i32, i32
  }
  func.func @transform_8(%arg0: i32) -> (i32, i32) {
    %c0_i32 = arith.constant 0 : i32
    %c0_i32_0 = arith.constant 0 : i32
    %c0_i32_1 = arith.constant 0 : i32
    return %c0_i32, %c0_i32_0 : i32, i32
  }
  func.func @transform_9(%arg0: i32) -> (i32, i32) {
    %c0_i32 = arith.constant 0 : i32
    %c0_i32_0 = arith.constant 0 : i32
    %c0_i32_1 = arith.constant 0 : i32
    return %c0_i32, %c0_i32_0 : i32, i32
  }
  func.func @transform_10(%arg0: i32) -> (i32, i32) {
    %c0_i32 = arith.constant 0 : i32
    %c0_i32_0 = arith.constant 0 : i32
    %c0_i32_1 = arith.constant 0 : i32
    return %c0_i32, %c0_i32_0 : i32, i32
  }
  func.func @transform_11(%arg0: i32) -> (i32, i32, i32) {
    %c0_i32 = arith.constant 0 : i32
    %c0_i32_0 = arith.constant 0 : i32
    %c0_i32_1 = arith.constant 0 : i32
    return %arg0, %c0_i32, %c0_i32_0 : i32, i32, i32
  }
}

</mosaic_0001>

<bundles_post_ra>
// kernel: simple_cnn_forward.1
= control target key start
LH: loop header
LB: loop body
LE: loop exit
PB: predicated region body
PF: predicated region fallthrough
CT: control target
= control target key end

     0   :  { %s6468_s0 = inlined_call_operand.vmem [shape: f32[2,16,16,1], index: 0, kind: input, shape index: {}]   ;;  %s6469_s1 = inlined_call_operand.vmem [shape: f32[9,32], index: 1, kind: input, shape index: {}]   ;;  %s6470_s2 = inlined_call_operand.vmem [shape: f32[1,32], index: 2, kind: input, shape index: {}]   ;;  %s6471_s3 = inlined_call_operand.vmem [shape: bf16[9,32,64], index: 3, kind: input, shape index: {}]   ;;  %s6472_s4 = inlined_call_operand.vmem [shape: f32[1,64], index: 4, kind: input, shape index: {}]   ;;  %s6473_s5 = inlined_call_operand.vmem [shape: bf16[9,64,128], index: 5, kind: input, shape index: {}]   ;;  %s6474_s6 = inlined_call_operand.vmem [shape: f32[1,128], index: 6, kind: input, shape index: {}]   ;;  %s6475_s7 = inlined_call_operand.vmem [shape: bf16[128,256], index: 7, kind: input, shape index: {}]   ;;  %s6476_s8 = inlined_call_operand.vmem [shape: f32[1,256], index: 8, kind: input, shape index: {}]   ;;  %s6477_s9 = inlined_call_operand.vmem [shape: bf16[256,128], index: 9, kind: input, shape index: {}]   ;;  %s6478_s10 = inlined_call_operand.vmem [shape: f32[1,128], index: 10, kind: input, shape index: {}]   ;;  %s6479_s11 = inlined_call_operand.hbm [shape: f32[2,1,128], index: 11, kind: output, shape index: {}]  }
   0x1   :  { %6482 = sst [smem:[#allocation11_spill]] %s6468_s0 }
   0x2   :  { %16 = vsyncpa [#allocation9], 0 }
   0x3   :  { %18 = vsyncpa [#allocation9 + $0x1], 0  ;;  %s5068_s17 = smov 0   ;;  %s5070_s18 = smov 0  }
   0x4   :  { %s5072_s19 = smov 0   ;;  %s5074_s20 = smov 0  }
   0x5 LB: > { %s5089_s21 = sadd.s32 4294967295, %s5002_s20   ;;  %s4145_s22 = sadd.s32 4294967294, %s5002_s20   ;;  %s5002_s20 = sphi %s5074_s20, %s6491_s20   ;;  %s4998_s19 = sphi %s5072_s19, %s6490_s19   ;;  %s4994_s18 = sphi %s5070_s18, %s6489_s18   ;;  %s4990_s17 = sphi %s5068_s17, %s6488_s17  }
   0x6   : > { %s5093_s23 = sadd.s32 1, %s5002_s20   ;;  %s267_s24 = sadd.s32 1, %s4998_s19 }
   0x7   : > { %s264_s25 = ssub.s32 %s5002_s20, %s5093_s23  ;;  %p277_p0 = scmp.ne.s32.totalorder %s4998_s19, %s4994_s18 }
   0x8   : > { %p265_p1 = scmp.eq.s32.totalorder %s264_s25, 0  ;;  %p278_p2 = scmp.eq.s32.totalorder %s5089_s21, 1 }
   0x9   : > { %p283_p3 = scmp.ne.s32.totalorder %s4994_s18, %s4990_s17  ;;  %p284_p4 = scmp.eq.s32.totalorder %s4145_s22, 1 }
   0xa   : > { %s5104_s26 = scalar_select %p265_p1, %s4998_s19, %s267_s24  }
   0xb   : > { %p5106_p5 = por %p278_p2, %p277_p0  ;;  %p5110_p6 = por %p284_p4, %p283_p3 }
   0xc   : > { %p4148_p7 = scmp.ge.s32.totalorder %s5002_s20, 1  ;;  %p340_p8 = scmp.lt.s32.totalorder %s5002_s20, 3 }
   0xe   : > { %p341_p9 = pnand %p4148_p7, %p340_p8 }
   0xf   : > { %vm417_vm0 = vcmask (!%p341_p9), 7168   ;;  %p379_p10 = scmp.lt.s32.totalorder (!%p341_p9), %s5089_s21, 1  ;;  %vm420_vm1 = vcmask (!%p341_p9), 1024   ;;  %v5004_v0 = vmov (!%p341_p9), 0   ;;  %v5005_v1 = vmov (!%p341_p9), 0.0   ;;  %s6485_s0 = sld [smem:[#allocation11_spill]] (!%p341_p9) }
  0x10   : > { %344 = sbr.rel (%p341_p9) target bundleno = 1616 (0x650), region = 64  ;;  %4829 = vset.pattern.permute.xlu0 (!%p341_p9), %v5004_v0  ;;  %418 = vst.msk [vmem:[#allocation2] sm:$0xff] (!%p341_p9), %vm417_vm0, %v5005_v1  ;;  %419 = vst.msk [vmem:[#allocation2 + $0x8] sm:$0xff] (!%p341_p9), %vm417_vm0, %v5005_v1  ;;  %4830 = vset.pattern.permute.xlu1 (!%p341_p9), %v5004_v0  ;;  %vm1855_vm2 = vcmask (!%p341_p9), 261120   ;;  %vm1912_vm3 = vcmask (!%p341_p9), 254976   ;;  %vm2923_vm4 = vcmask (!%p341_p9), 521216  }
  0x11   : > { %422 = vst.msk [vmem:[#allocation2 + $0x18] sm:$0xff] (!%p341_p9), %vm417_vm0, %v5005_v1  ;;  %423 = vst.msk [vmem:[#allocation2 + $0x20] sm:$0xff] (!%p341_p9), %vm417_vm0, %v5005_v1  ;;  %4615 = vmatprep.subr.bf16.mxu1 (!%p341_p9), %v5005_v1  ;;  %vm5006_vm5 = vmmov (!%p341_p9), 0   ;;  %vm2899_vm6 = vcmask (!%p341_p9), 523264   ;;  %vm2931_vm7 = vcmask (!%p341_p9), 519168   ;;  %s377_s25 = sand.u32 (!%p341_p9), 1, %s4994_s18  }
  0x12   : > { %425 = vst.msk [vmem:[#allocation2 + $0x30] sm:$0xff] (!%p341_p9), %vm417_vm0, %v5005_v1  ;;  %426 = vst.msk [vmem:[#allocation2 + $0x38] sm:$0xff] (!%p341_p9), %vm417_vm0, %v5005_v1  ;;  %4623 = vmatprep.mubr.msk.bf16.mxu1 (!%p341_p9), %vm5006_vm5, %v5005_v1  ;;  %s4382_s12 = sshll.u32 (!%p341_p9), %s5089_s21, 4  ;;  %s378_s13 = scalar_lea.vmem (!%p341_p9), [#allocation8], %s377_s25 }
  0x13   : > { %428 = vst.msk [vmem:[#allocation2 + $0x48] sm:$0xff] (!%p341_p9), %vm417_vm0, %v5005_v1  ;;  %429 = vst.msk [vmem:[#allocation2 + $0x50] sm:$0xff] (!%p341_p9), %vm417_vm0, %v5005_v1  ;;  %s6426_s22 = scalar_lea.hbm (!%p341_p9), %s6479_s11, %s4382_s12  ;;  %s4078_s24 = scalar_lea.sflag (!%p341_p9), [#allocation9], %s377_s25 }
  0x14   : > { %431 = vst.msk [vmem:[#allocation2 + $0x60] sm:$0xff] (!%p341_p9), %vm417_vm0, %v5005_v1  ;;  %432 = vst.msk [vmem:[#allocation2 + $0x68] sm:$0xff] (!%p341_p9), %vm417_vm0, %v5005_v1 }
  0x15   : > { %434 = vst.msk [vmem:[#allocation2 + $0x78] sm:$0xff] (!%p341_p9), %vm417_vm0, %v5005_v1  ;;  %435 = vst.msk [vmem:[#allocation2 + $0x80] sm:$0xff] (!%p341_p9), %vm417_vm0, %v5005_v1 }
  0x16   : > { %437 = vst.msk [vmem:[#allocation2 + $0x90] sm:$0xff] (!%p341_p9), %vm417_vm0, %v5005_v1  ;;  %438 = vst.msk [vmem:[#allocation2 + $0x98] sm:$0xff] (!%p341_p9), %vm417_vm0, %v5005_v1 }
  0x17   : > { %440 = vst.msk [vmem:[#allocation2 + $0xa8] sm:$0xff] %vm417_vm0, %v5005_v1  ;;  %441 = vst.msk [vmem:[#allocation2 + $0xb0] sm:$0xff] %vm417_vm0, %v5005_v1  ;;  %s380_s29 = scalar_select %p379_p10, %s5089_s21, 1  ;;  %v508_v8 = vld [vmem:[#allocation2] sm:$0xff]  ;;  %v509_v9 = vld [vmem:[#allocation2 + $0x8] sm:$0xff] }
  0x18   : > { %443 = vst.msk [vmem:[#allocation2 + $0xc0] sm:$0xff] %vm417_vm0, %v5005_v1  ;;  %444 = vst.msk [vmem:[#allocation2 + $0xc8] sm:$0xff] %vm417_vm0, %v5005_v1  ;;  %546 = vperm.xlu0 %4829, %v508_v8   ;;  %v928_v53 = vld [vmem:[#allocation2 + $0x1] sm:$0xff]  ;;  %s5007_s21 = smov [#allocation8]  }
  0x19   : > { %446 = vst.msk [vmem:[#allocation2 + $0xd8] sm:$0xff] %vm417_vm0, %v5005_v1  ;;  %447 = vst.msk [vmem:[#allocation2 + $0xe0] sm:$0xff] %vm417_vm0, %v5005_v1  ;;  %s4385_s30 = sshll.u32 %s380_s29, 8 }
  0x1a   : > { %449 = vst.msk [vmem:[#allocation2 + $0xf0] sm:$0xff] %vm417_vm0, %v5005_v1  ;;  %450 = vst.msk [vmem:[#allocation2 + $0xf8] sm:$0xff] %vm417_vm0, %v5005_v1  ;;  %s5234_s14 = scalar_lea.vmem %s6485_s0, %s4385_s30  ;;  %s4944_s30 = sshll.u32 %s5007_s21, 4  ;;  %s4945_s30 = int_to_ptr.vmem [resolvable:$false] %s4944_s30 }
  0x1b   : > { %452 = vst.msk [vmem:[#allocation2 + $0x108] sm:$0xff] %vm417_vm0, %v5005_v1  ;;  %453 = vst.msk [vmem:[#allocation2 + $0x110] sm:$0xff] %vm417_vm0, %v5005_v1  ;;  %v385_v2 = vld [vmem:[%s5234_s14] sm:$0xff]  ;;  %v387_v3 = vld [vmem:[%s5234_s14 + $0x10] sm:$0xff]  ;;  %s4946_s0 = scalar_lea.vmem %s4945_s30, 32 }
  0x1c   : > { %455 = vst.msk [vmem:[#allocation2 + $0x120] sm:$0xff] %vm417_vm0, %v5005_v1  ;;  %456 = vst.msk [vmem:[#allocation2 + $0x128] sm:$0xff] %vm417_vm0, %v5005_v1  ;;  %v386_v4 = vld [vmem:[%s5234_s14 + $0x8] sm:$0xff]  ;;  %v389_v5 = vld [vmem:[%s5234_s14 + $0x20] sm:$0xff]  ;;  %551 = vperm.xlu0 %4829, %v509_v9  }
  0x1d   : > { %458 = vst.msk [vmem:[#allocation2 + $0x138] sm:$0xff] %vm417_vm0, %v5005_v1  ;;  %459 = vst.msk [vmem:[#allocation2 + $0x140] sm:$0xff] %vm417_vm0, %v5005_v1  ;;  %v388_v6 = vld [vmem:[%s5234_s14 + $0x18] sm:$0xff]  ;;  %v391_v7 = vld [vmem:[%s5234_s14 + $0x30] sm:$0xff] }
  0x1e   : > { %461 = vst.msk [vmem:[#allocation2 + $0x150] sm:$0xff] %vm417_vm0, %v5005_v1  ;;  %462 = vst.msk [vmem:[#allocation2 + $0x158] sm:$0xff] %vm417_vm0, %v5005_v1  ;;  %v390_v10 = vld [vmem:[%s5234_s14 + $0x28] sm:$0xff]  ;;  %v393_v11 = vld [vmem:[%s5234_s14 + $0x40] sm:$0xff] }
  0x1f   : > { %464 = vst.msk [vmem:[#allocation2 + $0x168] sm:$0xff] %vm417_vm0, %v5005_v1  ;;  %465 = vst.msk [vmem:[#allocation2 + $0x170] sm:$0xff] %vm417_vm0, %v5005_v1  ;;  %v392_v12 = vld [vmem:[%s5234_s14 + $0x38] sm:$0xff]  ;;  %v395_v13 = vld [vmem:[%s5234_s14 + $0x50] sm:$0xff] }
  0x20   : > { %467 = vst.msk [vmem:[#allocation2 + $0x180] sm:$0xff] %vm417_vm0, %v5005_v1  ;;  %468 = vst.msk [vmem:[#allocation2 + $0x188] sm:$0xff] %vm417_vm0, %v5005_v1  ;;  %v394_v14 = vld [vmem:[%s5234_s14 + $0x48] sm:$0xff]  ;;  %v397_v15 = vld [vmem:[%s5234_s14 + $0x60] sm:$0xff] }
  0x21   : > { %470 = vst.msk [vmem:[#allocation2 + $0x198] sm:$0xff] %vm417_vm0, %v5005_v1  ;;  %471 = vst.msk [vmem:[#allocation2 + $0x1a0] sm:$0xff] %vm417_vm0, %v5005_v1  ;;  %v396_v16 = vld [vmem:[%s5234_s14 + $0x58] sm:$0xff]  ;;  %v399_v17 = vld [vmem:[%s5234_s14 + $0x70] sm:$0xff] }
  0x22   : > { %424 = vst.msk [vmem:[#allocation2 + $0x28] sm:$0x3] %vm420_vm1, %v5005_v1  ;;  %421 = vst.msk [vmem:[#allocation2 + $0x10] sm:$0x3] %vm420_vm1, %v5005_v1  ;;  %v398_v18 = vld [vmem:[%s5234_s14 + $0x68] sm:$0xff]  ;;  %v401_v19 = vld [vmem:[%s5234_s14 + $0x80] sm:$0xff] }
  0x23   : > { %427 = vst.msk [vmem:[#allocation2 + $0x40] sm:$0x3] %vm420_vm1, %v5005_v1  ;;  %430 = vst.msk [vmem:[#allocation2 + $0x58] sm:$0x3] %vm420_vm1, %v5005_v1  ;;  %v400_v20 = vld [vmem:[%s5234_s14 + $0x78] sm:$0xff]  ;;  %v402_v21 = vld [vmem:[%s5234_s14 + $0x88] sm:$0xff] }
  0x24   : > { %433 = vst.msk [vmem:[#allocation2 + $0x70] sm:$0x3] %vm420_vm1, %v5005_v1  ;;  %436 = vst.msk [vmem:[#allocation2 + $0x88] sm:$0x3] %vm420_vm1, %v5005_v1  ;;  %v403_v22 = vld [vmem:[%s5234_s14 + $0x90] sm:$0xff]  ;;  %v405_v23 = vld [vmem:[%s5234_s14 + $0xa0] sm:$0xff] }
  0x25   : > { %439 = vst.msk [vmem:[#allocation2 + $0xa0] sm:$0x3] %vm420_vm1, %v5005_v1  ;;  %442 = vst.msk [vmem:[#allocation2 + $0xb8] sm:$0x3] %vm420_vm1, %v5005_v1  ;;  %v404_v33 = vld [vmem:[%s5234_s14 + $0x98] sm:$0xff]  ;;  %v407_v34 = vld [vmem:[%s5234_s14 + $0xb0] sm:$0xff] }
  0x26   : > { %445 = vst.msk [vmem:[#allocation2 + $0xd0] sm:$0x3] %vm420_vm1, %v5005_v1  ;;  %448 = vst.msk [vmem:[#allocation2 + $0xe8] sm:$0x3] %vm420_vm1, %v5005_v1  ;;  %v406_v35 = vld [vmem:[%s5234_s14 + $0xa8] sm:$0xff]  ;;  %v409_v36 = vld [vmem:[%s5234_s14 + $0xc0] sm:$0xff] }
  0x27   : > { %451 = vst.msk [vmem:[#allocation2 + $0x100] sm:$0x3] %vm420_vm1, %v5005_v1  ;;  %454 = vst.msk [vmem:[#allocation2 + $0x118] sm:$0x3] %vm420_vm1, %v5005_v1  ;;  %v408_v37 = vld [vmem:[%s5234_s14 + $0xb8] sm:$0xff]  ;;  %v411_v38 = vld [vmem:[%s5234_s14 + $0xd0] sm:$0xff] }
  0x28   : > { %457 = vst.msk [vmem:[#allocation2 + $0x130] sm:$0x3] %vm420_vm1, %v5005_v1  ;;  %460 = vst.msk [vmem:[#allocation2 + $0x148] sm:$0x3] %vm420_vm1, %v5005_v1  ;;  %v410_v39 = vld [vmem:[%s5234_s14 + $0xc8] sm:$0xff]  ;;  %v413_v40 = vld [vmem:[%s5234_s14 + $0xe0] sm:$0xff] }
  0x29   : > { %463 = vst.msk [vmem:[#allocation2 + $0x160] sm:$0x3] %vm420_vm1, %v5005_v1  ;;  %466 = vst.msk [vmem:[#allocation2 + $0x178] sm:$0x3] %vm420_vm1, %v5005_v1  ;;  %v412_v41 = vld [vmem:[%s5234_s14 + $0xd8] sm:$0xff]  ;;  %v415_v42 = vld [vmem:[%s5234_s14 + $0xf0] sm:$0xff] }
  0x2a   : > { %469 = vst.msk [vmem:[#allocation2 + $0x190] sm:$0x3] %vm420_vm1, %v5005_v1  ;;  %472 = vst.msk [vmem:[#allocation2 + $0x1a8] sm:$0x3] %vm420_vm1, %v5005_v1  ;;  %v414_v43 = vld [vmem:[%s5234_s14 + $0xe8] sm:$0xff]  ;;  %v416_v45 = vld [vmem:[%s5234_s14 + $0xf8] sm:$0xff] }
  0x2b   : > { %474 = vst.msk [vmem:[#allocation2 + $0x19] sm:$0xff] %vm417_vm0, %v385_v2  ;;  %476 = vst.msk [vmem:[#allocation2 + $0x31] sm:$0xff] %vm417_vm0, %v387_v3  ;;  %v929_v56 = vld [vmem:[#allocation2 + $0x9] sm:$0xff]  ;;  %s4090_s14 = sshll.u32 %s378_s13, 4  ;;  %s6428_s14 = int_to_ptr.vmem [resolvable:$true] %s4090_s14 }
  0x2c   : > { %475 = vst.msk [vmem:[#allocation2 + $0x21] sm:$0xff] %vm417_vm0, %v386_v4  ;;  %478 = vst.msk [vmem:[#allocation2 + $0x49] sm:$0xff] %vm417_vm0, %v389_v5  ;;  %s4940_s29 = scalar_lea.vmem %s6428_s14, 16  ;;  %p4947_p0 = scmp.lt.s32.totalorder %s6428_s14, %s4945_s30 }
  0x2d   : > { %477 = vst.msk [vmem:[#allocation2 + $0x39] sm:$0xff] %vm417_vm0, %v388_v6  ;;  %480 = vst.msk [vmem:[#allocation2 + $0x61] sm:$0xff] %vm417_vm0, %v391_v7  ;;  %p4941_p11 = scmp.ne.s32.totalorder %s6428_s14, %s4940_s29  ;;  %p4948_p1 = scmp.lt.s32.totalorder %s4946_s0, %s4940_s29 }
  0x2e   : > { %479 = vst.msk [vmem:[#allocation2 + $0x51] sm:$0xff] %vm417_vm0, %v390_v10  ;;  %482 = vst.msk [vmem:[#allocation2 + $0x79] sm:$0xff] %vm417_vm0, %v393_v11 }
  0x2f   : > { %481 = vst.msk [vmem:[#allocation2 + $0x69] sm:$0xff] %vm417_vm0, %v392_v12  ;;  %484 = vst.msk [vmem:[#allocation2 + $0x91] sm:$0xff] %vm417_vm0, %v395_v13  ;;  %p4942_p12 = pnand %p4941_p11, %p5106_p5  ;;  %p4949_p2 = por %p4948_p1, %p4947_p0 }
  0x30   : > { %483 = vst.msk [vmem:[#allocation2 + $0x81] sm:$0xff] %vm417_vm0, %v394_v14  ;;  %486 = vst.msk [vmem:[#allocation2 + $0xa9] sm:$0xff] %vm417_vm0, %v397_v15 }
  0x31   : > { %485 = vst.msk [vmem:[#allocation2 + $0x99] sm:$0xff] %vm417_vm0, %v396_v16  ;;  %488 = vst.msk [vmem:[#allocation2 + $0xc1] sm:$0xff] %vm417_vm0, %v399_v17  ;;  %p4943_p13 = pneg %p4942_p12 }
  0x32   : > { %487 = vst.msk [vmem:[#allocation2 + $0xb1] sm:$0xff] %vm417_vm0, %v398_v18  ;;  %490 = vst.msk [vmem:[#allocation2 + $0xd9] sm:$0xff] %vm417_vm0, %v401_v19  ;;  %v510_v24 = vld [vmem:[#allocation2 + $0x18] sm:$0xff]  ;;  %v512_v25 = vld [vmem:[#allocation2 + $0x30] sm:$0xff] }
  0x33   : > { %489 = vst.msk [vmem:[#allocation2 + $0xc9] sm:$0xff] %vm417_vm0, %v400_v20  ;;  %491 = vst.msk [vmem:[#allocation2 + $0xe1] sm:$0xff] %vm417_vm0, %v402_v21  ;;  %556 = vperm.xlu1 %4830, %v510_v24   ;;  %v511_v26 = vld [vmem:[#allocation2 + $0x20] sm:$0xff]  ;;  %566 = vperm.xlu0 %4829, %v512_v25   ;;  %v514_v27 = vld [vmem:[#allocation2 + $0x48] sm:$0xff]  ;;  %p4950_p3 = pnand %p4949_p2, %p4943_p13 }
  0x34   : > { %492 = vst.msk [vmem:[#allocation2 + $0xf1] sm:$0xff] %vm417_vm0, %v403_v22  ;;  %494 = vst.msk [vmem:[#allocation2 + $0x109] sm:$0xff] %vm417_vm0, %v405_v23  ;;  %v513_v28 = vld [vmem:[#allocation2 + $0x38] sm:$0xff]  ;;  %v516_v29 = vld [vmem:[#allocation2 + $0x60] sm:$0xff] }
  0x35   : > { %v515_v30 = vld [vmem:[#allocation2 + $0x50] sm:$0xff]  ;;  %v518_v31 = vld [vmem:[#allocation2 + $0x78] sm:$0xff]  ;;  %493 = vst.msk [vmem:[#allocation2 + $0xf9] sm:$0xff] %vm417_vm0, %v404_v33  ;;  %496 = vst.msk [vmem:[#allocation2 + $0x121] sm:$0xff] %vm417_vm0, %v407_v34 }
  0x36   : > { %v517_v32 = vld [vmem:[#allocation2 + $0x68] sm:$0xff]  ;;  %495 = vst.msk [vmem:[#allocation2 + $0x111] sm:$0xff] %vm417_vm0, %v406_v35  ;;  %498 = vst.msk [vmem:[#allocation2 + $0x139] sm:$0xff] %vm417_vm0, %v409_v36  ;;  %v520_v44 = vld [vmem:[#allocation2 + $0x90] sm:$0xff] }
  0x37   : > { %561 = vperm.xlu1 %4830, %v511_v26   ;;  %576 = vperm.xlu0 %4829, %v514_v27   ;;  %497 = vst.msk [vmem:[#allocation2 + $0x129] sm:$0xff] %vm417_vm0, %v408_v37  ;;  %500 = vst.msk [vmem:[#allocation2 + $0x151] sm:$0xff] %vm417_vm0, %v411_v38  ;;  %v519_v46 = vld [vmem:[#allocation2 + $0x80] sm:$0xff]  ;;  %v522_v47 = vld [vmem:[#allocation2 + $0xa8] sm:$0xff] }
  0x38   : > { %499 = vst.msk [vmem:[#allocation2 + $0x141] sm:$0xff] %vm417_vm0, %v410_v39  ;;  %502 = vst.msk [vmem:[#allocation2 + $0x169] sm:$0xff] %vm417_vm0, %v413_v40  ;;  %v521_v48 = vld [vmem:[#allocation2 + $0x98] sm:$0xff]  ;;  %v524_v49 = vld [vmem:[#allocation2 + $0xc0] sm:$0xff] }
  0x39   : > { %501 = vst.msk [vmem:[#allocation2 + $0x159] sm:$0xff] %vm417_vm0, %v412_v41  ;;  %504 = vst.msk [vmem:[#allocation2 + $0x181] sm:$0xff] %vm417_vm0, %v415_v42  ;;  %v523_v50 = vld [vmem:[#allocation2 + $0xb0] sm:$0xff]  ;;  %v526_v51 = vld [vmem:[#allocation2 + $0xd8] sm:$0xff] }
  0x3a   : > { %503 = vst.msk [vmem:[#allocation2 + $0x171] sm:$0xff] %vm417_vm0, %v414_v43  ;;  %505 = vst.msk [vmem:[#allocation2 + $0x189] sm:$0xff] %vm417_vm0, %v416_v45  ;;  %v525_v52 = vld [vmem:[#allocation2 + $0xc8] sm:$0xff]  ;;  %v527_v54 = vld [vmem:[#allocation2 + $0xe0] sm:$0xff]  ;;  %v704_v43 = vlaneseq }
  0x3b   : > { %571 = vperm.xlu1 %4830, %v513_v28   ;;  %586 = vperm.xlu0 %4829, %v516_v29   ;;  %v930_v55 = vld [vmem:[#allocation2 + $0x19] sm:$0xff]  ;;  %v932_v57 = vld [vmem:[#allocation2 + $0x31] sm:$0xff]  ;;  %v931_v58 = vld [vmem:[#allocation2 + $0x21] sm:$0xff]  ;;  %1911 = vst.msk [vmem:[#allocation4] sm:$0xff] %vm1855_vm2, %v5005_v1 }
  0x3c   : > { %v934_v59 = vld [vmem:[#allocation2 + $0x49] sm:$0xff]  ;;  %v933_v60 = vld [vmem:[#allocation2 + $0x39] sm:$0xff]  ;;  %v936_v61 = vld [vmem:[#allocation2 + $0x61] sm:$0xff]  ;;  %1914 = vst.msk [vmem:[#allocation4 + $0x10] sm:$0xff] %vm1855_vm2, %v5005_v1 }
  0x3d   : > { %v935_v62 = vld [vmem:[#allocation2 + $0x51] sm:$0xff]  ;;  %v938_v63 = vld [vmem:[#allocation2 + $0x79] sm:$0xff]  ;;  %v937_v2 = vld [vmem:[#allocation2 + $0x69] sm:$0xff]  ;;  %1916 = vst.msk [vmem:[#allocation4 + $0x20] sm:$0xff] %vm1855_vm2, %v5005_v1 }
  0x3e   : > { %v940_v3 = vld [vmem:[#allocation2 + $0x91] sm:$0xff]  ;;  %v939_v4 = vld [vmem:[#allocation2 + $0x81] sm:$0xff]  ;;  %v942_v5 = vld [vmem:[#allocation2 + $0xa9] sm:$0xff]  ;;  %1918 = vst.msk [vmem:[#allocation4 + $0x30] sm:$0xff] %vm1855_vm2, %v5005_v1 }
  0x3f   : > { %581 = vperm.xlu1 %4830, %v515_v30   ;;  %596 = vperm.xlu0 %4829, %v518_v31   ;;  %v941_v6 = vld [vmem:[#allocation2 + $0x99] sm:$0xff]  ;;  %v944_v7 = vld [vmem:[#allocation2 + $0xc1] sm:$0xff]  ;;  %v943_v8 = vld [vmem:[#allocation2 + $0xb1] sm:$0xff]  ;;  %1920 = vst.msk [vmem:[#allocation4 + $0x40] sm:$0xff] %vm1855_vm2, %v5005_v1 }
  0x40   : > { %v528_v9 = vld [vmem:[#allocation2 + $0xf0] sm:$0xff]  ;;  %v530_v11 = vld [vmem:[#allocation2 + $0x108] sm:$0xff]  ;;  %v529_v12 = vld [vmem:[#allocation2 + $0xf8] sm:$0xff]  ;;  %1922 = vst.msk [vmem:[#allocation4 + $0x50] sm:$0xff] %vm1855_vm2, %v5005_v1 }
  0x41   : > { %v945_v10 = vld [vmem:[#allocation2 + $0xc9] sm:$0xff]  ;;  %v532_v13 = vld [vmem:[#allocation2 + $0x120] sm:$0xff]  ;;  %v534_v15 = vld [vmem:[#allocation2 + $0x138] sm:$0xff]  ;;  %1924 = vst.msk [vmem:[#allocation4 + $0x60] sm:$0xff] %vm1855_vm2, %v5005_v1 }
  0x42   : > { %v531_v14 = vld [vmem:[#allocation2 + $0x110] sm:$0xff]  ;;  %v533_v16 = vld [vmem:[#allocation2 + $0x128] sm:$0xff]  ;;  %v535_v18 = vld [vmem:[#allocation2 + $0x140] sm:$0xff]  ;;  %1926 = vst.msk [vmem:[#allocation4 + $0x70] sm:$0xff] %vm1855_vm2, %v5005_v1 }
  0x43   : > { %591 = vperm.xlu1 %4830, %v517_v32   ;;  %606 = vperm.xlu0 %4829, %v520_v44   ;;  %v536_v17 = vld [vmem:[#allocation2 + $0x150] sm:$0xff]  ;;  %v538_v19 = vld [vmem:[#allocation2 + $0x168] sm:$0xff]  ;;  %v537_v20 = vld [vmem:[#allocation2 + $0x158] sm:$0xff]  ;;  %1928 = vst.msk [vmem:[#allocation4 + $0x80] sm:$0xff] %vm1855_vm2, %v5005_v1 }
  0x44   : > { %v540_v21 = vld [vmem:[#allocation2 + $0x180] sm:$0xff]  ;;  %v539_v22 = vld [vmem:[#allocation2 + $0x170] sm:$0xff]  ;;  %v541_v24 = vld [vmem:[#allocation2 + $0x188] sm:$0xff]  ;;  %1930 = vst.msk [vmem:[#allocation4 + $0x90] sm:$0xff] %vm1855_vm2, %v5005_v1 }
  0x45   : > { %v946_v23 = vld [vmem:[#allocation2 + $0xd9] sm:$0xff]  ;;  %v1348_v25 = vld [vmem:[#allocation2 + $0x2] sm:$0xff]  ;;  %v1349_v28 = vld [vmem:[#allocation2 + $0xa] sm:$0xff]  ;;  %1915 = vst.msk [vmem:[#allocation4 + $0x18] sm:$0x3] %vm1912_vm3, %v5005_v1 }
  0x46   : > { %v947_v26 = vld [vmem:[#allocation2 + $0xe1] sm:$0xff]  ;;  %v1352_v29 = vld [vmem:[#allocation2 + $0x32] sm:$0xff]  ;;  %v1354_v31 = vld [vmem:[#allocation2 + $0x4a] sm:$0xff]  ;;  %1917 = vst.msk [vmem:[#allocation4 + $0x28] sm:$0x3] %vm1912_vm3, %v5005_v1 }
  0x47   : > { %601 = vperm.xlu1 %4830, %v519_v46   ;;  %616 = vperm.xlu0 %4829, %v522_v47   ;;  %v1350_v27 = vld [vmem:[#allocation2 + $0x1a] sm:$0xff]  ;;  %v1351_v30 = vld [vmem:[#allocation2 + $0x22] sm:$0xff]  ;;  %v1355_v34 = vld [vmem:[#allocation2 + $0x52] sm:$0xff]  ;;  %1919 = vst.msk [vmem:[#allocation4 + $0x38] sm:$0x3] %vm1912_vm3, %v5005_v1 }
  0x48   : > { %v1353_v32 = vld [vmem:[#allocation2 + $0x3a] sm:$0xff]  ;;  %v1356_v35 = vld [vmem:[#allocation2 + $0x62] sm:$0xff]  ;;  %v1357_v40 = vld [vmem:[#allocation2 + $0x6a] sm:$0xff]  ;;  %1913 = vst.msk [vmem:[#allocation4 + $0x8] sm:$0x3] %vm1912_vm3, %v5005_v1 }
  0x49   : > { %v542_v33 = vld [vmem:[#allocation2 + $0x198] sm:$0xff]  ;;  %v543_v37 = vld [vmem:[#allocation2 + $0x1a0] sm:$0xff]  ;;  %v1362_v47 = vld [vmem:[#allocation2 + $0xaa] sm:$0xff]  ;;  %1921 = vst.msk [vmem:[#allocation4 + $0x48] sm:$0x3] %vm1912_vm3, %v5005_v1 }
  0x4a   : > { %v1358_v38 = vld [vmem:[#allocation2 + $0x7a] sm:$0xff]  ;;  %v1360_v42 = vld [vmem:[#allocation2 + $0x92] sm:$0xff]  ;;  %v1359_v45 = vld [vmem:[#allocation2 + $0x82] sm:$0xff]  ;;  %1923 = vst.msk [vmem:[#allocation4 + $0x58] sm:$0x3] %vm1912_vm3, %v5005_v1 }
  0x4b   : > { %611 = vperm.xlu1 %4830, %v521_v48   ;;  %626 = vperm.xlu0 %4829, %v524_v49   ;;  %v5330_v48 = vshrl.u32 %v704_v43, 7  ;;  %1925 = vst.msk [vmem:[#allocation4 + $0x68] sm:$0x3] %vm1912_vm3, %v5005_v1  ;;  %1927 = vst.msk [vmem:[#allocation4 + $0x78] sm:$0x3] %vm1912_vm3, %v5005_v1 }
  0x4c   : > { %1929 = vst.msk [vmem:[#allocation4 + $0x88] sm:$0x3] %vm1912_vm3, %v5005_v1  ;;  %1931 = vst.msk [vmem:[#allocation4 + $0x98] sm:$0x3] %vm1912_vm3, %v5005_v1 }
  0x4d   : > { %2924 = vst.msk [vmem:[#allocation6] sm:$0x3f] %vm2923_vm4, %v5005_v1  ;;  %2925 = vst.msk [vmem:[#allocation6 + $0x8] sm:$0x3f] %vm2923_vm4, %v5005_v1 }
  0x4e   : > { %2926 = vst.msk [vmem:[#allocation6 + $0x10] sm:$0x3f] %vm2923_vm4, %v5005_v1  ;;  %2927 = vst.msk [vmem:[#allocation6 + $0x18] sm:$0x3f] %vm2923_vm4, %v5005_v1 }
  0x4f   : > { %621 = vperm.xlu1 %4830, %v523_v50   ;;  %636 = vperm.xlu0 %4829, %v526_v51   ;;  %v1361_v50 = vld [vmem:[#allocation2 + $0x9a] sm:$0xff]  ;;  %2928 = vst.msk [vmem:[#allocation6 + $0x20] sm:$0x3f] %vm2923_vm4, %v5005_v1  ;;  %2929 = vst.msk [vmem:[#allocation6 + $0x28] sm:$0x3f] %vm2923_vm4, %v5005_v1 }
  0x53   : > { %631 = vperm.xlu1 %4830, %v525_v52   ;;  %966 = vperm.xlu0 %4829, %v928_v53   ;;  %v948_v52 = vld [vmem:[#allocation2 + $0xf1] sm:$0xff]  ;;  %v784_v53 = vsub.s32 3, %v5330_v48 }
  0x57   : > { %641 = vperm.xlu1 %4830, %v527_v54   ;;  %976 = vperm.xlu0 %4829, %v930_v55   ;;  %v5340_v54 = vld [vmem:[%s6469_s1] sm:$0xff] }
  0x5b   : > { %971 = vperm.xlu1 %4830, %v929_v56   ;;  %986 = vperm.xlu0 %4829, %v932_v57   ;;  %v1363_v56 = vld [vmem:[#allocation2 + $0xb2] sm:$0xff]  ;;  %v6481_v57 = vsub.s32 0, %v5330_v48 }
  0x5f   : > { %981 = vperm.xlu1 %4830, %v931_v58   ;;  %996 = vperm.xlu0 %4829, %v934_v59   ;;  %v950_v59 = vld [vmem:[#allocation2 + $0x109] sm:$0xff] }
  0x63   : > { %991 = vperm.xlu1 %4830, %v933_v60   ;;  %1006 = vperm.xlu0 %4829, %v936_v61   ;;  %v5348_v60 = vrot.slane %v5340_v54, %v784_v53  ;;  %v862_v61 = vsub.s32 6, %v5330_v48 }
  0x67   : > { %1001 = vperm.xlu1 %4830, %v935_v62   ;;  %1016 = vperm.xlu0 %4829, %v938_v63   ;;  %v949_v63 = vld [vmem:[#allocation2 + $0xf9] sm:$0xff] }
  0x6b   : > { %1011 = vperm.xlu1 %4830, %v937_v2   ;;  %1026 = vperm.xlu0 %4829, %v940_v3   ;;  %v5356_v2 = vrot.slane %v5340_v54, %v6481_v57 }
  0x6f   : > { %1021 = vperm.xlu1 %4830, %v939_v4   ;;  %1036 = vperm.xlu0 %4829, %v942_v5   ;;  %v952_v5 = vld [vmem:[#allocation2 + $0x121] sm:$0xff] }
  0x73   : > { %1031 = vperm.xlu1 %4830, %v941_v6   ;;  %1046 = vperm.xlu0 %4829, %v944_v7   ;;  %v5363_v6 = vrot.slane %v5340_v54, %v862_v61 }
  0x77   : > { %1041 = vperm.xlu1 %4830, %v943_v8   ;;  %646 = vperm.xlu0 %4829, %v528_v9   ;;  %v951_v9 = vld [vmem:[#allocation2 + $0x111] sm:$0xff] }
  0x7b   : > { %1051 = vperm.xlu1 %4830, %v945_v10   ;;  %656 = vperm.xlu0 %4829, %v530_v11  }
  0x7f   : > { %651 = vperm.xlu1 %4830, %v529_v12   ;;  %666 = vperm.xlu0 %4829, %v532_v13  }
  0x83   : > { %661 = vperm.xlu1 %4830, %v531_v14   ;;  %676 = vperm.xlu0 %4829, %v534_v15   ;;  %v954_v15 = vld [vmem:[#allocation2 + $0x139] sm:$0xff] }
  0x87   : > { %671 = vperm.xlu1 %4830, %v533_v16   ;;  %686 = vperm.xlu0 %4829, %v536_v17  }
  0x8b   : > { %681 = vperm.xlu1 %4830, %v535_v18   ;;  %696 = vperm.xlu0 %4829, %v538_v19  }
  0x8f   : > { %691 = vperm.xlu1 %4830, %v537_v20   ;;  %774 = vperm.xlu0 %4829, %v540_v21   ;;  %v953_v20 = vld [vmem:[#allocation2 + $0x129] sm:$0xff] }
  0x93   : > { %701 = vperm.xlu1 %4830, %v539_v22   ;;  %1056 = vperm.xlu0 %4829, %v946_v23  }
  0x97   : > { %779 = vperm.xlu1 %4830, %v541_v24   ;;  %1386 = vperm.xlu0 %4829, %v1348_v25   ;;  %v5320_v36 = vpop.permute.xlu0 %546 }
  0x9b   : > { %1061 = vperm.xlu1 %4830, %v947_v26   ;;  %1396 = vperm.xlu0 %4829, %v1350_v27   ;;  %v5322_v39 = vpop.permute.xlu0 %551  ;;  %v956_v26 = vld [vmem:[#allocation2 + $0x151] sm:$0xff]  ;;  %v6480_v27 = vsub.s32 1, %v5330_v48 }
  0x9f   : > { %1391 = vperm.xlu1 %4830, %v1349_v28   ;;  %1406 = vperm.xlu0 %4829, %v1352_v29  }
  0xa3   : > { %1401 = vperm.xlu1 %4830, %v1351_v30   ;;  %1416 = vperm.xlu0 %4829, %v1354_v31  }
  0xa7   : > { %1411 = vperm.xlu1 %4830, %v1353_v32   ;;  %852 = vperm.xlu0 %4829, %v542_v33  }
  0xab   : > { %1421 = vperm.xlu1 %4830, %v1355_v34   ;;  %1426 = vperm.xlu0 %4829, %v1356_v35   ;;  %v955_v35 = vld [vmem:[#allocation2 + $0x141] sm:$0xff] }
  0xaf   : > { %857 = vperm.xlu1 %4830, %v543_v37   ;;  %1436 = vperm.xlu0 %4829, %v1358_v38   ;;  %v1204_v37 = vsub.s32 4, %v5330_v48  ;;  %v1282_v38 = vsub.s32 7, %v5330_v48 }
  0xb2   : > { %v5324_v41 = vpop.permute.xlu1 %556  ;;  %v5326_v44 = vpop.permute.xlu0 %566 }
  0xb3   : > { %1431 = vperm.xlu1 %4830, %v1357_v40   ;;  %1446 = vperm.xlu0 %4829, %v1360_v42  }
  0xb6   : > { %v5328_v46 = vpop.permute.xlu1 %561  ;;  %v5332_v49 = vpop.permute.xlu0 %576 }
  0xb7   : > { %1441 = vperm.xlu1 %4830, %v1359_v45   ;;  %1456 = vperm.xlu0 %4829, %v1362_v47   ;;  %v708_v47 = vmul.f32 %v5356_v2, %v5320_v36  ;;  %v957_v36 = vld [vmem:[#allocation2 + $0x159] sm:$0xff] }
  0xba   : > { %v5334_v51 = vpop.permute.xlu1 %571  ;;  %v5342_v55 = vpop.permute.xlu0 %586 }
  0xbb   : > { %1451 = vperm.xlu1 %4830, %v1361_v50   ;;  %1066 = vperm.xlu0 %4829, %v948_v52   ;;  %v716_v7 = vmul.f32 %v5356_v2, %v5342_v55  ;;  %v786_v50 = vmul.f32 %v5348_v60, %v5324_v41 }
  0xbe   : > { %v5345_v58 = vpop.permute.xlu1 %581  ;;  %v5351_v62 = vpop.permute.xlu0 %596 }
  0xbf   : > { %1461 = vperm.xlu1 %4830, %v1363_v56   ;;  %v794_v3 = vmul.f32 %v5348_v60, %v5351_v62  ;;  %1076 = vperm.xlu0 %4829, %v950_v59   ;;  %v718_v10 = vmul.f32 %v5356_v2, %v5351_v62  ;;  %v958_v56 = vld [vmem:[#allocation2 + $0x169] sm:$0xff] }
  0xc1   : > { %v826_v11 = vadd.f32 %v794_v3, %v716_v7 }
  0xc2   : > { %v5360_v4 = vpop.permute.xlu1 %591  ;;  %v607_v8 = vpop.permute.xlu0 %606 }
  0xc3   : > { %1071 = vperm.xlu1 %4830, %v949_v63   ;;  %v796_v12 = vmul.f32 %v5348_v60, %v607_v8  ;;  %v872_v13 = vmul.f32 %v5363_v6, %v607_v8  ;;  %1086 = vperm.xlu0 %4829, %v952_v5   ;;  %v720_v21 = vmul.f32 %v5356_v2, %v607_v8 }
  0xc4   : > { %v717_v24 = vmul.f32 %v5356_v2, %v5360_v4  ;;  %v5420_v8 = vrot.slane %v5340_v54, %v6480_v27 }
  0xc5   : > { %v828_v16 = vadd.f32 %v796_v12, %v718_v10  ;;  %v5373_v17 = vadd.f32 %v872_v13, %v826_v11  ;;  %v5426_v10 = vrot.slane %v5340_v54, %v1282_v38 }
  0xc6   : > { %v5371_v14 = vpop.permute.xlu1 %601  ;;  %v617_v19 = vpop.permute.xlu0 %616 }
  0xc7   : > { %1081 = vperm.xlu1 %4830, %v951_v9   ;;  %v795_v18 = vmul.f32 %v5348_v60, %v5371_v14  ;;  %v798_v22 = vmul.f32 %v5348_v60, %v617_v19  ;;  %v874_v23 = vmul.f32 %v5363_v6, %v617_v19  ;;  %1096 = vperm.xlu0 %4829, %v954_v15  }
  0xc8   : > { %v719_v28 = vmul.f32 %v5356_v2, %v5371_v14  ;;  %v722_v40 = vmul.f32 %v5356_v2, %v617_v19  ;;  %v5423_v9 = vrot.slane %v5340_v54, %v1204_v37  ;;  %v864_v19 = vmul.f32 %v5363_v6, %v5326_v44 }
  0xc9   : > { %v830_v29 = vadd.f32 %v798_v22, %v720_v21  ;;  %v5395_v30 = vadd.f32 %v874_v23, %v828_v16  ;;  %v827_v32 = vadd.f32 %v795_v18, %v717_v24  ;;  %v818_v16 = vadd.f32 %v786_v50, %v708_v47  ;;  %v1364_v22 = vld [vmem:[#allocation2 + $0xc2] sm:$0xff] }
  0xca   : > { %v612_v25 = vpop.permute.xlu1 %611  ;;  %v627_v34 = vpop.permute.xlu0 %626  ;;  %v788_v18 = vmul.f32 %v5348_v60, %v5326_v44  ;;  %v711_v37 = vmul.f32 %v5356_v2, %v5328_v46  ;;  %v960_v47 = vld [vmem:[#allocation2 + $0x181] sm:$0xff] }
  0xcb   : > { %v797_v31 = vmul.f32 %v5348_v60, %v612_v25  ;;  %1091 = vperm.xlu1 %4830, %v953_v20   ;;  %v873_v33 = vmul.f32 %v5363_v6, %v612_v25  ;;  %v800_v43 = vmul.f32 %v5348_v60, %v627_v34  ;;  %v876_v45 = vmul.f32 %v5363_v6, %v627_v34 }
  0xcc   : > { %1106 = vperm.xlu0 %4829, %v956_v26   ;;  %v721_v59 = vmul.f32 %v5356_v2, %v612_v25  ;;  %v724_v11 = vmul.f32 %v5356_v2, %v627_v34  ;;  %v959_v34 = vld [vmem:[#allocation2 + $0x171] sm:$0xff] }
  0xcd   : > { %v829_v42 = vadd.f32 %v797_v31, %v719_v28  ;;  %v5408_v52 = vadd.f32 %v873_v33, %v827_v32  ;;  %v832_v61 = vadd.f32 %v800_v43, %v722_v40  ;;  %v5411_v63 = vadd.f32 %v876_v45, %v830_v29 }
  0xce   : > { %v622_v53 = vpop.permute.xlu1 %621  ;;  %v5415_v7 = vpop.permute.xlu0 %636  ;;  %v709_v28 = vmul.f32 %v5356_v2, %v5322_v39  ;;  %v710_v29 = vmul.f32 %v5356_v2, %v5324_v41  ;;  %v787_v31 = vmul.f32 %v5348_v60, %v5328_v46  ;;  %v790_v39 = vmul.f32 %v5348_v60, %v5332_v49 }
  0xcf   : > { %v799_v3 = vmul.f32 %v5348_v60, %v622_v53  ;;  %1101 = vperm.xlu1 %4830, %v955_v35   ;;  %v875_v5 = vmul.f32 %v5363_v6, %v622_v53  ;;  %v802_v13 = vmul.f32 %v5348_v60, %v5415_v7  ;;  %v878_v15 = vmul.f32 %v5363_v6, %v5415_v7 }
  0xd0   : > { %1116 = vperm.xlu0 %4829, %v958_v56   ;;  %v723_v23 = vmul.f32 %v5356_v2, %v622_v53  ;;  %v712_v35 = vmul.f32 %v5356_v2, %v5326_v44  ;;  %v820_v45 = vadd.f32 %v788_v18, %v710_v29  ;;  %v866_v44 = vmul.f32 %v5363_v6, %v5332_v49 }
  0xd1   : > { %v831_v12 = vadd.f32 %v799_v3, %v721_v59  ;;  %v5437_v20 = vadd.f32 %v875_v5, %v829_v42  ;;  %v5440_v24 = vadd.f32 %v802_v13, %v724_v11  ;;  %v5442_v25 = vadd.f32 %v878_v15, %v832_v61 }
  0xd2   : > { %v632_v21 = vpop.permute.xlu1 %631  ;;  %v967_v33 = vpop.permute.xlu0 %966  ;;  %v896_v42 = vadd.f32 %v864_v19, %v818_v16  ;;  %v819_v56 = vadd.f32 %v787_v31, %v709_v28  ;;  %v789_v59 = vmul.f32 %v5348_v60, %v5334_v51  ;;  %v865_v61 = vmul.f32 %v5363_v6, %v5334_v51 }
  0xd3   : > { %v801_v26 = vmul.f32 %v5348_v60, %v632_v21  ;;  %1111 = vperm.xlu1 %4830, %v957_v36   ;;  %v877_v32 = vmul.f32 %v5363_v6, %v632_v21  ;;  %v1128_v40 = vmul.f32 %v5420_v8, %v967_v33  ;;  %v725_v50 = vmul.f32 %v5356_v2, %v632_v21  ;;  %v1365_v36 = vld [vmem:[#allocation2 + $0xca] sm:$0xff] }
  0xd4   : > { %1466 = vperm.xlu0 %4829, %v1364_v22   ;;  %v714_v16 = vmul.f32 %v5356_v2, %v5332_v49  ;;  %v792_v18 = vmul.f32 %v5348_v60, %v5342_v55  ;;  %v868_v19 = vmul.f32 %v5363_v6, %v5342_v55  ;;  %v867_v21 = vmul.f32 %v5363_v6, %v5345_v58 }
  0xd5   : > { %v833_v38 = vadd.f32 %v801_v26, %v723_v23  ;;  %v5459_v41 = vadd.f32 %v877_v32, %v831_v12  ;;  %v1160_v3 = vadd.f32 %v1128_v40, %v896_v42  ;;  %v1366_v23 = vld [vmem:[#allocation2 + $0xda] sm:$0xff]  ;;  %v822_v26 = vadd.f32 %v790_v39, %v712_v35 }
  0xd6   : > { %v5461_v43 = vpop.permute.xlu1 %641  ;;  %v977_v5 = vpop.permute.xlu0 %976  ;;  %v898_v28 = vadd.f32 %v866_v44, %v820_v45  ;;  %v713_v49 = vmul.f32 %v5356_v2, %v5334_v51  ;;  %v870_v32 = vmul.f32 %v5363_v6, %v5351_v62  ;;  %v897_v33 = vadd.f32 %v865_v61, %v819_v56  ;;  %v962_v62 = vld [vmem:[#allocation2 + $0x199] sm:$0xff] }
  0xd7   : > { %v803_v46 = vmul.f32 %v5348_v60, %v5461_v43  ;;  %v879_v53 = vmul.f32 %v5363_v6, %v5461_v43  ;;  %1121 = vperm.xlu1 %4830, %v959_v34   ;;  %v1130_v13 = vmul.f32 %v5420_v8, %v977_v5  ;;  %v1206_v15 = vmul.f32 %v5423_v9, %v977_v5 }
  0xd8   : > { %1194 = vperm.xlu0 %4829, %v960_v47   ;;  %v821_v55 = vadd.f32 %v789_v59, %v711_v37  ;;  %v791_v45 = vmul.f32 %v5348_v60, %v5345_v58  ;;  %v824_v47 = vadd.f32 %v792_v18, %v714_v16  ;;  %v900_v51 = vadd.f32 %v868_v19, %v822_v26 }
  0xd9   : > { %v5474_v11 = vadd.f32 %v803_v46, %v725_v50  ;;  %v5476_v12 = vadd.f32 %v879_v53, %v833_v38  ;;  %v1238_v29 = vadd.f32 %v1206_v15, %v1160_v3  ;;  %v961_v38 = vld [vmem:[#allocation2 + $0x189] sm:$0xff]  ;;  %v1162_v40 = vadd.f32 %v1130_v13, %v898_v28  ;;  %v1368_v28 = vld [vmem:[#allocation2 + $0xf2] sm:$0xff] }
  0xda   : > { %v972_v22 = vpop.permute.xlu1 %971  ;;  %v987_v34 = vpop.permute.xlu0 %986  ;;  %v899_v44 = vadd.f32 %v867_v21, %v821_v55  ;;  %v902_v59 = vadd.f32 %v870_v32, %v824_v47  ;;  %v793_v61 = vmul.f32 %v5348_v60, %v5360_v4  ;;  %v869_v3 = vmul.f32 %v5363_v6, %v5360_v4 }
  0xdb   : > { %v1129_v31 = vmul.f32 %v5420_v8, %v972_v22  ;;  %1471 = vperm.xlu1 %4830, %v1365_v36   ;;  %v1132_v42 = vmul.f32 %v5420_v8, %v987_v34  ;;  %v1208_v35 = vmul.f32 %v5423_v9, %v987_v34  ;;  %v1284_v39 = vmul.f32 %v5426_v10, %v987_v34  ;;  %v1367_v36 = vld [vmem:[#allocation2 + $0xe2] sm:$0xff] }
  0xdc   : > { %1476 = vperm.xlu0 %4829, %v1366_v23   ;;  %v715_v21 = vmul.f32 %v5356_v2, %v5345_v58  ;;  %v823_v22 = vadd.f32 %v791_v45, %v713_v49  ;;  %v871_v4 = vmul.f32 %v5363_v6, %v5371_v14  ;;  %v963_v58 = vld [vmem:[#allocation2 + $0x1a1] sm:$0xff] }
  0xdd   : > { %v1161_v46 = vadd.f32 %v1129_v31, %v897_v33  ;;  %v5498_v53 = vadd.f32 %v1208_v35, %v1162_v40  ;;  %v5508_v13 = vadd.f32 %v1284_v39, %v1238_v29  ;;  %v1164_v15 = vadd.f32 %v1132_v42, %v900_v51  ;;  %v1370_v51 = vld [vmem:[#allocation2 + $0x10a] sm:$0xff] }
  0xde   : > { %v982_v50 = vpop.permute.xlu1 %981  ;;  %v5506_v5 = vpop.permute.xlu0 %996  ;;  %v825_v34 = vadd.f32 %v793_v61, %v715_v21  ;;  %v901_v55 = vadd.f32 %v869_v3, %v823_v22  ;;  %v1369_v61 = vld [vmem:[#allocation2 + $0xfa] sm:$0xff] }
  0xdf   : > { %v1131_v37 = vmul.f32 %v5420_v8, %v982_v50  ;;  %v1207_v56 = vmul.f32 %v5423_v9, %v982_v50  ;;  %1199 = vperm.xlu1 %4830, %v961_v38   ;;  %v1134_v18 = vmul.f32 %v5420_v8, %v5506_v5  ;;  %v1210_v19 = vmul.f32 %v5423_v9, %v5506_v5 }
  0xe0   : > { %1272 = vperm.xlu0 %4829, %v962_v62   ;;  %v903_v35 = vadd.f32 %v871_v4, %v825_v34 }
  0xe1   : > { %v1239_v16 = vadd.f32 %v1207_v56, %v1161_v46  ;;  %v1163_v23 = vadd.f32 %v1131_v37, %v899_v44  ;;  %v1166_v29 = vadd.f32 %v1134_v18, %v902_v59  ;;  %v1242_v31 = vadd.f32 %v1210_v19, %v1164_v15  ;;  %v1372_v19 = vld [vmem:[#allocation2 + $0x122] sm:$0xff] }
  0xe2   : > { %v992_v26 = vpop.permute.xlu1 %991  ;;  %v1007_v40 = vpop.permute.xlu0 %1006 }
  0xe3   : > { %v1133_v32 = vmul.f32 %v5420_v8, %v992_v26  ;;  %v1209_v33 = vmul.f32 %v5423_v9, %v992_v26  ;;  %1481 = vperm.xlu1 %4830, %v1367_v36   ;;  %v1285_v38 = vmul.f32 %v5426_v10, %v992_v26  ;;  %v1136_v14 = vmul.f32 %v5420_v8, %v1007_v40 }
  0xe4   : > { %v1212_v42 = vmul.f32 %v5423_v9, %v1007_v40  ;;  %1486 = vperm.xlu0 %4829, %v1368_v28   ;;  %v1288_v45 = vmul.f32 %v5426_v10, %v1007_v40 }
  0xe5   : > { %v5521_v49 = vadd.f32 %v1209_v33, %v1163_v23  ;;  %v1165_v39 = vadd.f32 %v1133_v32, %v901_v55  ;;  %v5528_v44 = vadd.f32 %v1285_v38, %v1239_v16  ;;  %v1168_v50 = vadd.f32 %v1136_v14, %v5373_v17 }
  0xe6   : > { %v5526_v47 = vpop.permute.xlu1 %1001  ;;  %v1244_v62 = vadd.f32 %v1212_v42, %v1166_v29  ;;  %v5535_v56 = vadd.f32 %v1288_v45, %v1242_v31  ;;  %v1017_v59 = vpop.permute.xlu0 %1016  ;;  %v1371_v31 = vld [vmem:[#allocation2 + $0x112] sm:$0xff] }
  0xe7   : > { %v1135_v46 = vmul.f32 %v5420_v8, %v5526_v47  ;;  %v1211_v37 = vmul.f32 %v5423_v9, %v5526_v47  ;;  %1277 = vperm.xlu1 %4830, %v963_v58   ;;  %v1138_v15 = vmul.f32 %v5420_v8, %v1017_v59  ;;  %v1214_v16 = vmul.f32 %v5423_v9, %v1017_v59  ;;  %v1374_v58 = vld [vmem:[#allocation2 + $0x13a] sm:$0xff] }
  0xe8   : > { %1496 = vperm.xlu0 %4829, %v1370_v51   ;;  %v1290_v17 = vmul.f32 %v5426_v10, %v1017_v59 }
  0xe9   : > { %v1167_v3 = vadd.f32 %v1135_v46, %v903_v35  ;;  %v1243_v36 = vadd.f32 %v1211_v37, %v1165_v39  ;;  %v1170_v21 = vadd.f32 %v1138_v15, %v5395_v30  ;;  %v1246_v22 = vadd.f32 %v1214_v16, %v1168_v50  ;;  %v1373_v50 = vld [vmem:[#allocation2 + $0x12a] sm:$0xff] }
  0xea   : > { %v1012_v18 = vpop.permute.xlu1 %1011  ;;  %v5543_v26 = vadd.f32 %v1290_v17, %v1244_v62  ;;  %v1027_v29 = vpop.permute.xlu0 %1026 }
  0xeb   : > { %v1137_v4 = vmul.f32 %v5420_v8, %v1012_v18  ;;  %v1213_v23 = vmul.f32 %v5423_v9, %v1012_v18  ;;  %1491 = vperm.xlu1 %4830, %v1369_v61   ;;  %v1289_v28 = vmul.f32 %v5426_v10, %v1012_v18  ;;  %v1140_v34 = vmul.f32 %v5420_v8, %v1027_v29 }
  0xec   : > { %v1216_v55 = vmul.f32 %v5423_v9, %v1027_v29  ;;  %1506 = vperm.xlu0 %4829, %v1372_v19   ;;  %v1292_v38 = vmul.f32 %v5426_v10, %v1027_v29 }
  0xed   : > { %v1169_v32 = vadd.f32 %v1137_v4, %v5408_v52  ;;  %v1245_v33 = vadd.f32 %v1213_v23, %v1167_v3  ;;  %v5549_v30 = vadd.f32 %v1289_v28, %v1243_v36  ;;  %v1172_v14 = vadd.f32 %v1140_v34, %v5411_v63  ;;  %v1376_v36 = vld [vmem:[#allocation2 + $0x152] sm:$0xff] }
  0xee   : > { %v1022_v40 = vpop.permute.xlu1 %1021  ;;  %v1248_v42 = vadd.f32 %v1216_v55, %v1170_v21  ;;  %v5555_v52 = vadd.f32 %v1292_v38, %v1246_v22  ;;  %v1037_v51 = vpop.permute.xlu0 %1036  ;;  %v1375_v22 = vld [vmem:[#allocation2 + $0x142] sm:$0xff] }
  0xef   : > { %v1139_v35 = vmul.f32 %v5420_v8, %v1022_v40  ;;  %v1215_v39 = vmul.f32 %v5423_v9, %v1022_v40  ;;  %1501 = vperm.xlu1 %4830, %v1371_v31   ;;  %v1291_v45 = vmul.f32 %v5426_v10, %v1022_v40  ;;  %v1142_v37 = vmul.f32 %v5420_v8, %v1037_v51 }
  0xf0   : > { %v1218_v59 = vmul.f32 %v5423_v9, %v1037_v51  ;;  %1516 = vperm.xlu0 %4829, %v1374_v58   ;;  %v1294_v61 = vmul.f32 %v5426_v10, %v1037_v51  ;;  %v1377_v58 = vld [vmem:[#allocation2 + $0x15a] sm:$0xff] }
  0xf1   : > { %v1171_v62 = vadd.f32 %v1139_v35, %v5437_v20  ;;  %v1247_v46 = vadd.f32 %v1215_v39, %v1169_v32  ;;  %v5561_v63 = vadd.f32 %v1291_v45, %v1245_v33  ;;  %v1174_v15 = vadd.f32 %v1142_v37, %v5442_v25  ;;  %v1378_v32 = vld [vmem:[#allocation2 + $0x16a] sm:$0xff] }
  0xf2   : > { %v1032_v3 = vpop.permute.xlu1 %1031  ;;  %v1250_v16 = vadd.f32 %v1218_v59, %v1172_v14  ;;  %v5567_v20 = vadd.f32 %v1294_v61, %v1248_v42  ;;  %v1047_v21 = vpop.permute.xlu0 %1046  ;;  %v726_v39 = vmul.f32 %v5356_v2, %v5415_v7 }
  0xf3   : > { %v1141_v17 = vmul.f32 %v5420_v8, %v1032_v3  ;;  %v1217_v18 = vmul.f32 %v5423_v9, %v1032_v3  ;;  %1511 = vperm.xlu1 %4830, %v1373_v50   ;;  %v1293_v19 = vmul.f32 %v5426_v10, %v1032_v3  ;;  %v1220_v28 = vmul.f32 %v5423_v9, %v1047_v21 }
  0xf4   : > { %1526 = vperm.xlu0 %4829, %v1376_v36   ;;  %v1296_v25 = vmul.f32 %v5426_v10, %v1047_v21  ;;  %v1379_v36 = vld [vmem:[#allocation2 + $0x172] sm:$0xff] }
  0xf5   : > { %v1173_v4 = vadd.f32 %v1141_v17, %v5459_v41  ;;  %v1249_v23 = vadd.f32 %v1217_v18, %v1171_v62  ;;  %v5572_v29 = vadd.f32 %v1293_v19, %v1247_v46  ;;  %v5575_v33 = vadd.f32 %v1220_v28, %v1174_v15  ;;  %v1380_v62 = vld [vmem:[#allocation2 + $0x182] sm:$0xff] }
  0xf6   : > { %v1042_v31 = vpop.permute.xlu1 %1041  ;;  %v5580_v41 = vadd.f32 %v1296_v25, %v1250_v16  ;;  %v647_v40 = vpop.permute.xlu0 %646 }
  0xf7   : > { %v1143_v34 = vmul.f32 %v5420_v8, %v1042_v31  ;;  %v1219_v55 = vmul.f32 %v5423_v9, %v1042_v31  ;;  %v1295_v38 = vmul.f32 %v5426_v10, %v1042_v31  ;;  %1521 = vperm.xlu1 %4830, %v1375_v22   ;;  %v804_v45 = vmul.f32 %v5348_v60, %v647_v40  ;;  %v1382_v22 = vld [vmem:[#allocation2 + $0x19a] sm:$0xff] }
  0xf8   : > { %1536 = vperm.xlu0 %4829, %v1378_v32   ;;  %v880_v51 = vmul.f32 %v5363_v6, %v647_v40  ;;  %v728_v7 = vmul.f32 %v5356_v2, %v647_v40  ;;  %v1381_v32 = vld [vmem:[#allocation2 + $0x18a] sm:$0xff] }
  0xf9   : > { %v1175_v14 = vadd.f32 %v1143_v34, %v5476_v12  ;;  %v1251_v42 = vadd.f32 %v1219_v55, %v1173_v4  ;;  %v5583_v35 = vadd.f32 %v1295_v38, %v1249_v23  ;;  %v1144_v12 = vmul.f32 %v5420_v8, %v1047_v21  ;;  %v4831_v34 = vld [vmem:[%s6471_s3 + $0x30] sm:$0xff]  }
  0xfa   : > { %v1052_v50 = vpop.permute.xlu1 %1051  ;;  %v836_v59 = vadd.f32 %v804_v45, %v726_v39  ;;  %v912_v61 = vadd.f32 %v880_v51, %v5440_v24  ;;  %v657_v3 = vpop.permute.xlu0 %656  ;;  %v727_v24 = vmul.f32 %v5356_v2, %v5461_v43  ;;  %4507 = vmatprep.subr.bf16.mxu0 %v4831_v34 }
  0xfb   : > { %v1221_v46 = vmul.f32 %v5423_v9, %v1052_v50  ;;  %v1297_v37 = vmul.f32 %v5426_v10, %v1052_v50  ;;  %1531 = vperm.xlu1 %4830, %v1377_v58   ;;  %v806_v17 = vmul.f32 %v5348_v60, %v657_v3  ;;  %v882_v18 = vmul.f32 %v5363_v6, %v657_v3 }
  0xfc   : > { %1614 = vperm.xlu0 %4829, %v1380_v62   ;;  %v5600_v4 = vadd.f32 %v1144_v12, %v912_v61  ;;  %v730_v55 = vmul.f32 %v5356_v2, %v657_v3  ;;  %v1145_v58 = vmul.f32 %v5420_v8, %v1052_v50  ;;  %4508 = vmatpush3.bf16.msra.mxu0 %v4831_v34  ;;  %v4832_v50 = vld [vmem:[%s6471_s3 + $0x38] sm:$0xff]  }
  0xfd   : > { %v5594_v15 = vadd.f32 %v1221_v46, %v1175_v14  ;;  %v5596_v16 = vadd.f32 %v1297_v37, %v1251_v42  ;;  %v838_v21 = vadd.f32 %v806_v17, %v728_v7  ;;  %v5606_v25 = vadd.f32 %v882_v18, %v836_v59  ;;  %v1383_v37 = vld [vmem:[#allocation2 + $0x1a2] sm:$0xff]  ;;  %4509 = vmatprep.subr.bf16.mxu0 %v4832_v50 }
  0xfe   : > { %v652_v19 = vpop.permute.xlu1 %651  ;;  %v667_v31 = vpop.permute.xlu0 %666 }
  0xff   : > { %v805_v23 = vmul.f32 %v5348_v60, %v652_v19  ;;  %v881_v28 = vmul.f32 %v5363_v6, %v652_v19  ;;  %1541 = vperm.xlu1 %4830, %v1379_v36   ;;  %v808_v43 = vmul.f32 %v5348_v60, %v667_v31  ;;  %v884_v14 = vmul.f32 %v5363_v6, %v667_v31 }
 0x100   : > { %1692 = vperm.xlu0 %4829, %v1382_v22   ;;  %v729_v39 = vmul.f32 %v5356_v2, %v652_v19  ;;  %v732_v59 = vmul.f32 %v5356_v2, %v667_v31  ;;  %4510 = vmatpush3.bf16.msra.mxu0 %v4832_v50 }
 0x101   : > { %v837_v38 = vadd.f32 %v805_v23, %v727_v24  ;;  %v913_v40 = vadd.f32 %v881_v28, %v5474_v11  ;;  %v840_v45 = vadd.f32 %v808_v43, %v730_v55  ;;  %v5619_v46 = vadd.f32 %v884_v14, %v838_v21 }
 0x102   : > { %v662_v42 = vpop.permute.xlu1 %661  ;;  %v677_v11 = vpop.permute.xlu0 %676 }
 0x103   : > { %v807_v51 = vmul.f32 %v5348_v60, %v662_v42  ;;  %v883_v62 = vmul.f32 %v5363_v6, %v662_v42  ;;  %1619 = vperm.xlu1 %4830, %v1381_v32   ;;  %v5621_v12 = vadd.f32 %v1145_v58, %v913_v40  ;;  %v810_v36 = vmul.f32 %v5348_v60, %v677_v11 }
 0x104   : > { %v886_v7 = vmul.f32 %v5363_v6, %v677_v11  ;;  %v731_v18 = vmul.f32 %v5356_v2, %v662_v42  ;;  %v734_v28 = vmul.f32 %v5356_v2, %v677_v11 }
 0x105   : > { %v839_v61 = vadd.f32 %v807_v51, %v729_v39  ;;  %v5627_v3 = vadd.f32 %v883_v62, %v837_v38  ;;  %v842_v19 = vadd.f32 %v810_v36, %v732_v59 }
 0x106   : > { %v672_v17 = vpop.permute.xlu1 %671  ;;  %v5634_v21 = vadd.f32 %v886_v7, %v840_v45  ;;  %v687_v23 = vpop.permute.xlu0 %686 }
 0x107   : > { %v809_v22 = vmul.f32 %v5348_v60, %v672_v17  ;;  %v885_v24 = vmul.f32 %v5363_v6, %v672_v17  ;;  %1697 = vperm.xlu1 %4830, %v1383_v37   ;;  %v812_v34 = vmul.f32 %v5348_v60, %v687_v23  ;;  %v888_v55 = vmul.f32 %v5363_v6, %v687_v23 }
 0x108   : > { %v733_v40 = vmul.f32 %v5356_v2, %v672_v17  ;;  %v736_v45 = vmul.f32 %v5356_v2, %v687_v23 }
 0x109   : > { %v841_v31 = vadd.f32 %v809_v22, %v731_v18  ;;  %v5637_v32 = vadd.f32 %v885_v24, %v839_v61  ;;  %v844_v43 = vadd.f32 %v812_v34, %v734_v28  ;;  %v5644_v42 = vadd.f32 %v888_v55, %v842_v19 }
 0x10a   : > { %v682_v38 = vpop.permute.xlu1 %681  ;;  %v697_v39 = vpop.permute.xlu0 %696  ;;  %v1546_v34 = vsub.s32 2, %v5330_v48 }
 0x10b   : > { %v811_v58 = vmul.f32 %v5348_v60, %v682_v38  ;;  %v887_v14 = vmul.f32 %v5363_v6, %v682_v38  ;;  %v814_v11 = vmul.f32 %v5348_v60, %v697_v39  ;;  %v890_v37 = vmul.f32 %v5363_v6, %v697_v39 }
 0x10c   : > { %v735_v59 = vmul.f32 %v5356_v2, %v682_v38  ;;  %v738_v17 = vmul.f32 %v5356_v2, %v697_v39 }
 0x10d   : > { %v843_v51 = vadd.f32 %v811_v58, %v733_v40  ;;  %v5647_v62 = vadd.f32 %v887_v14, %v841_v31  ;;  %v846_v61 = vadd.f32 %v814_v11, %v736_v45  ;;  %v5655_v18 = vadd.f32 %v890_v37, %v844_v43 }
 0x10e   : > { %v692_v50 = vpop.permute.xlu1 %691  ;;  %v775_v19 = vpop.permute.xlu0 %774 }
 0x10f   : > { %v813_v36 = vmul.f32 %v5348_v60, %v692_v50  ;;  %v889_v7 = vmul.f32 %v5363_v6, %v692_v50  ;;  %v816_v23 = vmul.f32 %v5348_v60, %v775_v19  ;;  %v892_v28 = vmul.f32 %v5363_v6, %v775_v19 }
 0x110   : > { %v737_v55 = vmul.f32 %v5356_v2, %v692_v50 }
 0x111   : > { %v845_v22 = vadd.f32 %v813_v36, %v735_v59  ;;  %v5657_v24 = vadd.f32 %v889_v7, %v843_v51  ;;  %v5663_v38 = vadd.f32 %v816_v23, %v738_v17  ;;  %v5665_v40 = vadd.f32 %v892_v28, %v846_v61 }
 0x112   : > { %v702_v31 = vpop.permute.xlu1 %701  ;;  %v1057_v14 = vpop.permute.xlu0 %1056  ;;  %v5676_v61 = vrot.slane %v5340_v54, %v1546_v34  ;;  %v1624_v36 = vsub.s32 5, %v5330_v48 }
 0x113   : > { %v815_v43 = vmul.f32 %v5348_v60, %v702_v31  ;;  %v891_v58 = vmul.f32 %v5363_v6, %v702_v31  ;;  %v1146_v45 = vmul.f32 %v5420_v8, %v1057_v14  ;;  %v1222_v51 = vmul.f32 %v5423_v9, %v1057_v14 }
 0x114   : > { %v1298_v11 = vmul.f32 %v5426_v10, %v1057_v14  ;;  %v739_v37 = vmul.f32 %v5356_v2, %v702_v31 }
 0x115   : > { %v847_v39 = vadd.f32 %v815_v43, %v737_v55  ;;  %v5673_v59 = vadd.f32 %v891_v58, %v845_v22  ;;  %v5680_v7 = vadd.f32 %v1146_v45, %v5606_v25  ;;  %v5683_v17 = vadd.f32 %v1222_v51, %v5600_v4 }
 0x116   : > { %v780_v50 = vpop.permute.xlu1 %779  ;;  %v5686_v19 = vadd.f32 %v1298_v11, %v5575_v33  ;;  %v1387_v22 = vpop.permute.xlu0 %1386  ;;  %v5695_v55 = vrot.slane %v5340_v54, %v1624_v36  ;;  %v1286_v45 = vmul.f32 %v5426_v10, %v5506_v5 }
 0x117   : > { %v817_v23 = vmul.f32 %v5348_v60, %v780_v50  ;;  %v893_v2 = vmul.f32 %v5363_v6, %v780_v50  ;;  %v1548_v25 = vmul.f32 %v5676_v61, %v1387_v22  ;;  %v5704_v60 = vld [vmem:[%s6471_s3] sm:$0xff]  }
 0x118   : > { %4519 = vmatprep.subr.bf16.mxu0 %v5704_v60 }
 0x119   : > { %v5690_v28 = vadd.f32 %v817_v23, %v739_v37  ;;  %v5692_v31 = vadd.f32 %v893_v2, %v847_v39  ;;  %v5722_v37 = vld [vmem:[%s6469_s1 + $0x8] ss:$0 sm:$0xff]  ;;  %v1318_v23 = vadd.f32 %v1286_v45, %v5498_v53 }
 0x11a   : > { %v1062_v34 = vpop.permute.xlu1 %1061  ;;  %v1397_v58 = vpop.permute.xlu0 %1396 }
 0x11b   : > { %v1147_v4 = vmul.f32 %v5420_v8, %v1062_v34  ;;  %v1223_v33 = vmul.f32 %v5423_v9, %v1062_v34  ;;  %v1299_v43 = vmul.f32 %v5426_v10, %v1062_v34  ;;  %v1626_v51 = vmul.f32 %v5695_v55, %v1397_v58 }
 0x11c   : > { %v1287_v34 = vmul.f32 %v5426_v10, %v5526_v47 }
 0x11d   : > { %v5707_v14 = vadd.f32 %v1147_v4, %v5627_v3  ;;  %v5710_v54 = vadd.f32 %v1223_v33, %v5621_v12  ;;  %v5713_v39 = vadd.f32 %v1299_v43, %v5594_v15  ;;  %v1580_v3 = vadd.f32 %v1548_v25, %v5508_v13  ;;  %v5735_v13 = vld [vmem:[%s6470_s2] ss:$0 sm:$0xff] }
 0x11e   : > { %v1392_v11 = vpop.permute.xlu1 %1391  ;;  %v1550_v12 = vmul.f32 %v5676_v61, %v1397_v58  ;;  %v1407_v50 = vpop.permute.xlu0 %1406  ;;  %v1319_v47 = vadd.f32 %v1287_v34, %v5521_v49 }
 0x11f   : > { %v1658_v15 = vadd.f32 %v1626_v51, %v1580_v3  ;;  %v1704_v36 = vmul.f32 %v5722_v37, %v1407_v50  ;;  %v1549_v5 = vmul.f32 %v5676_v61, %v1392_v11  ;;  %v1628_v2 = vmul.f32 %v5695_v55, %v1407_v50 }
 0x120   : > { %v1582_v33 = vadd.f32 %v1550_v12, %v1318_v23  ;;  %v1552_v3 = vmul.f32 %v5676_v61, %v1407_v50 }
 0x121   : > { %v1736_v4 = vadd.f32 %v1704_v36, %v1658_v15  ;;  %v1581_v58 = vadd.f32 %v1549_v5, %v5528_v44 }
 0x122   : > { %v1402_v22 = vpop.permute.xlu1 %1401  ;;  %v1417_v43 = vpop.permute.xlu0 %1416  ;;  %v1660_v45 = vadd.f32 %v1628_v2, %v1582_v33  ;;  %v1584_v50 = vadd.f32 %v1552_v3, %v5535_v56 }
 0x123   : > { %v1627_v25 = vmul.f32 %v5695_v55, %v1402_v22  ;;  %v1551_v53 = vmul.f32 %v5676_v61, %v1402_v22  ;;  %v1706_v51 = vmul.f32 %v5722_v37, %v1417_v43  ;;  %v1775_v12 = vadd.f32 %v5735_v13, %v1736_v4 }
 0x124   : > { %v1630_v5 = vmul.f32 %v5695_v55, %v1417_v43 }
 0x125   : > { %v1659_v15 = vadd.f32 %v1627_v25, %v1581_v58  ;;  %v1738_v36 = vadd.f32 %v1706_v51, %v1660_v45  ;;  %v1583_v22 = vadd.f32 %v1551_v53, %v1319_v47  ;;  %v1807_v58 = vmax.f32 %v1775_v12, 0.0 }
 0x126   : > { %v1412_v11 = vpop.permute.xlu1 %1411  ;;  %v853_v57 = vpop.permute.xlu0 %852  ;;  %v1554_v45 = vmul.f32 %v5676_v61, %v1417_v43 }
 0x127   : > { %v1629_v23 = vmul.f32 %v5695_v55, %v1412_v11  ;;  %v1705_v27 = vmul.f32 %v5722_v37, %v1412_v11  ;;  %v894_v44 = vmul.f32 %v5363_v6, %v853_v57  ;;  %v1777_v2 = vadd.f32 %v5735_v13, %v1738_v36 }
 0x128   : > { %v1553_v57 = vmul.f32 %v5676_v61, %v1412_v11 }
 0x129   : > { %v1737_v33 = vadd.f32 %v1705_v27, %v1659_v15  ;;  %v1661_v34 = vadd.f32 %v1629_v23, %v1583_v22  ;;  %v5751_v4 = vadd.f32 %v894_v44, %v5663_v38  ;;  %v1809_v53 = vmax.f32 %v1777_v2, 0.0 }
 0x12a   : > { %v1422_v49 = vpop.permute.xlu1 %1421  ;;  %v1427_v51 = vpop.permute.xlu0 %1426  ;;  %v1662_v27 = vadd.f32 %v1630_v5, %v1584_v50  ;;  %v1586_v22 = vadd.f32 %v1554_v45, %v5543_v26  ;;  %v1585_v11 = vadd.f32 %v1553_v57, %v5549_v30 }
 0x12b   : > { %v1707_v25 = vmul.f32 %v5722_v37, %v1422_v49  ;;  %v1776_v47 = vadd.f32 %v5735_v13, %v1737_v33  ;;  %v1839_v15 = vmax.f32 %v1807_v58, %v1809_v53  ;;  %v1632_v56 = vmul.f32 %v5695_v55, %v1427_v51 }
 0x12c   : > { %v1708_v3 = vmul.f32 %v5722_v37, %v1427_v51  ;;  %v1631_v23 = vmul.f32 %v5695_v55, %v1422_v49  ;;  %v1556_v50 = vmul.f32 %v5676_v61, %v1427_v51 }
 0x12d   : > { %v1739_v36 = vadd.f32 %v1707_v25, %v1661_v34  ;;  %1856 = vst.msk [vmem:[#allocation3] sm:$0xff] %vm1855_vm2, %v1839_v15  ;;  %v1808_v2 = vmax.f32 %v1776_v47, 0.0  ;;  %v1555_v25 = vmul.f32 %v5676_v61, %v1422_v49  ;;  %v1664_v58 = vadd.f32 %v1632_v56, %v1586_v22 }
 0x12e   : > { %v858_v38 = vpop.permute.xlu1 %857  ;;  %v1740_v44 = vadd.f32 %v1708_v3, %v1662_v27  ;;  %v1437_v5 = vpop.permute.xlu0 %1436  ;;  %v1663_v26 = vadd.f32 %v1631_v23, %v1585_v11 }
 0x12f   : > { %v1778_v12 = vadd.f32 %v5735_v13, %v1739_v36  ;;  %v895_v43 = vmul.f32 %v5363_v6, %v858_v38  ;;  %v1710_v6 = vmul.f32 %v5722_v37, %v1437_v5  ;;  %v1634_v36 = vmul.f32 %v5695_v55, %v1437_v5 }
 0x130   : > { %v1779_v30 = vadd.f32 %v5735_v13, %v1740_v44  ;;  %v1558_v49 = vmul.f32 %v5676_v61, %v1437_v5  ;;  %v1587_v56 = vadd.f32 %v1555_v25, %v5561_v63 }
 0x131   : > { %v1810_v33 = vmax.f32 %v1778_v12, 0.0  ;;  %v5767_v34 = vadd.f32 %v895_v43, %v5690_v28  ;;  %v1742_v57 = vadd.f32 %v1710_v6, %v1664_v58  ;;  %v1588_v28 = vadd.f32 %v1556_v50, %v5555_v52 }
 0x132   : > { %v1432_v53 = vpop.permute.xlu1 %1431  ;;  %v1447_v27 = vpop.permute.xlu0 %1446  ;;  %v1811_v11 = vmax.f32 %v1779_v30, 0.0  ;;  %v1590_v5 = vadd.f32 %v1558_v49, %v5567_v20 }
 0x133   : > { %v1840_v45 = vmax.f32 %v1808_v2, %v1810_v33  ;;  %v1633_v47 = vmul.f32 %v5695_v55, %v1432_v53  ;;  %v1709_v51 = vmul.f32 %v5722_v37, %v1432_v53  ;;  %v1712_v15 = vmul.f32 %v5722_v37, %v1447_v27 }
 0x134   : > { %v1781_v3 = vadd.f32 %v5735_v13, %v1742_v57  ;;  %v1666_v12 = vadd.f32 %v1634_v36, %v1588_v28  ;;  %v1557_v43 = vmul.f32 %v5676_v61, %v1432_v53  ;;  %v1636_v22 = vmul.f32 %v5695_v55, %v1447_v27 }
 0x135   : > { %1857 = vst.msk [vmem:[#allocation3 + $0x8] sm:$0xff] %vm1855_vm2, %v1840_v45  ;;  %v1741_v38 = vadd.f32 %v1709_v51, %v1663_v26  ;;  %v1665_v2 = vadd.f32 %v1633_v47, %v1587_v56 }
 0x136   : > { %v1442_v23 = vpop.permute.xlu1 %1441  ;;  %v1813_v44 = vmax.f32 %v1781_v3, 0.0  ;;  %v1457_v33 = vpop.permute.xlu0 %1456  ;;  %v1744_v50 = vadd.f32 %v1712_v15, %v1666_v12  ;;  %v1589_v53 = vadd.f32 %v1557_v43, %v5572_v29  ;;  %v1668_v45 = vadd.f32 %v1636_v22, %v1590_v5 }
 0x137   : > { %v1711_v52 = vmul.f32 %v5722_v37, %v1442_v23  ;;  %v1635_v63 = vmul.f32 %v5695_v55, %v1442_v23  ;;  %v1780_v58 = vadd.f32 %v5735_v13, %v1741_v38  ;;  %v1559_v36 = vmul.f32 %v5676_v61, %v1442_v23 }
 0x138   : > { %v1841_v25 = vmax.f32 %v1811_v11, %v1813_v44  ;;  %v1714_v30 = vmul.f32 %v5722_v37, %v1457_v33  ;;  %v1783_v51 = vadd.f32 %v5735_v13, %v1744_v50 }
 0x139   : > { %v1743_v6 = vadd.f32 %v1711_v52, %v1665_v2  ;;  %v1667_v28 = vadd.f32 %v1635_v63, %v1589_v53  ;;  %v1812_v56 = vmax.f32 %v1780_v58, 0.0  ;;  %v1591_v38 = vadd.f32 %v1559_v36, %v5583_v35 }
 0x13a   : > { %v1452_v26 = vpop.permute.xlu1 %1451  ;;  %1858 = vst.msk [vmem:[#allocation3 + $0x10] sm:$0xff] %vm1855_vm2, %v1841_v25  ;;  %v1067_v47 = vpop.permute.xlu0 %1066  ;;  %v1746_v49 = vadd.f32 %v1714_v30, %v1668_v45  ;;  %v1815_v11 = vmax.f32 %v1783_v51, 0.0  ;;  %v1560_v53 = vmul.f32 %v5676_v61, %v1447_v27  ;;  %v1562_v36 = vmul.f32 %v5676_v61, %v1457_v33 }
 0x13b   : > { %v1782_v57 = vadd.f32 %v5735_v13, %v1743_v6  ;;  %v1713_v20 = vmul.f32 %v5722_v37, %v1452_v26  ;;  %v1637_v15 = vmul.f32 %v5695_v55, %v1452_v26  ;;  %v1561_v51 = vmul.f32 %v5676_v61, %v1452_v26 }
 0x13c   : > { %v1785_v23 = vadd.f32 %v5735_v13, %v1746_v49  ;;  %v1872_v58 = vld [vmem:[#allocation3] ss:$2 sm:$0xff]  ;;  %v1888_v6 = vld [vmem:[#allocation3 + $0x1] ss:$2 sm:$0xff]  ;;  %v1148_v27 = vmul.f32 %v5420_v8, %v1067_v47 }
 0x13d   : > { %v1814_v29 = vmax.f32 %v1782_v57, 0.0  ;;  %v1745_v12 = vadd.f32 %v1713_v20, %v1667_v28  ;;  %v1669_v2 = vadd.f32 %v1637_v15, %v1591_v38  ;;  %v1903_v57 = vmax.f32 %v1872_v58, %v1888_v6 }
 0x13e   : > { %v1462_v3 = vpop.permute.xlu1 %1461  ;;  %v1077_v22 = vpop.permute.xlu0 %1076  ;;  %v1817_v44 = vmax.f32 %v1785_v23, 0.0  ;;  %v1638_v20 = vmul.f32 %v5695_v55, %v1457_v33  ;;  %v1300_v33 = vmul.f32 %v5426_v10, %v1067_v47  ;;  %v1180_v58 = vadd.f32 %v1148_v27, %v5619_v46 }
 0x13f   : > { %v1842_v43 = vmax.f32 %v1812_v56, %v1814_v29  ;;  %v1715_v52 = vmul.f32 %v5722_v37, %v1462_v3  ;;  %v1784_v63 = vadd.f32 %v5735_v13, %v1745_v12  ;;  %1933 = vst.msk [vmem:[#allocation4 + $0x11] sm:$0xff] %vm1855_vm2, %v1903_v57  ;;  %v1592_v56 = vadd.f32 %v1560_v53, %v5580_v41 }
 0x140   : > { %v1843_v50 = vmax.f32 %v1815_v11, %v1817_v44  ;;  %v1224_v29 = vmul.f32 %v5423_v9, %v1067_v47  ;;  %v1563_v41 = vmul.f32 %v5676_v61, %v1462_v3  ;;  %v5830_v53 = vadd.f32 %v1300_v33, %v5683_v17 }
 0x141   : > { %1859 = vst.msk [vmem:[#allocation3 + $0x18] sm:$0xff] %vm1855_vm2, %v1842_v43  ;;  %v1747_v25 = vadd.f32 %v1715_v52, %v1669_v2  ;;  %v1816_v28 = vmax.f32 %v1784_v63, 0.0  ;;  %v5811_v43 = vadd.f32 %v1562_v36, %v5686_v19  ;;  %v5814_v44 = vadd.f32 %v1638_v20, %v1592_v56 }
 0x142   : > { %v1072_v5 = vpop.permute.xlu1 %1071  ;;  %v1087_v35 = vpop.permute.xlu0 %1086  ;;  %1860 = vst.msk [vmem:[#allocation3 + $0x20] sm:$0xff] %vm1855_vm2, %v1843_v50  ;;  %v1593_v2 = vadd.f32 %v1561_v51, %v5596_v16  ;;  %v1639_v52 = vmul.f32 %v5695_v55, %v1462_v3  ;;  %v1150_v50 = vmul.f32 %v5420_v8, %v1077_v22  ;;  %v1226_v63 = vmul.f32 %v5423_v9, %v1077_v22 }
 0x143   : > { %v1786_v45 = vadd.f32 %v5735_v13, %v1747_v25  ;;  %v1302_v19 = vmul.f32 %v5426_v10, %v1077_v22  ;;  %v1149_v47 = vmul.f32 %v5420_v8, %v1072_v5  ;;  %v1256_v16 = vadd.f32 %v1224_v29, %v5680_v7 }
 0x144   : > { %v1225_v6 = vmul.f32 %v5423_v9, %v1072_v5  ;;  %v1301_v3 = vmul.f32 %v5426_v10, %v1072_v5  ;;  %v1228_v22 = vmul.f32 %v5423_v9, %v1087_v35  ;;  %v1304_v36 = vmul.f32 %v5426_v10, %v1087_v35 }
 0x145   : > { %v1818_v49 = vmax.f32 %v1786_v45, 0.0  ;;  %v1152_v45 = vmul.f32 %v5420_v8, %v1087_v35  ;;  %v5836_v20 = vadd.f32 %v1563_v41, %v5713_v39  ;;  %v5838_v46 = vadd.f32 %v1639_v52, %v1593_v2 }
 0x146   : > { %v1082_v30 = vpop.permute.xlu1 %1081  ;;  %v1097_v15 = vpop.permute.xlu0 %1096  ;;  %v1182_v5 = vadd.f32 %v1150_v50, %v5634_v21  ;;  %v1258_v17 = vadd.f32 %v1226_v63, %v1180_v58  ;;  %v1257_v35 = vadd.f32 %v1225_v6, %v5707_v14  ;;  %v5848_v27 = vadd.f32 %v1301_v3, %v5710_v54 }
 0x147   : > { %v1844_v38 = vmax.f32 %v1816_v28, %v1818_v49  ;;  %v1151_v7 = vmul.f32 %v5420_v8, %v1082_v30  ;;  %v1227_v51 = vmul.f32 %v5423_v9, %v1082_v30  ;;  %v5843_v28 = vadd.f32 %v1302_v19, %v1256_v16 }
 0x148   : > { %v1874_v23 = vld [vmem:[#allocation3 + $0x10] ss:$2 sm:$0xff]  ;;  %v1890_v12 = vld [vmem:[#allocation3 + $0x11] ss:$2 sm:$0xff]  ;;  %v1181_v49 = vadd.f32 %v1149_v47, %v5637_v32  ;;  %v1303_v39 = vmul.f32 %v5426_v10, %v1082_v30  ;;  %v1154_v29 = vmul.f32 %v5420_v8, %v1097_v15  ;;  %v1260_v21 = vadd.f32 %v1228_v22, %v1182_v5 }
 0x149   : > { %v1904_v11 = vmax.f32 %v1874_v23, %v1890_v12  ;;  %1861 = vst.msk [vmem:[#allocation3 + $0x28] sm:$0xff] %vm1855_vm2, %v1844_v38  ;;  %v1184_v12 = vadd.f32 %v1152_v45, %v5644_v42  ;;  %v5853_v33 = vadd.f32 %v1304_v36, %v1258_v17  ;;  %v1183_v2 = vadd.f32 %v1151_v7, %v5647_v62  ;;  %v5859_v30 = vld [vmem:[#allocation4 + $0x10] sm:$0xff] }
 0x14a   : > { %v1092_v26 = vpop.permute.xlu1 %1091  ;;  %v1259_v14 = vadd.f32 %v1227_v51, %v1181_v49  ;;  %v1306_v54 = vmul.f32 %v5426_v10, %v1097_v15  ;;  %v5867_v58 = vadd.f32 %v1303_v39, %v1257_v35  ;;  %v1186_v62 = vadd.f32 %v1154_v29, %v5655_v18 }
 0x14b   : > { %v1107_v25 = vpop.permute.xlu0 %1106  ;;  %1934 = vst.msk [vmem:[#allocation4 + $0x21] sm:$0xff] %vm1855_vm2, %v1904_v11  ;;  %v1230_v11 = vmul.f32 %v5423_v9, %v1097_v15  ;;  %v1153_v41 = vmul.f32 %v5420_v8, %v1092_v26  ;;  %v1229_v50 = vmul.f32 %v5423_v9, %v1092_v26  ;;  %v1305_v42 = vmul.f32 %v5426_v10, %v1092_v26 }
 0x14c   : > { %v1156_v15 = vmul.f32 %v5420_v8, %v1107_v25  ;;  %v1232_v16 = vmul.f32 %v5423_v9, %v1107_v25  ;;  %v1308_v6 = vmul.f32 %v5426_v10, %v1107_v25  ;;  %v5878_v7 = vadd.f32 %v1306_v54, %v1260_v21 }
 0x14d   : > { %v1262_v36 = vadd.f32 %v1230_v11, %v1184_v12  ;;  %v1185_v25 = vadd.f32 %v1153_v41, %v5657_v24  ;;  %v1261_v5 = vadd.f32 %v1229_v50, %v1183_v2  ;;  %v5883_v17 = vadd.f32 %v1305_v42, %v1259_v14 }
 0x14e   : > { %v1102_v57 = vpop.permute.xlu1 %1101  ;;  %v1188_v39 = vadd.f32 %v1156_v15, %v5665_v40  ;;  %v1264_v29 = vadd.f32 %v1232_v16, %v1186_v62 }
 0x14f   : > { %v1117_v56 = vpop.permute.xlu0 %1116  ;;  %v1155_v3 = vmul.f32 %v5420_v8, %v1102_v57  ;;  %v1231_v45 = vmul.f32 %v5423_v9, %v1102_v57  ;;  %v1307_v18 = vmul.f32 %v5426_v10, %v1102_v57  ;;  %v5889_v12 = vadd.f32 %v1308_v6, %v1262_v36 }
 0x150   : > { %v1876_v38 = vld [vmem:[#allocation3 + $0x20] ss:$2 sm:$0xff]  ;;  %v1892_v23 = vld [vmem:[#allocation3 + $0x21] ss:$2 sm:$0xff]  ;;  %v1158_v51 = vmul.f32 %v5420_v8, %v1117_v56  ;;  %v1234_v49 = vmul.f32 %v5423_v9, %v1117_v56 }
 0x151   : > { %v1905_v19 = vmax.f32 %v1876_v38, %v1892_v23  ;;  %v1310_v38 = vmul.f32 %v5426_v10, %v1117_v56  ;;  %v1187_v57 = vadd.f32 %v1155_v3, %v5673_v59  ;;  %v1263_v21 = vadd.f32 %v1231_v45, %v1185_v25 }
 0x152   : > { %v1112_v32 = vpop.permute.xlu1 %1111  ;;  %v5861_v52 = vld [vmem:[#allocation4 + $0x20] sm:$0xff]  ;;  %v5893_v2 = vadd.f32 %v1307_v18, %v1261_v5  ;;  %v1190_v14 = vadd.f32 %v1158_v51, %v5751_v4  ;;  %v1266_v41 = vadd.f32 %v1234_v49, %v1188_v39 }
 0x153   : > { %v1467_v63 = vpop.permute.xlu0 %1466  ;;  %v1959_v47 = vpack.c.bf16 %v5861_v52, %v5859_v30  ;;  %1935 = vst.msk [vmem:[#allocation4 + $0x31] sm:$0xff] %vm1855_vm2, %v1905_v19  ;;  %v1157_v54 = vmul.f32 %v5420_v8, %v1112_v32  ;;  %v1233_v40 = vmul.f32 %v5423_v9, %v1112_v32  ;;  %v1309_v56 = vmul.f32 %v5426_v10, %v1112_v32 }
 0x154   : > { %v1716_v26 = vmul.f32 %v5722_v37, %v1467_v63  ;;  %v1640_v23 = vmul.f32 %v5695_v55, %v1467_v63  ;;  %v1564_v50 = vmul.f32 %v5676_v61, %v1467_v63  ;;  %v5901_v19 = vadd.f32 %v1310_v38, %v1264_v29 }
 0x155   : > { %4511 = vmatprep.mubr.msk.bf16.mxu0 %vm1855_vm2, %v1959_v47  ;;  %v1189_v6 = vadd.f32 %v1157_v54, %v5692_v31  ;;  %v1265_v3 = vadd.f32 %v1233_v40, %v1187_v57 }
 0x156   : > { %v1122_v22 = vpop.permute.xlu1 %1121  ;;  %v1748_v24 = vadd.f32 %v1716_v26, %v5814_v44  ;;  %v1672_v44 = vadd.f32 %v1640_v23, %v5811_v43  ;;  %v5912_v43 = vadd.f32 %v1309_v56, %v1263_v21 }
 0x157   : > { %v1195_v35 = vpop.permute.xlu0 %1194  ;;  %v1159_v47 = vmul.f32 %v5420_v8, %v1122_v22  ;;  %v1235_v15 = vmul.f32 %v5423_v9, %v1122_v22  ;;  %v1311_v16 = vmul.f32 %v5426_v10, %v1122_v22  ;;  %v1596_v8 = vadd.f32 %v1564_v50, %v5830_v53 }
 0x158   : > { %v1787_v62 = vadd.f32 %v5735_v13, %v1748_v24  ;;  %v1236_v32 = vmul.f32 %v5423_v9, %v1195_v35  ;;  %v1312_v45 = vmul.f32 %v5426_v10, %v1195_v35 }
 0x159   : > { %v1191_v22 = vadd.f32 %v1159_v47, %v5767_v34  ;;  %v1267_v35 = vadd.f32 %v1235_v15, %v1189_v6  ;;  %v5921_v39 = vadd.f32 %v1311_v16, %v1265_v3 }
 0x15a   : > { %v1472_v11 = vpop.permute.xlu1 %1471  ;;  %v1819_v49 = vmax.f32 %v1787_v62, 0.0  ;;  %v1268_v29 = vadd.f32 %v1236_v32, %v1190_v14  ;;  %v5923_v53 = vadd.f32 %v1312_v45, %v1266_v41 }
 0x15b   : > { %v1717_v42 = vmul.f32 %v5722_v37, %v1472_v11  ;;  %v1477_v59 = vpop.permute.xlu0 %1476  ;;  %v1641_v36 = vmul.f32 %v5695_v55, %v1472_v11  ;;  %v1565_v25 = vmul.f32 %v5676_v61, %v1472_v11 }
 0x15c   : > { %v1718_v4 = vmul.f32 %v5722_v37, %v1477_v59  ;;  %v1642_v5 = vmul.f32 %v5695_v55, %v1477_v59  ;;  %v1566_v23 = vmul.f32 %v5676_v61, %v1477_v59 }
 0x15d   : > { %v1749_v18 = vadd.f32 %v1717_v42, %v5838_v46  ;;  %v1673_v34 = vadd.f32 %v1641_v36, %v5836_v20  ;;  %v1597_v40 = vadd.f32 %v1565_v25, %v5848_v27 }
 0x15e   : > { %v1200_v63 = vpop.permute.xlu1 %1199  ;;  %v1750_v26 = vadd.f32 %v1718_v4, %v1672_v44  ;;  %v1674_v14 = vadd.f32 %v1642_v5, %v1596_v8  ;;  %v1598_v44 = vadd.f32 %v1566_v23, %v5843_v28 }
 0x15f   : > { %v1273_v51 = vpop.permute.xlu0 %1272  ;;  %v1237_v57 = vmul.f32 %v5423_v9, %v1200_v63  ;;  %v1788_v21 = vadd.f32 %v5735_v13, %v1749_v18  ;;  %v1313_v24 = vmul.f32 %v5426_v10, %v1200_v63 }
 0x160   : > { %v1789_v31 = vadd.f32 %v5735_v13, %v1750_v26  ;;  %v1314_v41 = vmul.f32 %v5426_v10, %v1273_v51 }
 0x161   : > { %v5938_v47 = vadd.f32 %v1237_v57, %v1191_v22  ;;  %v1820_v62 = vmax.f32 %v1788_v21, 0.0  ;;  %v5942_v15 = vadd.f32 %v1313_v24, %v1267_v35 }
 0x162   : > { %v1482_v38 = vpop.permute.xlu1 %1481  ;;  %v1821_v46 = vmax.f32 %v1789_v31, 0.0  ;;  %v5948_v26 = vadd.f32 %v1314_v41, %v1268_v29 }
 0x163   : > { %v1719_v11 = vmul.f32 %v5722_v37, %v1482_v38  ;;  %v1487_v54 = vpop.permute.xlu0 %1486  ;;  %v1567_v50 = vmul.f32 %v5676_v61, %v1482_v38  ;;  %v1643_v27 = vmul.f32 %v5695_v55, %v1482_v38 }
 0x164   : > { %v1845_v56 = vmax.f32 %v1819_v49, %v1821_v46  ;;  %v1644_v9 = vmul.f32 %v5695_v55, %v1487_v54  ;;  %v1720_v20 = vmul.f32 %v5722_v37, %v1487_v54  ;;  %v1568_v4 = vmul.f32 %v5676_v61, %v1487_v54 }
 0x165   : > { %v1751_v42 = vadd.f32 %v1719_v11, %v1673_v34  ;;  %v1599_v8 = vadd.f32 %v1567_v50, %v5867_v58  ;;  %v1675_v22 = vadd.f32 %v1643_v27, %v1597_v40 }
 0x166   : > { %v1278_v59 = vpop.permute.xlu1 %1277  ;;  %1862 = vst.msk [vmem:[#allocation3 + $0x30] sm:$0xff] %vm1855_vm2, %v1845_v56  ;;  %v1752_v32 = vadd.f32 %v1720_v20, %v1674_v14  ;;  %v1676_v6 = vadd.f32 %v1644_v9, %v1598_v44  ;;  %v1600_v25 = vadd.f32 %v1568_v4, %v5853_v33 }
 0x167   : > { %v1790_v16 = vadd.f32 %v5735_v13, %v1751_v42  ;;  %v1497_v63 = vpop.permute.xlu0 %1496  ;;  %v5955_v35 = vmul.f32 %v5426_v10, %v1278_v59 }
 0x168   : > { %v1570_v3 = vmul.f32 %v5676_v61, %v1497_v63  ;;  %v1646_v28 = vmul.f32 %v5695_v55, %v1497_v63  ;;  %v1722_v45 = vmul.f32 %v5722_v37, %v1497_v63  ;;  %v1791_v18 = vadd.f32 %v5735_v13, %v1752_v32 }
 0x169   : > { %v1822_v36 = vmax.f32 %v1790_v16, 0.0 }
 0x16a   : > { %v1492_v51 = vpop.permute.xlu1 %1491  ;;  %v1754_v5 = vadd.f32 %v1722_v45, %v1676_v6  ;;  %v1602_v58 = vadd.f32 %v1570_v3, %v5878_v7  ;;  %v1678_v46 = vadd.f32 %v1646_v28, %v1600_v25  ;;  %v1823_v33 = vmax.f32 %v1791_v18, 0.0 }
 0x16b   : > { %v1569_v31 = vmul.f32 %v5676_v61, %v1492_v51  ;;  %v1846_v49 = vmax.f32 %v1820_v62, %v1822_v36  ;;  %v1645_v38 = vmul.f32 %v5695_v55, %v1492_v51  ;;  %v1721_v29 = vmul.f32 %v5722_v37, %v1492_v51  ;;  %v1507_v23 = vpop.permute.xlu0 %1506 }
 0x16c   : > { %v1793_v57 = vadd.f32 %v5735_v13, %v1754_v5  ;;  %v1572_v34 = vmul.f32 %v5676_v61, %v1507_v23  ;;  %v1648_v24 = vmul.f32 %v5695_v55, %v1507_v23  ;;  %v1724_v10 = vmul.f32 %v5722_v37, %v1507_v23 }
 0x16d   : > { %1863 = vst.msk [vmem:[#allocation3 + $0x38] sm:$0xff] %vm1855_vm2, %v1846_v49  ;;  %v1753_v21 = vadd.f32 %v1721_v29, %v1675_v22  ;;  %v1601_v40 = vadd.f32 %v1569_v31, %v5883_v17  ;;  %v1677_v14 = vadd.f32 %v1645_v38, %v1599_v8 }
 0x16e   : > { %v1502_v11 = vpop.permute.xlu1 %1501  ;;  %v1825_v54 = vmax.f32 %v1793_v57, 0.0  ;;  %v1756_v41 = vadd.f32 %v1724_v10, %v1678_v46  ;;  %v1604_v59 = vadd.f32 %v1572_v34, %v5889_v12  ;;  %v1680_v4 = vadd.f32 %v1648_v24, %v1602_v58 }
 0x16f   : > { %v1571_v7 = vmul.f32 %v5676_v61, %v1502_v11  ;;  %v1792_v56 = vadd.f32 %v5735_v13, %v1753_v21  ;;  %v1647_v50 = vmul.f32 %v5695_v55, %v1502_v11  ;;  %v1723_v42 = vmul.f32 %v5722_v37, %v1502_v11  ;;  %v1517_v9 = vpop.permute.xlu0 %1516 }
 0x170   : > { %v1847_v20 = vmax.f32 %v1823_v33, %v1825_v54  ;;  %v1574_v44 = vmul.f32 %v5676_v61, %v1517_v9  ;;  %v1650_v27 = vmul.f32 %v5695_v55, %v1517_v9  ;;  %v1795_v17 = vadd.f32 %v5735_v13, %v1756_v41 }
 0x171   : > { %v1603_v62 = vadd.f32 %v1571_v7, %v5893_v2  ;;  %v1755_v16 = vadd.f32 %v1723_v42, %v1677_v14  ;;  %v1824_v63 = vmax.f32 %v1792_v56, 0.0  ;;  %v1679_v6 = vadd.f32 %v1647_v50, %v1601_v40 }
 0x172   : > { %v1512_v32 = vpop.permute.xlu1 %1511  ;;  %1864 = vst.msk [vmem:[#allocation3 + $0x40] sm:$0xff] %vm1855_vm2, %v1847_v20  ;;  %v1726_v3 = vmul.f32 %v5722_v37, %v1517_v9  ;;  %v1606_v45 = vadd.f32 %v1574_v44, %v5901_v19  ;;  %v1827_v22 = vmax.f32 %v1795_v17, 0.0  ;;  %v1682_v25 = vadd.f32 %v1650_v27, %v1604_v59 }
 0x173   : > { %v1573_v28 = vmul.f32 %v5676_v61, %v1512_v32  ;;  %v1794_v12 = vadd.f32 %v5735_v13, %v1755_v16  ;;  %v1649_v8 = vmul.f32 %v5695_v55, %v1512_v32  ;;  %v1725_v36 = vmul.f32 %v5722_v37, %v1512_v32  ;;  %v1527_v18 = vpop.permute.xlu0 %1526 }
 0x174   : > { %v1878_v2 = vld [vmem:[#allocation3 + $0x30] ss:$2 sm:$0xff]  ;;  %v1894_v51 = vld [vmem:[#allocation3 + $0x31] ss:$2 sm:$0xff]  ;;  %v1758_v5 = vadd.f32 %v1726_v3, %v1680_v4  ;;  %v1576_v31 = vmul.f32 %v5676_v61, %v1527_v18  ;;  %v1652_v23 = vmul.f32 %v5695_v55, %v1527_v18  ;;  %v1728_v34 = vmul.f32 %v5722_v37, %v1527_v18 }
 0x175   : > { %v1906_v49 = vmax.f32 %v1878_v2, %v1894_v51  ;;  %v1826_v38 = vmax.f32 %v1794_v12, 0.0  ;;  %v1757_v29 = vadd.f32 %v1725_v36, %v1679_v6  ;;  %v1605_v46 = vadd.f32 %v1573_v28, %v5912_v43 }
 0x176   : > { %v1522_v58 = vpop.permute.xlu1 %1521  ;;  %v1797_v19 = vadd.f32 %v5735_v13, %v1758_v5  ;;  %v1681_v57 = vadd.f32 %v1649_v8, %v1603_v62  ;;  %v1760_v40 = vadd.f32 %v1728_v34, %v1682_v25  ;;  %v1608_v56 = vadd.f32 %v1576_v31, %v5923_v53 }
 0x177   : > { %1936 = vst.msk [vmem:[#allocation4 + $0x41] sm:$0xff] %vm1855_vm2, %v1906_v49  ;;  %v1848_v33 = vmax.f32 %v1824_v63, %v1826_v38  ;;  %v1796_v21 = vadd.f32 %v5735_v13, %v1757_v29  ;;  %v1575_v24 = vmul.f32 %v5676_v61, %v1522_v58  ;;  %v1651_v10 = vmul.f32 %v5695_v55, %v1522_v58  ;;  %v1537_v11 = vpop.permute.xlu0 %1536 }
 0x178   : > { %v1829_v54 = vmax.f32 %v1797_v19, 0.0  ;;  %v1727_v14 = vmul.f32 %v5722_v37, %v1522_v58  ;;  %v1578_v7 = vmul.f32 %v5676_v61, %v1537_v11  ;;  %v1684_v41 = vadd.f32 %v1652_v23, %v1606_v45  ;;  %v6015_v19 = vld [vmem:[#allocation4 + $0x30] sm:$0xff] }
 0x179   : > { %1865 = vst.msk [vmem:[#allocation3 + $0x48] sm:$0xff] %vm1855_vm2, %v1848_v33  ;;  %v1828_v43 = vmax.f32 %v1796_v21, 0.0  ;;  %v1654_v50 = vmul.f32 %v5695_v55, %v1537_v11  ;;  %v1799_v20 = vadd.f32 %v5735_v13, %v1760_v40  ;;  %v1607_v59 = vadd.f32 %v1575_v24, %v5921_v39 }
 0x17a   : > { %v1532_v42 = vpop.permute.xlu1 %1531  ;;  %v1849_v9 = vmax.f32 %v1827_v22, %v1829_v54  ;;  %v1759_v44 = vadd.f32 %v1727_v14, %v1681_v57  ;;  %v1683_v27 = vadd.f32 %v1651_v10, %v1605_v46  ;;  %v1730_v4 = vmul.f32 %v5722_v37, %v1537_v11  ;;  %v4834_v54 = vld [vmem:[%s6471_s3 + $0x8] sm:$0xff]  }
 0x17b   : > { %v1577_v17 = vmul.f32 %v5676_v61, %v1532_v42  ;;  %v1653_v62 = vmul.f32 %v5695_v55, %v1532_v42  ;;  %v1615_v16 = vpop.permute.xlu0 %1614  ;;  %v1610_v32 = vadd.f32 %v1578_v7, %v5948_v26  ;;  %v1729_v63 = vmul.f32 %v5722_v37, %v1532_v42 }
 0x17c   : > { %1866 = vst.msk [vmem:[#allocation3 + $0x50] sm:$0xff] %vm1855_vm2, %v1849_v9  ;;  %v1798_v53 = vadd.f32 %v5735_v13, %v1759_v44  ;;  %v1656_v6 = vmul.f32 %v5695_v55, %v1615_v16  ;;  %v1831_v39 = vmax.f32 %v1799_v20, 0.0  ;;  %v1686_v3 = vadd.f32 %v1654_v50, %v1608_v56 }
 0x17d   : > { %v1762_v28 = vadd.f32 %v1730_v4, %v1684_v41  ;;  %v1732_v12 = vmul.f32 %v5722_v37, %v1615_v16  ;;  %v1609_v36 = vadd.f32 %v1577_v17, %v5942_v15  ;;  %v1685_v18 = vadd.f32 %v1653_v62, %v1607_v59 }
 0x17e   : > { %v1542_v45 = vpop.permute.xlu1 %1541  ;;  %v1830_v8 = vmax.f32 %v1798_v53, 0.0  ;;  %v1761_v2 = vadd.f32 %v1729_v63, %v1683_v27  ;;  %v6011_v31 = vld [vmem:[#allocation4 + $0x40] sm:$0xff]  ;;  %v1688_v23 = vadd.f32 %v1656_v6, %v1610_v32  ;;  %v1347_v24 = vadd.f32 %v5955_v35, %v5938_v47  ;;  %v4835_v27 = vld [vmem:[%s6471_s3 + $0x60] sm:$0xff]  }
 0x17f   : > { %v1801_v51 = vadd.f32 %v5735_v13, %v1762_v28  ;;  %v1764_v22 = vadd.f32 %v1732_v12, %v1686_v3  ;;  %v1655_v26 = vmul.f32 %v5695_v55, %v1542_v45  ;;  %v1731_v25 = vmul.f32 %v5722_v37, %v1542_v45  ;;  %v1693_v5 = vpop.permute.xlu0 %1692 }
 0x180   : > { %v1880_v49 = vld [vmem:[#allocation3 + $0x40] ss:$2 sm:$0xff]  ;;  %v1896_v38 = vld [vmem:[#allocation3 + $0x41] ss:$2 sm:$0xff]  ;;  %v1850_v29 = vmax.f32 %v1828_v43, %v1830_v8  ;;  %v1579_v58 = vmul.f32 %v5676_v61, %v1542_v45  ;;  %v1734_v15 = vmul.f32 %v5722_v37, %v1693_v5  ;;  %v1800_v34 = vadd.f32 %v5735_v13, %v1761_v2 }
 0x181   : > { %v1907_v46 = vmax.f32 %v1880_v49, %v1896_v38  ;;  %v1833_v57 = vmax.f32 %v1801_v51, 0.0  ;;  %v1803_v33 = vadd.f32 %v5735_v13, %v1764_v22  ;;  %v1763_v10 = vadd.f32 %v1731_v25, %v1685_v18  ;;  %v1941_v51 = vld [vmem:[#allocation4] sm:$0xff]  ;;  %v4836_v38 = vld [vmem:[%s6471_s3 + $0x68] sm:$0xff]  }
 0x182   : > { %v1620_v21 = vpop.permute.xlu1 %1619  ;;  %1867 = vst.msk [vmem:[#allocation3 + $0x58] sm:$0xff] %vm1855_vm2, %v1850_v29  ;;  %v1766_v11 = vadd.f32 %v1734_v15, %v1688_v23  ;;  %v1960_v61 = vpack.c.bf16 %v6011_v31, %v6015_v19  ;;  %v1687_v14 = vadd.f32 %v1655_v26, %v1609_v36  ;;  %v1611_v47 = vadd.f32 %v1579_v58, %v1347_v24  ;;  %v1950_v58 = vld [vmem:[#allocation4 + $0x90] sm:$0xff]  ;;  %v2240_v15 = vld [vmem:[#allocation4 + $0x1] sm:$0xff] }
 0x183   : > { %1937 = vst.msk [vmem:[#allocation4 + $0x51] sm:$0xff] %vm1855_vm2, %v1907_v46  ;;  %v1851_v40 = vmax.f32 %v1831_v39, %v1833_v57  ;;  %v1657_v7 = vmul.f32 %v5695_v55, %v1620_v21  ;;  %v1733_v43 = vmul.f32 %v5722_v37, %v1620_v21  ;;  %v1802_v35 = vadd.f32 %v5735_v13, %v1763_v10  ;;  %v2242_v21 = vld [vmem:[#allocation4 + $0x21] sm:$0xff] }
 0x184   : > { %v1805_v56 = vadd.f32 %v5735_v13, %v1766_v11  ;;  %4512 = vmatmul.mubr.msk.bf16.vlgmr.msra.gmra.mrb[0].mxu0 %vm1855_vm2, %v1960_v61  ;;  %v1832_v41 = vmax.f32 %v1800_v34, 0.0  ;;  %v1835_v50 = vmax.f32 %v1803_v33, 0.0  ;;  %v1951_v5 = vpack.c.bf16 %v5859_v30, %v1941_v51  ;;  %v4837_v30 = vld [vmem:[%s6471_s3 + $0x10] sm:$0xff]   ;;  %v2243_v34 = vld [vmem:[#allocation4 + $0x31] sm:$0xff] }
 0x185   : > { %1868 = vst.msk [vmem:[#allocation3 + $0x60] sm:$0xff] %vm1855_vm2, %v1851_v40  ;;  %v1765_v42 = vadd.f32 %v1733_v43, %v1687_v14  ;;  %4520 = vmatpush3.bf16.msra.mxu0 %v5704_v60  ;;  %v1834_v20 = vmax.f32 %v1802_v35, 0.0  ;;  %v1689_v55 = vadd.f32 %v1657_v7, %v1611_v47  ;;  %v1952_v49 = vpack.c.bf16 %v6015_v19, %v5861_v52  ;;  %v4838_v52 = vld [vmem:[%s6471_s3 + $0x18] sm:$0xff]   ;;  %v2241_v19 = vld [vmem:[#allocation4 + $0x11] sm:$0xff] }
 0x186   : > { %v1698_v9 = vpop.permute.xlu1 %1697  ;;  %v1837_v59 = vmax.f32 %v1805_v56, 0.0  ;;  %4521 = vmatprep.subr.bf16.mxu0 %v4834_v54  ;;  %v2250_v57 = vpack.c.bf16 %v2241_v19, %v2240_v15  ;;  %v2251_v24 = vpack.c.bf16 %v2243_v34, %v2242_v21  ;;  %v2244_v10 = vld [vmem:[#allocation4 + $0x41] sm:$0xff]  ;;  %v4840_v11 = vld [vmem:[%s6471_s3 + $0x48] sm:$0xff]   ;;  %v2356_v43 = vpack.c.bf16 %v2242_v21, %v2241_v19  ;;  %v4849_v51 = vld [vmem:[%s6473_s5 + $0x60] sm:$0xff]  }
 0x187   : > { %v1735_v44 = vmul.f32 %v5722_v37, %v1698_v9  ;;  %v1852_v4 = vmax.f32 %v1832_v41, %v1834_v20  ;;  %v1804_v62 = vadd.f32 %v5735_v13, %v1765_v42  ;;  %v2357_v47 = vpack.c.bf16 %v2244_v10, %v2243_v34  ;;  %v4842_v35 = vld [vmem:[%s6471_s3 + $0x78] sm:$0xff]   ;;  %v4843_v41 = vld [vmem:[%s6471_s3 + $0x20] sm:$0xff]   ;;  %v4844_v9 = vld [vmem:[%s6471_s3 + $0x28] sm:$0xff]   ;;  %4616 = vmatpush3.bf16.msra.mxu1 %v4849_v51 }
 0x188   : > { %v1853_v17 = vmax.f32 %v1835_v50, %v1837_v59  ;;  %v4845_v20 = vld [vmem:[%s6471_s3 + $0x50] sm:$0xff]   ;;  %v2249_v59 = vld [vmem:[#allocation4 + $0x91] sm:$0xff]  ;;  %4617 = vmatprep.subr.bf16.mxu1 %v5005_v1 }
 0x189   : > { %v1767_v16 = vadd.f32 %v1735_v44, %v1689_v55  ;;  %v1882_v53 = vld [vmem:[#allocation3 + $0x50] ss:$2 sm:$0xff]  ;;  %v1898_v32 = vld [vmem:[#allocation3 + $0x51] ss:$2 sm:$0xff]  ;;  %4522 = vmatpush3.bf16.msra.mxu0 %v4834_v54  ;;  %1869 = vst.msk [vmem:[#allocation3 + $0x68] sm:$0xff] %vm1855_vm2, %v1852_v4  ;;  %v1836_v37 = vmax.f32 %v1804_v62, 0.0 }
 0x18a   : > { %v1908_v63 = vmax.f32 %v1882_v53, %v1898_v32  ;;  %1870 = vst.msk [vmem:[#allocation3 + $0x70] sm:$0xff] %vm1855_vm2, %v1853_v17  ;;  %4531 = vmatprep.subr.bf16.mxu0 %v4835_v27  ;;  %v1946_v45 = vld [vmem:[#allocation4 + $0x50] sm:$0xff]  ;;  %v4841_v54 = vld [vmem:[%s6471_s3 + $0x70] sm:$0xff]  }
 0x18b   : > { %v1806_v60 = vadd.f32 %v5735_v13, %v1767_v16  ;;  %v1953_v29 = vpack.c.bf16 %v1946_v45, %v6011_v31  ;;  %v4839_v31 = vld [vmem:[%s6471_s3 + $0x40] sm:$0xff]   ;;  %v2556_v55 = vld [vmem:[#allocation4 + $0x2] sm:$0xff] }
 0x18c   : > { %1938 = vst.msk [vmem:[#allocation4 + $0x61] sm:$0xff] %vm1855_vm2, %v1908_v63  ;;  %v2245_v33 = vld [vmem:[#allocation4 + $0x51] sm:$0xff]  ;;  %v2558_v16 = vld [vmem:[#allocation4 + $0x22] sm:$0xff] }
 0x18d   : > { %v1838_v6 = vmax.f32 %v1806_v60, 0.0  ;;  %v2252_v61 = vpack.c.bf16 %v2245_v33, %v2244_v10  ;;  %v2557_v44 = vld [vmem:[#allocation4 + $0x12] sm:$0xff]  ;;  %v2560_v32 = vld [vmem:[#allocation4 + $0x42] sm:$0xff] }
 0x18e   : > { %v2566_v4 = vpack.c.bf16 %v2557_v44, %v2556_v55  ;;  %v2559_v17 = vld [vmem:[#allocation4 + $0x32] sm:$0xff]  ;;  %v4846_v63 = vld [vmem:[%s6471_s3 + $0x58] sm:$0xff]   ;;  %v4864_v51 = vld [vmem:[%s6473_s5 + $0xd0] sm:$0xff]  }
 0x18f   : > { %v1854_v39 = vmax.f32 %v1836_v37, %v1838_v6  ;;  %v2561_v62 = vld [vmem:[#allocation4 + $0x52] sm:$0xff]  ;;  %v2567_v53 = vpack.c.bf16 %v2559_v17, %v2558_v16 }
 0x190   : > { %v1884_v3 = vld [vmem:[#allocation3 + $0x60] ss:$2 sm:$0xff]  ;;  %v1900_v28 = vld [vmem:[#allocation3 + $0x61] ss:$2 sm:$0xff]  ;;  %v2568_v60 = vpack.c.bf16 %v2561_v62, %v2560_v32  ;;  %v4847_v37 = vld [vmem:[%s6471_s3 + $0x80] sm:$0xff]  }
 0x191   : > { %1871 = vst.msk [vmem:[#allocation3 + $0x78] sm:$0xff] %vm1855_vm2, %v1854_v39  ;;  %v1909_v12 = vmax.f32 %v1884_v3, %v1900_v28  ;;  %v2672_v28 = vpack.c.bf16 %v2558_v16, %v2557_v44 }
 0x193   : > { %v1947_v8 = vld [vmem:[#allocation4 + $0x60] sm:$0xff]  ;;  %1939 = vst.msk [vmem:[#allocation4 + $0x71] sm:$0xff] %vm1855_vm2, %v1909_v12  ;;  %v2673_v12 = vpack.c.bf16 %v2560_v32, %v2559_v17 }
 0x194   : > { %v1961_v36 = vpack.c.bf16 %v1947_v8, %v1946_v45  ;;  %v2246_v14 = vld [vmem:[#allocation4 + $0x61] sm:$0xff]  ;;  %v4848_v45 = vld [vmem:[%s6471_s3 + $0x88] sm:$0xff]  }
 0x195   : > { %v2358_v56 = vpack.c.bf16 %v2246_v14, %v2245_v33  ;;  %v2562_v39 = vld [vmem:[#allocation4 + $0x62] sm:$0xff] }
 0x196   : > { %4515 = vmatprep.mubr.msk.bf16.mxu0 %vm1855_vm2, %v1961_v36 }
 0x198   : > { %v1886_v18 = vld [vmem:[#allocation3 + $0x70] ss:$2 sm:$0xff]  ;;  %v1902_v13 = vld [vmem:[#allocation3 + $0x71] ss:$2 sm:$0xff] }
 0x199   : > { %v1910_v2 = vmax.f32 %v1886_v18, %v1902_v13  ;;  %v2565_v13 = vld [vmem:[#allocation4 + $0x92] sm:$0xff] }
 0x19a   : > { %v1948_v22 = vld [vmem:[#allocation4 + $0x70] sm:$0xff] }
 0x19b   : > { %1940 = vst.msk [vmem:[#allocation4 + $0x81] sm:$0xff] %vm1855_vm2, %v1910_v2  ;;  %v1954_v23 = vpack.c.bf16 %v1948_v22, %v1947_v8  ;;  %v2247_v40 = vld [vmem:[#allocation4 + $0x71] sm:$0xff]  ;;  %v2674_v8 = vpack.c.bf16 %v2562_v39, %v2561_v62 }
 0x19c   : > { %v2253_v7 = vpack.c.bf16 %v2247_v40, %v2246_v14  ;;  %v2563_v6 = vld [vmem:[#allocation4 + $0x72] sm:$0xff] }
 0x19d   : > { %v2569_v3 = vpack.c.bf16 %v2563_v6, %v2562_v39 }
 0x1a2   : > { %v1949_v26 = vld [vmem:[#allocation4 + $0x80] sm:$0xff] }
 0x1a3   : > { %v1962_v25 = vpack.c.bf16 %v1949_v26, %v1948_v22  ;;  %v2146_v46 = vpack.c.bf16 %v1950_v58, %v1949_v26  ;;  %v2248_v50 = vld [vmem:[#allocation4 + $0x81] sm:$0xff] }
 0x1a4   : > { %v2359_v42 = vpack.c.bf16 %v2248_v50, %v2247_v40  ;;  %v2564_v36 = vld [vmem:[#allocation4 + $0x82] sm:$0xff] }
 0x1a5   : > { %4516 = vmatmul.mubr.msk.bf16.gmra.mrb[4].mxu0 %vm1855_vm2, %v1962_v25  ;;  %v2675_v18 = vpack.c.bf16 %v2564_v36, %v2563_v6  ;;  %v2778_v2 = vpack.c.bf16 %v2565_v13, %v2564_v36  ;;  %v4851_v22 = vld [vmem:[%s6473_s5 + $0x70] sm:$0xff]   ;;  %v4852_v26 = vld [vmem:[%s6473_s5 + $0x78] sm:$0xff]   ;;  %v4239_v25 = vld [vmem:[%s6472_s4] ss:$0 sm:$0xff] }
 0x1a6   : > { %4523 = vmatprep.mubr.msk.bf16.mxu0 %vm1855_vm2, %v1951_v5  ;;  %v4858_v6 = vld [vmem:[%s6473_s5] sm:$0xff]  }
 0x1ad   : > { %4524 = vmatmul.mubr.msk.bf16.vlgmr.msra.gmra.mrb[0].mxu0 %vm1855_vm2, %v1952_v49 }
 0x1ae   : > { %4532 = vmatpush3.bf16.msra.mxu0 %v4835_v27  ;;  %4527 = vmatprep.mubr.msk.bf16.mxu0 %vm1855_vm2, %v1953_v29  ;;  %v2462_v27 = vpack.c.bf16 %v2249_v59, %v2248_v50 }
 0x1af   : > { %4533 = vmatprep.subr.bf16.mxu0 %v4836_v38 }
 0x1b2   : > { %4534 = vmatpush3.bf16.msra.mxu0 %v4836_v38 }
 0x1b3   : > { %4543 = vmatprep.subr.bf16.mxu0 %v4837_v30 }
 0x1b5   : > { %4528 = vmatmul.mubr.msk.bf16.gmra.mrb[4].mxu0 %vm1855_vm2, %v1954_v23 }
 0x1b6   : > { %4535 = vmatprep.mubr.msk.bf16.mxu0 %vm1855_vm2, %v1952_v49 }
 0x1bd   : > { %4536 = vmatmul.mubr.msk.bf16.vlgmr.msra.gmra.mrb[0].mxu0 %vm1855_vm2, %v1953_v29 }
 0x1be   : > { %4544 = vmatpush3.bf16.msra.mxu0 %v4837_v30  ;;  %4539 = vmatprep.mubr.msk.bf16.mxu0 %vm1855_vm2, %v1954_v23 }
 0x1bf   : > { %4545 = vmatprep.subr.bf16.mxu0 %v4838_v52 }
 0x1c2   : > { %4546 = vmatpush3.bf16.msra.mxu0 %v4838_v52 }
 0x1c3   : > { %4555 = vmatprep.subr.bf16.mxu0 %v4839_v31 }
 0x1c5   : > { %4540 = vmatmul.mubr.msk.bf16.gmra.mrb[4].mxu0 %vm1855_vm2, %v2146_v46 }
 0x1c6   : > { %4547 = vmatprep.mubr.msk.bf16.mxu0 %vm1855_vm2, %v2250_v57 }
 0x1cd   : > { %4548 = vmatmul.mubr.msk.bf16.vlgmr.msra.gmra.mrb[0].mxu0 %vm1855_vm2, %v2251_v24 }
 0x1ce   : > { %4556 = vmatpush3.bf16.msra.mxu0 %v4839_v31  ;;  %4551 = vmatprep.mubr.msk.bf16.mxu0 %vm1855_vm2, %v2252_v61 }
 0x1cf   : > { %4557 = vmatprep.subr.bf16.mxu0 %v4840_v11 }
 0x1d2   : > { %4558 = vmatpush3.bf16.msra.mxu0 %v4840_v11 }
 0x1d3   : > { %4567 = vmatprep.subr.bf16.mxu0 %v4841_v54 }
 0x1d5   : > { %4552 = vmatmul.mubr.msk.bf16.gmra.mrb[4].mxu0 %vm1855_vm2, %v2253_v7 }
 0x1d6   : > { %4559 = vmatprep.mubr.msk.bf16.mxu0 %vm1855_vm2, %v2356_v43 }
 0x1dd   : > { %4560 = vmatmul.mubr.msk.bf16.vlgmr.msra.gmra.mrb[0].mxu0 %vm1855_vm2, %v2357_v47 }
 0x1de   : > { %4568 = vmatpush3.bf16.msra.mxu0 %v4841_v54  ;;  %4563 = vmatprep.mubr.msk.bf16.mxu0 %vm1855_vm2, %v2358_v56 }
 0x1df   : > { %4569 = vmatprep.subr.bf16.mxu0 %v4842_v35 }
 0x1e2   : > { %4570 = vmatpush3.bf16.msra.mxu0 %v4842_v35 }
 0x1e3   : > { %4579 = vmatprep.subr.bf16.mxu0 %v4843_v41 }
 0x1e5   : > { %4564 = vmatmul.mubr.msk.bf16.gmra.mrb[4].mxu0 %vm1855_vm2, %v2359_v42 }
 0x1e6   : > { %4571 = vmatprep.mubr.msk.bf16.mxu0 %vm1855_vm2, %v2251_v24 }
 0x1ed   : > { %4572 = vmatmul.mubr.msk.bf16.vlgmr.msra.gmra.mrb[0].mxu0 %vm1855_vm2, %v2252_v61 }
 0x1ee   : > { %4580 = vmatpush3.bf16.msra.mxu0 %v4843_v41  ;;  %4575 = vmatprep.mubr.msk.bf16.mxu0 %vm1855_vm2, %v2253_v7 }
 0x1ef   : > { %4581 = vmatprep.subr.bf16.mxu0 %v4844_v9 }
 0x1f2   : > { %4582 = vmatpush3.bf16.msra.mxu0 %v4844_v9 }
 0x1f3   : > { %4591 = vmatprep.subr.bf16.mxu0 %v4845_v20 }
 0x1f5   : > { %4576 = vmatmul.mubr.msk.bf16.gmra.mrb[4].mxu0 %vm1855_vm2, %v2462_v27 }
 0x1f6   : > { %4583 = vmatprep.mubr.msk.bf16.mxu0 %vm1855_vm2, %v2566_v4 }
 0x1fd   : > { %4584 = vmatmul.mubr.msk.bf16.vlgmr.msra.gmra.mrb[0].mxu0 %vm1855_vm2, %v2567_v53 }
 0x1fe   : > { %4592 = vmatpush3.bf16.msra.mxu0 %v4845_v20  ;;  %4587 = vmatprep.mubr.msk.bf16.mxu0 %vm1855_vm2, %v2568_v60 }
 0x1ff   : > { %4593 = vmatprep.subr.bf16.mxu0 %v4846_v63 }
 0x202   : > { %4594 = vmatpush3.bf16.msra.mxu0 %v4846_v63 }
 0x203   : > { %4603 = vmatprep.subr.bf16.mxu0 %v4847_v37 }
 0x205   : > { %4588 = vmatmul.mubr.msk.bf16.gmra.mrb[4].mxu0 %vm1855_vm2, %v2569_v3 }
 0x206   : > { %4595 = vmatprep.mubr.msk.bf16.mxu0 %vm1855_vm2, %v2672_v28  ;;  %v4860_v28 = vld [vmem:[%s6473_s5 + $0x10] sm:$0xff]  }
 0x20d   : > { %4596 = vmatmul.mubr.msk.bf16.vlgmr.msra.gmra.mrb[0].mxu0 %vm1855_vm2, %v2673_v12  ;;  %v2936_v12 = vld [vmem:[#allocation6] sm:$0xf] }
 0x20e   : > { %4604 = vmatpush3.bf16.msra.mxu0 %v4847_v37  ;;  %4599 = vmatprep.mubr.msk.bf16.mxu0 %vm1855_vm2, %v2674_v8 }
 0x20f   : > { %4605 = vmatprep.subr.bf16.mxu0 %v4848_v45 }
 0x212   : > { %4606 = vmatpush3.bf16.msra.mxu0 %v4848_v45  ;;  %v4861_v45 = vld [vmem:[%s6473_s5 + $0x18] sm:$0xff]  }
 0x215   : > { %4600 = vmatmul.mubr.msk.bf16.gmra.mrb[4].mxu0 %vm1855_vm2, %v2675_v18  ;;  %v4862_v18 = vld [vmem:[%s6473_s5 + $0xc0] sm:$0xff]  }
 0x216   : > { %4607 = vmatprep.mubr.msk.bf16.mxu0 %vm1855_vm2, %v2567_v53 }
 0x21d   : > { %4608 = vmatmul.mubr.msk.bf16.vlgmr.msra.gmra.mrb[0].mxu0 %vm1855_vm2, %v2568_v60 }
 0x21e   : > { %4611 = vmatprep.mubr.msk.bf16.mxu0 %vm1855_vm2, %v2569_v3  ;;  %v4859_v3 = vld [vmem:[%s6473_s5 + $0x8] sm:$0xff]  }
 0x225   : > { %4612 = vmatmul.mubr.msk.bf16.gmra.mrb[4].mxu0 %vm1855_vm2, %v2778_v2  ;;  %v4863_v2 = vld [vmem:[%s6473_s5 + $0xc8] sm:$0xff]  }
 0x226   : > { %3894 = vmatprep.mubr.bf16.mxu0 %v5004_v0  ;;  %v4850_v0 = vld [vmem:[%s6473_s5 + $0x68] sm:$0xff]  }
 0x227   : > { %4618 = vmatpush3.bf16.msra.mxu1 %v4850_v0  ;;  %v2941_v0 = vld [vmem:[#allocation6 + $0x28] sm:$0xf] }
 0x228   : > { %4619 = vmatprep.subr.bf16.mxu1 %v5005_v1 }
 0x22b   : > { %4620 = vmatpush3.bf16.msra.mxu1 %v4851_v22  ;;  %v4865_v22 = vld [vmem:[%s6473_s5 + $0xd8] sm:$0xff]  }
 0x22c   : > { %4621 = vmatprep.subr.bf16.mxu1 %v5005_v1 }
 0x22f   : > { %4622 = vmatpush3.bf16.msra.mxu1 %v4852_v26 }
 0x230   : > { %4627 = vmatprep.subr.bf16.mxu1 %v5005_v1 }
 0x2f0   : > { %v4609_v5 = vpop.f32.mrb[0].mxu0 }
 0x2f1   : > { %v2881_v49 = vadd.f32 %v4609_v5, %v4239_v25  ;;  %v2833_v38 = vpop.f32.mrb[1].mxu0 }
 0x2f2   : > { %v2879_v29 = vadd.f32 %v4239_v25, %v2833_v38  ;;  %v4610_v30 = vpop.f32.mrb[2].mxu0  ;;  %v4868_v38 = vld [vmem:[%s6473_s5 + $0x30] sm:$0xff]  }
 0x2f3   : > { %v2882_v23 = vadd.f32 %v4610_v30, %v4239_v25  ;;  %v2836_v52 = vpop.f32.mrb[3].mxu0  ;;  %v2889_v58 = vmax.f32 %v2881_v49, 0.0  ;;  %v4867_v49 = vld [vmem:[%s6473_s5 + $0x28] sm:$0xff]   ;;  %v3193_v30 = vld [vmem:[#allocation6 + $0x1] sm:$0xf] }
 0x2f4   : > { %v2880_v31 = vadd.f32 %v4239_v25, %v2836_v52  ;;  %v2887_v19 = vmax.f32 %v2879_v29, 0.0 }
 0x2f5   : > { %v2890_v15 = vmax.f32 %v2882_v23, 0.0  ;;  %v4869_v23 = vld [vmem:[%s6473_s5 + $0x38] sm:$0xff]  }
 0x2f6   : > { %v2888_v46 = vmax.f32 %v2880_v31, 0.0 }
 0x2f7   : > { %v2896_v57 = vmax.f32 %v2889_v58, %v2890_v15 }
 0x2f8   : > { %v2895_v34 = vmax.f32 %v2887_v19, %v2888_v46  ;;  %v4613_v33 = vpop.f32.mrb[4].mxu0  ;;  %v4872_v19 = vld [vmem:[%s6473_s5 + $0x80] sm:$0xff]  }
 0x2f9   : > { %2901 = vst.msk [vmem:[#allocation5 + $0x8] sm:$0xff] %vm2899_vm6, %v2896_v57  ;;  %v2885_v21 = vadd.f32 %v4613_v33, %v4239_v25  ;;  %v2849_v24 = vpop.f32.mrb[5].mxu0  ;;  %v4873_v57 = vld [vmem:[%s6473_s5 + $0x88] sm:$0xff]  }
 0x2fa   : > { %2900 = vst.msk [vmem:[#allocation5] sm:$0xff] %vm2899_vm6, %v2895_v34  ;;  %v2883_v10 = vadd.f32 %v4239_v25, %v2849_v24  ;;  %v4614_v11 = vpop.f32.mrb[6].mxu0  ;;  %v4874_v34 = vld [vmem:[%s6473_s5 + $0x90] sm:$0xff]  }
 0x2fb   : > { %v2886_v61 = vadd.f32 %v4614_v11, %v4239_v25  ;;  %v2852_v54 = vpop.f32.mrb[7].mxu0  ;;  %v2893_v14 = vmax.f32 %v2885_v21, 0.0  ;;  %v4875_v21 = vld [vmem:[%s6473_s5 + $0x98] sm:$0xff]   ;;  %v4878_v11 = vld [vmem:[%s6473_s5 + $0xe0] sm:$0xff]  }
 0x2fc   : > { %v2884_v40 = vadd.f32 %v4239_v25, %v2852_v54  ;;  %v2891_v43 = vmax.f32 %v2883_v10, 0.0  ;;  %v4866_v25 = vld [vmem:[%s6473_s5 + $0x20] sm:$0xff]   ;;  %v4879_v54 = vld [vmem:[%s6473_s5 + $0xe8] sm:$0xff]  }
 0x2fd   : > { %v2894_v7 = vmax.f32 %v2886_v61, 0.0 }
 0x2fe   : > { %v2892_v47 = vmax.f32 %v2884_v40, 0.0  ;;  %v4880_v40 = vld [vmem:[%s6473_s5 + $0xf0] sm:$0xff]  }
 0x2ff   : > { %v2898_v35 = vmax.f32 %v2893_v14, %v2894_v7  ;;  %v3198_v14 = vld [vmem:[#allocation6 + $0x29] sm:$0xf] }
 0x300   : > { %v2906_v56 = vld [vmem:[#allocation5 + $0x8] ss:$2 sm:$0xf]  ;;  %v2914_v41 = vld [vmem:[#allocation5 + $0x9] ss:$2 sm:$0xf]  ;;  %v2897_v50 = vmax.f32 %v2891_v43, %v2892_v47 }
 0x301   : > { %v2920_v42 = vmax.f32 %v2906_v56, %v2914_v41  ;;  %v2904_v9 = vld [vmem:[#allocation5] ss:$2 sm:$0xf]  ;;  %v2912_v20 = vld [vmem:[#allocation5 + $0x1] ss:$2 sm:$0xf] }
 0x302   : > { %2903 = vst.msk [vmem:[#allocation5 + $0x18] sm:$0xff] %vm2899_vm6, %v2898_v35  ;;  %v2919_v59 = vmax.f32 %v2904_v9, %v2912_v20  ;;  %2902 = vst.msk [vmem:[#allocation5 + $0x10] sm:$0xff] %vm2899_vm6, %v2897_v50  ;;  %v4881_v7 = vld [vmem:[%s6473_s5 + $0xf8] sm:$0xff]   ;;  %v4883_v47 = vld [vmem:[%s6473_s5 + $0x40] sm:$0xff]  }
 0x303   : > { %2933 = vst.msk [vmem:[#allocation6 + $0x11] sm:$0xf] %vm2931_vm7, %v2920_v42  ;;  %v4884_v56 = vld [vmem:[%s6473_s5 + $0x48] sm:$0xff]   ;;  %v4885_v41 = vld [vmem:[%s6473_s5 + $0x50] sm:$0xff]   ;;  %v4886_v9 = vld [vmem:[%s6473_s5 + $0x58] sm:$0xff]  }
 0x304   : > { %2932 = vst.msk [vmem:[#allocation6 + $0x9] sm:$0xf] %vm2931_vm7, %v2919_v59  ;;  %v3455_v42 = vld [vmem:[#allocation6 + $0x2] sm:$0xf] }
 0x309   : > { %v2910_v55 = vld [vmem:[#allocation5 + $0x18] ss:$2 sm:$0xf]  ;;  %v2918_v44 = vld [vmem:[#allocation5 + $0x19] ss:$2 sm:$0xf] }
 0x30a   : > { %v2922_v27 = vmax.f32 %v2910_v55, %v2918_v44  ;;  %v2908_v4 = vld [vmem:[#allocation5 + $0x10] ss:$2 sm:$0xf]  ;;  %v2916_v17 = vld [vmem:[#allocation5 + $0x11] ss:$2 sm:$0xf] }
 0x30b   : > { %v2921_v62 = vmax.f32 %v2908_v4, %v2916_v17  ;;  %v2937_v16 = vld [vmem:[#allocation6 + $0x8] sm:$0xf]  ;;  %v2938_v53 = vld [vmem:[#allocation6 + $0x10] sm:$0xf]  ;;  %v4890_v17 = vld [vmem:[%s6473_s5 + $0xa8] sm:$0xff]  }
 0x30c   : > { %2935 = vst.msk [vmem:[#allocation6 + $0x21] sm:$0xf] %vm2931_vm7, %v2922_v27  ;;  %v2960_v60 = vcombine.low %v2937_v16, %v2938_v53  ;;  %v2946_v36 = vcombine.low %v2936_v12, %v2937_v16  ;;  %v3194_v52 = vld [vmem:[#allocation6 + $0x9] sm:$0xf]  ;;  %v3195_v31 = vld [vmem:[#allocation6 + $0x11] sm:$0xf] }
 0x30d   : > { %2934 = vst.msk [vmem:[#allocation6 + $0x19] sm:$0xf] %vm2931_vm7, %v2921_v62  ;;  %v3203_v15 = vcombine.low %v3193_v30, %v3194_v52  ;;  %v3288_v10 = vcombine.low %v3194_v52, %v3195_v31  ;;  %v3456_v20 = vld [vmem:[#allocation6 + $0xa] sm:$0xf]  ;;  %v3457_v59 = vld [vmem:[#allocation6 + $0x12] sm:$0xf] }
 0x30e   : > { %v3465_v44 = vcombine.low %v3455_v42, %v3456_v20  ;;  %v4889_v27 = vld [vmem:[%s6473_s5 + $0xa0] sm:$0xff]   ;;  %v4891_v62 = vld [vmem:[%s6473_s5 + $0xb0] sm:$0xff]  }
 0x30f   : > { %v4909_v52 = vld [vmem:[%s6475_s7 + $0x30] ss:$8 sps:$4 sm:$0xff]  }
 0x313   : > { %v2940_v32 = vld [vmem:[#allocation6 + $0x20] sm:$0xf] }
 0x314   : > { %v2939_v63 = vld [vmem:[#allocation6 + $0x18] sm:$0xf]  ;;  %v3111_v26 = vcombine.low %v2940_v32, %v2941_v0  ;;  %v3197_v33 = vld [vmem:[#allocation6 + $0x21] sm:$0xf] }
 0x315   : > { %v2961_v37 = vcombine.low %v2939_v63, %v2940_v32  ;;  %v2947_v8 = vcombine.low %v2938_v53, %v2939_v63  ;;  %v3196_v29 = vld [vmem:[#allocation6 + $0x19] sm:$0xf]  ;;  %v3373_v43 = vcombine.low %v3197_v33, %v3198_v14  ;;  %v3459_v16 = vld [vmem:[#allocation6 + $0x22] sm:$0xf]  ;;  %v4892_v53 = vld [vmem:[%s6473_s5 + $0xb8] sm:$0xff]   ;;  %v3550_v63 = vcombine.low %v3456_v20, %v3457_v59 }
 0x316   : > { %v3204_v58 = vcombine.low %v3195_v31, %v3196_v29  ;;  %v3289_v24 = vcombine.low %v3196_v29, %v3197_v33  ;;  %v3458_v50 = vld [vmem:[#allocation6 + $0x1a] sm:$0xf]  ;;  %v4905_v0 = vld [vmem:[%s6475_s7 + $0x14] ss:$8 sps:$4 sm:$0xff]  }
 0x317   : > { %v2964_v39 = vpack.c.bf16 %v2961_v37, %v2960_v60  ;;  %v2950_v13 = vpack.c.bf16 %v2947_v8, %v2946_v36  ;;  %v3113_v5 = vpack.c.bf16 %v3111_v26, %v2947_v8  ;;  %v3466_v55 = vcombine.low %v3457_v59, %v3458_v50  ;;  %v4895_v60 = vld [vmem:[%s6473_s5 + $0x100] sm:$0xff]   ;;  %v4923_v33 = vld [vmem:[%s6475_s7 + $0x74] ss:$8 sps:$4 sm:$0xff]  }
 0x318   : > { %v3207_v46 = vpack.c.bf16 %v3204_v58, %v3203_v15  ;;  %v3292_v61 = vpack.c.bf16 %v3289_v24, %v3288_v10  ;;  %v3375_v35 = vpack.c.bf16 %v3373_v43, %v3204_v58  ;;  %v3551_v32 = vcombine.low %v3458_v50, %v3459_v16  ;;  %v4914_v31 = vld [vmem:[%s6475_s7 + $0x44] ss:$8 sps:$4 sm:$0xff]   ;;  %v4912_v58 = vld [vmem:[%s6475_s7 + $0x40] ss:$8 sps:$4 sm:$0xff]   ;;  %v4917_v15 = vld [vmem:[%s6475_s7 + $0x54] ss:$8 sps:$4 sm:$0xff]  }
 0x319   : > { %4624 = vmatmul.mubr.msk.bf16.vlgmr.msra.gmra.mrb[0].mxu1 %vm2899_vm6, %v2964_v39  ;;  %v3469_v4 = vpack.c.bf16 %v3466_v55, %v3465_v44  ;;  %v4897_v39 = vld [vmem:[%s6473_s5 + $0x110] sm:$0xff]   ;;  %v4924_v10 = vld [vmem:[%s6477_s9 + $0x40] sm:$0xff]   ;;  %v4927_v43 = vld [vmem:[%s6477_s9 + $0x8] sm:$0xff]  }
 0x31a   : > { %4628 = vmatpush3.bf16.msra.mxu1 %v4858_v6  ;;  %4635 = vmatprep.mubr.msk.bf16.mxu1 %vm5006_vm5, %v5005_v1  ;;  %v3554_v37 = vpack.c.bf16 %v3551_v32, %v3550_v63  ;;  %v4896_v6 = vld [vmem:[%s6473_s5 + $0x108] sm:$0xff]   ;;  %v4932_v50 = vld [vmem:[%s6477_s9 + $0x60] sm:$0xff]  }
 0x31b   : > { %4629 = vmatprep.subr.bf16.mxu1 %v5005_v1 }
 0x31e   : > { %4630 = vmatpush3.bf16.msra.mxu1 %v4859_v3  ;;  %v3460_v3 = vld [vmem:[#allocation6 + $0x2a] sm:$0xf] }
 0x31f   : > { %4631 = vmatprep.subr.bf16.mxu1 %v5005_v1  ;;  %v3635_v12 = vcombine.low %v3459_v16, %v3460_v3 }
 0x322   : > { %4632 = vmatpush3.bf16.msra.mxu1 %v4860_v28  ;;  %v4898_v28 = vld [vmem:[%s6473_s5 + $0x118] sm:$0xff]  }
 0x323   : > { %4633 = vmatprep.subr.bf16.mxu1 %v5005_v1 }
 0x326   : > { %4634 = vmatpush3.bf16.msra.mxu1 %v4861_v45  ;;  %v3637_v45 = vpack.c.bf16 %v3635_v12, %v3466_v55  ;;  %v4934_v55 = vld [vmem:[%s6477_s9 + $0x68] sm:$0xff]  }
 0x327   : > { %4639 = vmatprep.subr.bf16.mxu1 %v5005_v1 }
 0x329   : > { %4636 = vmatmul.mubr.msk.bf16.vlgmr.msra.gmra.mrb[4].mxu1 %vm2899_vm6, %v2950_v13 }
 0x32a   : > { %4640 = vmatpush3.bf16.msra.mxu1 %v4862_v18  ;;  %4647 = vmatprep.mubr.msk.bf16.mxu1 %vm5006_vm5, %v5005_v1 }
 0x32b   : > { %4641 = vmatprep.subr.bf16.mxu1 %v5005_v1 }
 0x32e   : > { %4642 = vmatpush3.bf16.msra.mxu1 %v4863_v2  ;;  %v4902_v2 = vld [vmem:[%s6475_s7 + $0x4] ss:$8 sps:$4 sm:$0xff]  }
 0x32f   : > { %4643 = vmatprep.subr.bf16.mxu1 %v5005_v1  ;;  %3862 = vmatprep.subr.bf16.mxu0 %v4902_v2 }
 0x332   : > { %4644 = vmatpush3.bf16.msra.mxu1 %v4864_v51  ;;  %v4900_v51 = vld [vmem:[%s6475_s7] ss:$8 sps:$4 sm:$0xff]  }
 0x333   : > { %4645 = vmatprep.subr.bf16.mxu1 %v5005_v1  ;;  %3863 = vmatpush1.bf16.msra.mxu0 %v4900_v51 }
 0x334   : > { %3864 = vmatprep.subr.bf16.mxu0 %v4905_v0 }
 0x336   : > { %4646 = vmatpush3.bf16.msra.mxu1 %v4865_v22  ;;  %v4908_v22 = vld [vmem:[%s6475_s7 + $0x24] ss:$8 sps:$4 sm:$0xff]  }
 0x337   : > { %4651 = vmatprep.subr.bf16.mxu1 %v5005_v1 }
 0x339   : > { %4648 = vmatmul.mubr.msk.bf16.vlgmr.msra.gmra.mrb[8].mxu1 %vm2899_vm6, %v3113_v5 }
 0x33a   : > { %4652 = vmatpush3.bf16.msra.mxu1 %v4866_v25  ;;  %4659 = vmatprep.mubr.msk.bf16.mxu1 %vm5006_vm5, %v5005_v1  ;;  %v4906_v25 = vld [vmem:[%s6475_s7 + $0x20] ss:$8 sps:$4 sm:$0xff]  }
 0x33b   : > { %4653 = vmatprep.subr.bf16.mxu1 %v5005_v1 }
 0x33e   : > { %4654 = vmatpush3.bf16.msra.mxu1 %v4867_v49 }
 0x33f   : > { %4655 = vmatprep.subr.bf16.mxu1 %v5005_v1 }
 0x342   : > { %4656 = vmatpush3.bf16.msra.mxu1 %v4868_v38  ;;  %v4911_v38 = vld [vmem:[%s6475_s7 + $0x34] ss:$8 sps:$4 sm:$0xff]  }
 0x343   : > { %4657 = vmatprep.subr.bf16.mxu1 %v5005_v1 }
 0x346   : > { %4658 = vmatpush3.bf16.msra.mxu1 %v4869_v23 }
 0x347   : > { %4663 = vmatprep.subr.bf16.mxu1 %v5005_v1 }
 0x349   : > { %4660 = vmatmul.mubr.msk.bf16.vlgmr.msra.gmra.mrb[12].mxu1 %vm2899_vm6, %v3207_v46  ;;  %v4920_v46 = vld [vmem:[%s6475_s7 + $0x64] ss:$8 sps:$4 sm:$0xff]  }
 0x34a   : > { %4664 = vmatpush3.bf16.msra.mxu1 %v4872_v19  ;;  %4671 = vmatprep.mubr.msk.bf16.mxu1 %vm5006_vm5, %v5005_v1  ;;  %v4915_v19 = vld [vmem:[%s6475_s7 + $0x50] ss:$8 sps:$4 sm:$0xff]  }
 0x34b   : > { %4665 = vmatprep.subr.bf16.mxu1 %v5005_v1 }
 0x34e   : > { %4666 = vmatpush3.bf16.msra.mxu1 %v4873_v57 }
 0x34f   : > { %4667 = vmatprep.subr.bf16.mxu1 %v5005_v1 }
 0x352   : > { %4668 = vmatpush3.bf16.msra.mxu1 %v4874_v34  ;;  %v4918_v34 = vld [vmem:[%s6475_s7 + $0x60] ss:$8 sps:$4 sm:$0xff]  }
 0x353   : > { %4669 = vmatprep.subr.bf16.mxu1 %v5005_v1 }
 0x356   : > { %4670 = vmatpush3.bf16.msra.mxu1 %v4875_v21 }
 0x357   : > { %4675 = vmatprep.subr.bf16.mxu1 %v5005_v1 }
 0x359   : > { %4672 = vmatmul.mubr.msk.bf16.vlgmr.msra.gmra.mrb[16].mxu1 %vm2899_vm6, %v3292_v61  ;;  %v4926_v61 = vld [vmem:[%s6477_s9 + $0x48] sm:$0xff]  }
 0x35a   : > { %4676 = vmatpush3.bf16.msra.mxu1 %v4878_v11  ;;  %4683 = vmatprep.mubr.msk.bf16.mxu1 %vm5006_vm5, %v5005_v1  ;;  %v4925_v11 = vld [vmem:[%s6477_s9] sm:$0xff]  }
 0x35b   : > { %4677 = vmatprep.subr.bf16.mxu1 %v5005_v1 }
 0x35e   : > { %4678 = vmatpush3.bf16.msra.mxu1 %v4879_v54 }
 0x35f   : > { %4679 = vmatprep.subr.bf16.mxu1 %v5005_v1 }
 0x362   : > { %4680 = vmatpush3.bf16.msra.mxu1 %v4880_v40 }
 0x363   : > { %4681 = vmatprep.subr.bf16.mxu1 %v5005_v1 }
 0x366   : > { %4682 = vmatpush3.bf16.msra.mxu1 %v4881_v7  ;;  %v4921_v7 = vld [vmem:[%s6475_s7 + $0x70] ss:$8 sps:$4 sm:$0xff]  }
 0x367   : > { %4687 = vmatprep.subr.bf16.mxu1 %v5005_v1 }
 0x369   : > { %4684 = vmatmul.mubr.msk.bf16.vlgmr.msra.gmra.mrb[20].mxu1 %vm2899_vm6, %v3375_v35  ;;  %v4929_v35 = vld [vmem:[%s6477_s9 + $0x10] sm:$0xff]  }
 0x36a   : > { %4688 = vmatpush3.bf16.msra.mxu1 %v4883_v47  ;;  %4695 = vmatprep.mubr.msk.bf16.mxu1 %vm5006_vm5, %v5005_v1  ;;  %v4928_v47 = vld [vmem:[%s6477_s9 + $0x50] sm:$0xff]  }
 0x36b   : > { %4689 = vmatprep.subr.bf16.mxu1 %v5005_v1 }
 0x36e   : > { %4690 = vmatpush3.bf16.msra.mxu1 %v4884_v56  ;;  %v4930_v56 = vld [vmem:[%s6477_s9 + $0x58] sm:$0xff]  }
 0x36f   : > { %4691 = vmatprep.subr.bf16.mxu1 %v5005_v1 }
 0x372   : > { %4692 = vmatpush3.bf16.msra.mxu1 %v4885_v41  ;;  %v4931_v41 = vld [vmem:[%s6477_s9 + $0x18] sm:$0xff]  }
 0x373   : > { %4693 = vmatprep.subr.bf16.mxu1 %v5005_v1 }
 0x376   : > { %4694 = vmatpush3.bf16.msra.mxu1 %v4886_v9  ;;  %v4933_v9 = vld [vmem:[%s6477_s9 + $0x20] sm:$0xff]  }
 0x377   : > { %4699 = vmatprep.subr.bf16.mxu1 %v5005_v1 }
 0x379   : > { %4696 = vmatmul.mubr.msk.bf16.vlgmr.msra.gmra.mrb[24].mxu1 %vm2899_vm6, %v3469_v4 }
 0x37a   : > { %4700 = vmatpush3.bf16.msra.mxu1 %v4889_v27  ;;  %4707 = vmatprep.mubr.msk.bf16.mxu1 %vm5006_vm5, %v5005_v1 }
 0x37b   : > { %4701 = vmatprep.subr.bf16.mxu1 %v5005_v1 }
 0x37e   : > { %4702 = vmatpush3.bf16.msra.mxu1 %v4890_v17  ;;  %v4935_v17 = vld [vmem:[%s6477_s9 + $0x28] sm:$0xff]  }
 0x37f   : > { %4703 = vmatprep.subr.bf16.mxu1 %v5005_v1 }
 0x382   : > { %4704 = vmatpush3.bf16.msra.mxu1 %v4891_v62 }
 0x383   : > { %4705 = vmatprep.subr.bf16.mxu1 %v5005_v1 }
 0x386   : > { %4706 = vmatpush3.bf16.msra.mxu1 %v4892_v53 }
 0x387   : > { %4711 = vmatprep.subr.bf16.mxu1 %v5005_v1 }
 0x389   : > { %4708 = vmatmul.mubr.msk.bf16.vlgmr.msra.gmra.mrb[28].mxu1 %vm2899_vm6, %v3554_v37 }
 0x38a   : > { %4712 = vmatpush3.bf16.msra.mxu1 %v4895_v60  ;;  %4719 = vmatprep.mubr.msk.bf16.mxu1 %vm5006_vm5, %v5005_v1 }
 0x38b   : > { %4713 = vmatprep.subr.bf16.mxu1 %v5005_v1 }
 0x38e   : > { %4714 = vmatpush3.bf16.msra.mxu1 %v4896_v6 }
 0x38f   : > { %4715 = vmatprep.subr.bf16.mxu1 %v5005_v1 }
 0x392   : > { %4716 = vmatpush3.bf16.msra.mxu1 %v4897_v39 }
 0x393   : > { %4717 = vmatprep.subr.bf16.mxu1 %v5005_v1  ;;  %v4903_v1 = vld [vmem:[%s6475_s7 + $0x10] ss:$8 sps:$4 sm:$0xff]  }
 0x394   : > { %3865 = vmatpush1.bf16.msra.mxu0 %v4903_v1 }
 0x395   : > { %3866 = vmatprep.subr.bf16.mxu0 %v4908_v22 }
 0x396   : > { %4718 = vmatpush3.bf16.msra.mxu1 %v4898_v28 }
 0x397   : > { %4485 = vmatprep.subr.bf16.mxu1 %v4924_v10 }
 0x398   : > { %3867 = vmatpush1.bf16.msra.mxu0 %v4906_v25 }
 0x399   : > { %4720 = vmatmul.mubr.msk.bf16.vlgmr.msra.gmra.mrb[32].mxu1 %vm2899_vm6, %v3637_v45  ;;  %3868 = vmatprep.subr.bf16.mxu0 %v4911_v38 }
 0x39a   : > { %4486 = vmatpush3.bf16.msra.mxu1 %v4925_v11 }
 0x39b   : > { %4487 = vmatprep.subr.bf16.mxu1 %v4926_v61 }
 0x39c   : > { %3869 = vmatpush1.bf16.msra.mxu0 %v4909_v52 }
 0x39d   : > { %3870 = vmatprep.subr.bf16.mxu0 %v4914_v31 }
 0x39e   : > { %4488 = vmatpush3.bf16.msra.mxu1 %v4927_v43 }
 0x39f   : > { %4489 = vmatprep.subr.bf16.mxu1 %v4928_v47 }
 0x3a0   : > { %3871 = vmatpush1.bf16.msra.mxu0 %v4912_v58 }
 0x3a1   : > { %3872 = vmatprep.subr.bf16.mxu0 %v4917_v15 }
 0x3a2   : > { %4490 = vmatpush3.bf16.msra.mxu1 %v4929_v35  ;;  %v4936_v35 = vld [vmem:[%s6477_s9 + $0x70] sm:$0xff]  }
 0x3a3   : > { %4491 = vmatprep.subr.bf16.mxu1 %v4930_v56  ;;  %v4937_v56 = vld [vmem:[%s6477_s9 + $0x30] sm:$0xff]  }
 0x3a4   : > { %3873 = vmatpush1.bf16.msra.mxu0 %v4915_v19 }
 0x3a5   : > { %3874 = vmatprep.subr.bf16.mxu0 %v4920_v46 }
 0x3a6   : > { %4492 = vmatpush3.bf16.msra.mxu1 %v4931_v41  ;;  %v4938_v41 = vld [vmem:[%s6477_s9 + $0x78] sm:$0xff]  }
 0x3a7   : > { %4493 = vmatprep.subr.bf16.mxu1 %v4932_v50  ;;  %v4939_v50 = vld [vmem:[%s6477_s9 + $0x38] sm:$0xff]  }
 0x3a8   : > { %3875 = vmatpush1.bf16.msra.mxu0 %v4918_v34 }
 0x3a9   : > { %3876 = vmatprep.subr.bf16.mxu0 %v4923_v33 }
 0x3aa   : > { %4494 = vmatpush3.bf16.msra.mxu1 %v4933_v9  ;;  %v6486_v9 = vsub.s32 0, %v5330_v48 }
 0x3ab   : > { %4495 = vmatprep.subr.bf16.mxu1 %v4934_v55 }
 0x3ac   : > { %3877 = vmatpush1.bf16.msra.mxu0 %v4921_v7 }
 0x3ae   : > { %4496 = vmatpush3.bf16.msra.mxu1 %v4935_v17 }
 0x3af   : > { %4497 = vmatprep.subr.bf16.mxu1 %v4936_v35 }
 0x3b2   : > { %4498 = vmatpush3.bf16.msra.mxu1 %v4937_v56 }
 0x3b3   : > { %4499 = vmatprep.subr.bf16.mxu1 %v4938_v41 }
 0x3b6   : > { %4500 = vmatpush3.bf16.msra.mxu1 %v4939_v50 }
 0x3ec   : > { %v3035_v8 = vpop.f32.mrb[0].mxu1 }
 0x3ed   : > { %v4625_v36 = vpop.f32.mrb[1].mxu1 }
 0x3ee   : > { %v3038_v18 = vpop.f32.mrb[2].mxu1 }
 0x3ef   : > { %v4626_v13 = vpop.f32.mrb[3].mxu1 }
 0x3fc   : > { %v3103_v26 = vpop.f32.mrb[4].mxu1 }
 0x3fd   : > { %v3104_v5 = vadd.f32 %v3103_v26, %v3035_v8  ;;  %v4637_v49 = vpop.f32.mrb[5].mxu1 }
 0x3fe   : > { %v3106_v29 = vpop.f32.mrb[6].mxu1  ;;  %v4349_v49 = vld [vmem:[%s6474_s6] ss:$0 sm:$0xff] }
 0x3ff   : > { %v3107_v30 = vadd.f32 %v3106_v29, %v3038_v18  ;;  %v4638_v23 = vpop.f32.mrb[7].mxu1 }
 0x40c   : > { %v3184_v57 = vpop.f32.mrb[8].mxu1 }
 0x40d   : > { %v3191_v21 = vadd.f32 %v3184_v57, %v3104_v5  ;;  %v4649_v24 = vpop.f32.mrb[9].mxu1 }
 0x40e   : > { %v3187_v54 = vpop.f32.mrb[10].mxu1 }
 0x40f   : > { %v3192_v40 = vadd.f32 %v3187_v54, %v3107_v30  ;;  %v4650_v14 = vpop.f32.mrb[11].mxu1 }
 0x41c   : > { %v3278_v42 = vpop.f32.mrb[12].mxu1 }
 0x41d   : > { %v3285_v20 = vadd.f32 %v3278_v42, %v3191_v21  ;;  %v4661_v59 = vpop.f32.mrb[13].mxu1  ;;  %v3770_v42 = vld [vmem:[%s6476_s8] sm:$0x3] }
 0x41e   : > { %v3281_v44 = vpop.f32.mrb[14].mxu1  ;;  %v6487_v59 = vsub.s32 1, %v5330_v48  ;;  %v3939_v48 = vld [vmem:[%s6478_s10] sm:$0x1] }
 0x41f   : > { %v3286_v27 = vadd.f32 %v3281_v44, %v3192_v40  ;;  %v4662_v4 = vpop.f32.mrb[15].mxu1 }
 0x420   : > { %v3859_v55 = vrot.slane %v3770_v42, %v6487_v59 }
 0x42c   : > { %v3363_v62 = vpop.f32.mrb[16].mxu1 }
 0x42d   : > { %v3370_v16 = vadd.f32 %v3363_v62, %v3285_v20  ;;  %v4673_v53 = vpop.f32.mrb[17].mxu1  ;;  %v3855_v20 = vrot.slane %v3770_v42, %v6486_v9 }
 0x42e   : > { %v3366_v32 = vpop.f32.mrb[18].mxu1 }
 0x42f   : > { %v3371_v63 = vadd.f32 %v3366_v32, %v3286_v27  ;;  %v4674_v60 = vpop.f32.mrb[19].mxu1 }
 0x43c   : > { %v3446_v37 = vpop.f32.mrb[20].mxu1 }
 0x43d   : > { %v3453_v6 = vadd.f32 %v3446_v37, %v3370_v16  ;;  %v4685_v39 = vpop.f32.mrb[21].mxu1 }
 0x43e   : > { %v3449_v3 = vpop.f32.mrb[22].mxu1 }
 0x43f   : > { %v3454_v28 = vadd.f32 %v3449_v3, %v3371_v63  ;;  %v4686_v12 = vpop.f32.mrb[23].mxu1 }
 0x44c   : > { %v3540_v45 = vpop.f32.mrb[24].mxu1 }
 0x44d   : > { %v3547_v8 = vadd.f32 %v3540_v45, %v3453_v6  ;;  %v4697_v36 = vpop.f32.mrb[25].mxu1 }
 0x44e   : > { %v3543_v18 = vpop.f32.mrb[26].mxu1 }
 0x44f   : > { %v3548_v13 = vadd.f32 %v3543_v18, %v3454_v28  ;;  %v4698_v2 = vpop.f32.mrb[27].mxu1 }
 0x45c   : > { %v3625_v51 = vpop.f32.mrb[28].mxu1 }
 0x45d   : > { %v3632_v1 = vadd.f32 %v3625_v51, %v3547_v8  ;;  %v4709_v0 = vpop.f32.mrb[29].mxu1 }
 0x45e   : > { %v3628_v22 = vpop.f32.mrb[30].mxu1 }
 0x45f   : > { %v3633_v26 = vadd.f32 %v3628_v22, %v3548_v13  ;;  %v4710_v25 = vpop.f32.mrb[31].mxu1 }
 0x46c   : > { %v3708_v5 = vpop.f32.mrb[32].mxu1 }
 0x46d   : > { %v3715_v38 = vadd.f32 %v3708_v5, %v3632_v1  ;;  %v4721_v29 = vpop.f32.mrb[33].mxu1 }
 0x46e   : > { %v3711_v30 = vpop.f32.mrb[34].mxu1 }
 0x46f   : > { %v3724_v23 = vadd.f32 %v4349_v49, %v3715_v38  ;;  %v3716_v52 = vadd.f32 %v3711_v30, %v3633_v26  ;;  %v4722_v31 = vpop.f32.mrb[35].mxu1 }
 0x471   : > { %v3726_v58 = vmax.f32 %v3724_v23, 0.0  ;;  %v3725_v15 = vadd.f32 %v4349_v49, %v3716_v52 }
 0x473   : > { %v3730_v19 = vcombine.high %v3726_v58, %v3726_v58  ;;  %v3727_v46 = vmax.f32 %v3725_v15, 0.0 }
 0x475   : > { %v3734_v57 = vmax.f32 %v3726_v58, %v3730_v19  ;;  %v3731_v34 = vcombine.high %v3727_v46, %v3727_v46 }
 0x477   : > { %3736 = vst [vmem:[#allocation7] sm:$0xf] %v3734_v57  ;;  %v3735_v33 = vmax.f32 %v3727_v46, %v3731_v34 }
 0x479   : > { %3737 = vst [vmem:[#allocation7 + $0x4] sm:$0xf] %v3735_v33 }
 0x47e   : > { %v3738_v21 = vld [vmem:[#allocation7] ss:$2 sm:$0x3]  ;;  %v3742_v24 = vld [vmem:[#allocation7 + $0x1] ss:$2 sm:$0x3] }
 0x47f   : > { %v3745_v61 = vmax.f32 %v3738_v21, %v3742_v24 }
 0x480   : > { %v3740_v10 = vld [vmem:[#allocation7 + $0x4] ss:$2 sm:$0x3]  ;;  %v3744_v11 = vld [vmem:[#allocation7 + $0x5] ss:$2 sm:$0x3] }
 0x481   : > { %v3746_v54 = vmax.f32 %v3740_v10, %v3744_v11 }
 0x483   : > { %v3747_v40 = vadd.f32 %v3746_v54, %v3745_v61 }
 0x485   : > { %v3749_v14 = vrot.slane %v3747_v40, 1 }
 0x487   : > { %v3751_v7 = vadd.f32 %v3749_v14, %v3747_v40 }
 0x489   : > { %v3752_v43 = vmul.f32 0.25, %v3751_v7 }
 0x48b   : > { %v3753_v47 = vpack.c.bf16 %v3752_v43, %v3752_v43 }
 0x48d   : > { %3895 = vmatmul.mubr.bf16.vlgmr.msra.gmra.mrb[8].mxu0 %v3753_v47 }
 0x560   : > { %v3896_v44 = vpop.f32.mrb[8].mxu0 }
 0x561   : > { %v3897_v27 = vadd.f32 %v3896_v44, %v3855_v20  ;;  %v3898_v4 = vpop.f32.mrb[9].mxu0 }
 0x562   : > { %v3899_v17 = vadd.f32 %v3898_v4, %v3859_v55  ;;  %v3900_v62 = vpop.f32.mrb[10].mxu0 }
 0x563   : > { %v3903_v16 = vmax.f32 %v3897_v27, 0.0  ;;  %v3901_v53 = vpop.f32.mrb[11].mxu0 }
 0x564   : > { %v3904_v32 = vmax.f32 %v3899_v17, 0.0 }
 0x565   : > { %v3905_v60 = vpack.c.bf16 %v3903_v16, %v3903_v16 }
 0x566   : > { %v3906_v63 = vpack.c.bf16 %v3904_v32, %v3904_v32 }
 0x568   : > { %4068 = vmatprep.mubr.bf16.mxu1 %v3906_v63 }
 0x569   : > { %4069 = vmatmul.mubr.bf16.vlgmr.msra.gmra.mrb[36].mxu1 %v3905_v60 }
 0x63c   : > { %v4501_v37 = vpop.f32.mrb[36].mxu1 }
 0x63d   : > { %v4502_v6 = vpop.f32.mrb[37].mxu1 }
 0x63e   : > { %v4503_v39 = vadd.f32 %v4502_v6, %v4501_v37  ;;  %v4504_v3 = vpop.f32.mrb[38].mxu1 }
 0x63f   : > { %v4505_v28 = vpop.f32.mrb[39].mxu1 }
 0x640   : > { %v4071_v12 = vadd.f32 %v4503_v39, %v3939_v48 }
 0x642   : > { %4076 = vst [vmem:[%s378_s13] sm:$0x1] %v4071_v12 }
 0x643   : > { %4953 = shalt.err (!%p4950_p3)
}
 0x644   : > { %s4954_s25 = scalar_lea.hbm %s6426_s22, 16  ;;  %s4958_s15 = scalar_lea.hbm %s6479_s11, 32 }
 0x645   : > { %p4955_p4 = scmp.ne.s32.totalorder %s6426_s22, %s4954_s25  ;;  %p4959_p9 = scmp.lt.u32.totalorder %s6426_s22, %s6479_s11 }
 0x646   : > { %p4960_p10 = scmp.lt.u32.totalorder %s4958_s15, %s4954_s25  ;;  %p4962_p12 = scmp.lt.u32.totalorder %s4954_s25, %s6426_s22 }
 0x647   : > { %p4956_p7 = pnand %p4955_p4, %p5106_p5 }
 0x648   : > { %p4961_p11 = por %p4960_p10, %p4959_p9 }
 0x649   : > { %p4957_p8 = pneg %p4956_p7 }
 0x64a   : > { %p4963_p13 = por %p4962_p12, %p4961_p11 }
 0x64c   : > { %p4964_p0 = pnand %p4963_p13, %p4957_p8 }
 0x64e   : > { %4967 = shalt.err (!%p4964_p0)
}
 0x64f   : > { %4787 = dma.vmem_to_hbm [thread:$0]  (%p5106_p5), %s6428_s14, 16, %s6426_s22, %s4078_s24  }
 0x650 PF: > { %p4793_p1 = scmp.ge.s32.totalorder %s5002_s20, 2  ;;  %s4102_s0 = sand.u32 1, %s4990_s17  }
 0x651   : > { %s4103_s29 = scalar_lea.sflag [#allocation9], %s4102_s0 }
 0x652   : > { %p4790_p2 = pnand %p4793_p1, %p5110_p6 }
 0x654   : > { %4985 = dma.done.wait (!%p4790_p2), %s4103_s29, 16  }
 0x655   : > { %4987 = vsyncadd (!%p4790_p2), %s4103_s29, 4294967280  ;;  %p21_p3 = scmp.ge.s32.totalorder %s5093_s23, 4   ;;  %s6488_s17 = smov %s4994_s18 }
 0x656   : > { %s6489_s18 = smov %s4998_s19  ;;  %s6490_s19 = smov %s5104_s26 }
 0x657   : > { %s6491_s20 = smov %s5093_s23  ;;  %23 = sbr.rel (!%p21_p3) target bundleno = 5 (0x5), region = 143 }
 0x65e   :  { %4107 = vsyncpa [#allocation9], 1 }
 0x65f   :  { %4109 = vsyncpa [#allocation9 + $0x1], 1 }

</bundles_post_ra>
